<compile_context>
chip_gen: v5e
topology: v5e:2x2
jax: 0.10.0
libtpu: 0.0.40
codegen_flags: <defaults>
</compile_context>

<pallas_src>
from math import lcm

import numpy as np
import jax
import jax.numpy as jnp
from jax import lax
from jax.experimental import pallas as pl
from jax.experimental.pallas import tpu as pltpu

# ---------------- configuration (small shapes consistent with the module) ----------------
NUM_TOKENS = 64
DIM = 32
DEPTH = 2
HEADS = 2
DIM_HEAD = 16
WINDOW_SIZE = 8
SEGMENT_SIZE = 8          # causal default style; r < segment_size required
R = 1                     # causal default r = 1 (kernel implements the r == 1 causal path)
FF_MULT = 4
BATCH = 2
SEQ_LEN = 16              # multiple of lcm(WINDOW_SIZE, SEGMENT_SIZE) -> no padding needed

LN_EPS = 1e-5
NEG = -float(jnp.finfo(jnp.float32).max)   # mask_value = -finfo(f32).max, as in the reference
INV_SQRT2 = 0.7071067811865476


# ------------------------------ fused whole-forward kernel --------------------------------
def _transformer_kernel(tok_ref, emb_ref, cos_ref, sin_ref, rot_ref,
                        lmask_ref, gmask_ref,
                        ang_ref, anb_ref, wqkv_ref, wdyn_ref,
                        lg_ref, lb_ref, gg_ref, gb_ref,
                        wo_ref, bo_ref, fng_ref, fnb_ref,
                        w1_ref, b1_ref, w2_ref, b2_ref,
                        fg_ref, fb_ref, wl_ref, bl_ref,
                        o_ref):
    n = cos_ref.shape[0]
    inner2 = cos_ref.shape[1]
    inner = inner2 // 2
    dh = lg_ref.shape[-1]
    heads = inner // dh
    s = SEGMENT_SIZE
    nseg = n // s
    depth = wqkv_ref.shape[0]

    def ln(x, gamma, beta):
        mu = jnp.mean(x, axis=-1, keepdims=True)
        var = jnp.mean((x - mu) ** 2, axis=-1, keepdims=True)
        return (x - mu) * lax.rsqrt(var + LN_EPS) * gamma + beta

    def erf(x):
        # Numerical Recipes erfc rational approximation (exp/mul/add only, ~f32 accurate).
        a = jnp.abs(x)
        t = 1.0 / (1.0 + 0.5 * a)
        poly = -1.26551223 + t * (1.00002368 + t * (0.37409196 + t * (0.09678418 +
               t * (-0.18628806 + t * (0.27886807 + t * (-1.13520398 + t * (1.48851587 +
               t * (-0.82215223 + t * 0.17087277))))))))
        val = 1.0 - t * jnp.exp(-a * a + poly)
        return jnp.where(x >= 0.0, val, -val)

    # constants (loaded once, shared across layers & heads)
    lmask = lmask_ref[...] > 0.5          # (n, n)    banded local causal mask
    gmask = gmask_ref[...] > 0.5          # (n, nseg) global-token causal mask
    cosf = cos_ref[...]                   # (n, 2*inner)
    sinf = sin_ref[...]
    rotm = rot_ref[...]                   # (2*inner, 2*inner) rotate_half as signed permutation

    # ---- token embedding as one-hot @ emb (gather-free, stays on the MXU) ----
    tok = tok_ref[0]                                            # (n, 1) int32
    vocab = lax.broadcasted_iota(jnp.int32, (n, emb_ref.shape[0]), 1)
    onehot = (vocab == tok).astype(jnp.float32)                 # (n, V)
    x = jnp.dot(onehot, emb_ref[...], preferred_element_type=jnp.float32)   # (n, DIM)

    for l in range(depth):
        ang, anb = ang_ref[l], anb_ref[l]
        wqkv = wqkv_ref[l]
        wdyn = wdyn_ref[l]
        lg, lb = lg_ref[l], lb_ref[l]
        gg, gb = gg_ref[l], gb_ref[l]
        wo, bo = wo_ref[l], bo_ref[l]
        fng, fnb = fng_ref[l], fnb_ref[l]
        w1, b1 = w1_ref[l], b1_ref[l]
        w2, b2 = w2_ref[l], b2_ref[l]

        # ---------------- PreNorm + LongShortAttention + residual ----------------
        hpre = ln(x, ang, anb)                                                  # (n, DIM)
        qkv = jnp.dot(hpre, wqkv, preferred_element_type=jnp.float32)           # (n, 2*inner)
        # rotary on all heads of q and kv in one shot (scale already folded into Wq)
        qkv = qkv * cosf + jnp.dot(qkv, rotm, preferred_element_type=jnp.float32) * sinf

        attn_out = bo                                                           # (1, DIM)
        for hh in range(heads):
            q = qkv[:, hh * dh:(hh + 1) * dh]                                   # (n, dh)
            kv = qkv[:, inner + hh * dh:inner + (hh + 1) * dh]                  # (n, dh)
            kv_n = ln(kv, lg, lb)                                               # local_norm

            # global tokens: dynamic projection per segment (r == 1), then global_norm
            kv_seg = kv.reshape(nseg, s, dh)
            p_logit = jnp.sum(kv_seg * wdyn.reshape(1, 1, dh), axis=-1, keepdims=True)
            p_logit = p_logit - jnp.max(p_logit, axis=1, keepdims=True)
            p_exp = jnp.exp(p_logit)
            p = p_exp / jnp.sum(p_exp, axis=1, keepdims=True)                   # softmax over s
            gkv = ln(jnp.sum(kv_seg * p, axis=1), gg, gb)                       # (nseg, dh)

            # dense local sim (banded mask == windowed look-around) + global sim
            sim_l = jnp.einsum('id,jd->ij', q, kv_n,
                               preferred_element_type=jnp.float32)              # (n, n)
            sim_g = jnp.einsum('id,gd->ig', q, gkv,
                               preferred_element_type=jnp.float32)              # (n, nseg)
            sim_l = jnp.where(lmask, sim_l, NEG)
            sim_g = jnp.where(gmask, sim_g, NEG)

            # joint softmax over [global tokens | local keys]
            m = jnp.maximum(jnp.max(sim_l, axis=-1, keepdims=True),
                            jnp.max(sim_g, axis=-1, keepdims=True))
            e_l = jnp.where(lmask, jnp.exp(sim_l - m), 0.0)
            e_g = jnp.where(gmask, jnp.exp(sim_g - m), 0.0)
            denom = (jnp.sum(e_l, axis=-1, keepdims=True)
                     + jnp.sum(e_g, axis=-1, keepdims=True))
            o_h = (jnp.dot(e_l, kv_n, preferred_element_type=jnp.float32)
                   + jnp.dot(e_g, gkv, preferred_element_type=jnp.float32)) / denom   # (n, dh)

            # fold head merge + to_out into a row-sliced matmul (no lane concat)
            attn_out = attn_out + jnp.dot(o_h, wo[hh * dh:(hh + 1) * dh, :],
                                          preferred_element_type=jnp.float32)
        x = x + attn_out

        # ---------------- PreNorm + FeedForward + residual ----------------
        hpre = ln(x, fng, fnb)
        h1 = jnp.dot(hpre, w1, preferred_element_type=jnp.float32) + b1
        h1 = 0.5 * h1 * (1.0 + erf(h1 * INV_SQRT2))          # exact (erf) GELU
        x = x + jnp.dot(h1, w2, preferred_element_type=jnp.float32) + b2

    # ---------------- final LayerNorm + to_logits ----------------
    hfin = ln(x, fg_ref[...], fb_ref[...])
    o_ref[0] = jnp.dot(hfin, wl_ref[...], preferred_element_type=jnp.float32) + bl_ref[...]


# ----------------------------------- wrapper / specs ---------------------------------------
def _rep_spec(x):
    # full-array block, same block for every grid step (replicated parameters / constants)
    if x.ndim == 2:
        return pl.BlockSpec(x.shape, lambda i: (0, 0))
    if x.ndim == 3:
        return pl.BlockSpec(x.shape, lambda i: (0, 0, 0))
    raise ValueError("unsupported rank")


_PARAM_ORDER = ('emb', 'cos', 'sin', 'rot', 'lmask', 'gmask',
                'ang', 'anb', 'wqkv', 'wdyn',
                'lg', 'lb', 'gg', 'gb',
                'wo', 'bo', 'fng', 'fnb',
                'w1', 'b1', 'w2', 'b2',
                'fg', 'fb', 'wl', 'bl')


def forward(packed, tokens):
    b, n = tokens.shape
    tok3 = tokens.reshape(b, n, 1).astype(jnp.int32)
    ordered = [packed[k] for k in _PARAM_ORDER]
    in_specs = [pl.BlockSpec((1, n, 1), lambda i: (i, 0, 0))] + [_rep_spec(a) for a in ordered]
    return pl.pallas_call(
        _transformer_kernel,
        grid=(b,),
        in_specs=in_specs,
        out_specs=pl.BlockSpec((1, n, NUM_TOKENS), lambda i: (i, 0, 0)),
        out_shape=jax.ShapeDtypeStruct((b, n, NUM_TOKENS), jnp.float32),
        compiler_params=pltpu.CompilerParams(dimension_semantics=("parallel",)),
    )(tok3, *ordered)


# ----------------------------------- parameter init ---------------------------------------
def init_params(key):
    inner = HEADS * DIM_HEAD
    keys = jax.random.split(key, 2 + DEPTH)

    def w(k, shape, scale=0.02):
        return (scale * jax.random.normal(k, shape)).astype(jnp.float32)

    params = {
        'emb': w(keys[0], (NUM_TOKENS, DIM)),
        'final_g': jnp.ones((1, DIM), jnp.float32),
        'final_b': jnp.zeros((1, DIM), jnp.float32),
        'logit_w': w(keys[1], (DIM, NUM_TOKENS)),
        'logit_b': jnp.zeros((1, NUM_TOKENS), jnp.float32),
        'layers': [],
    }
    for li in range(DEPTH):
        lk = jax.random.split(keys[2 + li], 6)
        params['layers'].append({
            'attn_norm_g': jnp.ones((1, DIM), jnp.float32),
            'attn_norm_b': jnp.zeros((1, DIM), jnp.float32),
            'to_q_w': w(lk[0], (DIM, inner)),
            'to_kv_w': w(lk[1], (DIM, inner)),
            'dyn_w': w(lk[2], (1, DIM_HEAD)),            # to_dynamic_proj, r = 1, no bias
            'local_g': jnp.ones((1, DIM_HEAD), jnp.float32),
            'local_b': jnp.zeros((1, DIM_HEAD), jnp.float32),
            'global_g': jnp.ones((1, DIM_HEAD), jnp.float32),
            'global_b': jnp.zeros((1, DIM_HEAD), jnp.float32),
            'to_out_w': w(lk[3], (inner, DIM)),
            'to_out_b': jnp.zeros((1, DIM), jnp.float32),
            'ff_norm_g': jnp.ones((1, DIM), jnp.float32),
            'ff_norm_b': jnp.zeros((1, DIM), jnp.float32),
            'ff_w1': w(lk[4], (DIM, DIM * FF_MULT)),
            'ff_b1': jnp.zeros((1, DIM * FF_MULT), jnp.float32),
            'ff_w2': w(lk[5], (DIM * FF_MULT, DIM)),
            'ff_b2': jnp.zeros((1, DIM), jnp.float32),
        })
    return params


def build_constants(n):
    dh, h, w, s = DIM_HEAD, HEADS, WINDOW_SIZE, SEGMENT_SIZE
    nseg = n // s
    # rotary tables, tiled across the [q_h0 | q_h1 | kv_h0 | kv_h1] lane layout
    inv_freq = 1.0 / (10000.0 ** (np.arange(0, dh, 2, dtype=np.float32) / np.float32(dh)))
    t = np.arange(n, dtype=np.float32)
    freqs = t[:, None] * inv_freq[None, :]
    emb = np.concatenate([freqs, freqs], axis=-1)                    # (n, dh)
    cos = np.tile(np.cos(emb), (1, 2 * h)).astype(np.float32)        # (n, 2*inner)
    sin = np.tile(np.sin(emb), (1, 2 * h)).astype(np.float32)
    # rotate_half as a signed permutation matrix, block-diagonal over all head slots
    half = dh // 2
    P = np.zeros((dh, dh), np.float32)
    for j in range(half):
        P[j + half, j] = -1.0
        P[j, j + half] = 1.0
    rot = np.kron(np.eye(2 * h, dtype=np.float32), P)                # (2*inner, 2*inner)
    # dense banded local mask (== windowed look_around(backward=1) + causal + pad masks)
    idx = np.arange(n)
    ii, jj = idx[:, None], idx[None, :]
    lmask = ((jj <= ii) & ((ii // w) - (jj // w) <= 1)).astype(np.float32)   # (n, n)
    # global-token mask: query may attend a segment's global token once the segment is past
    seg = np.arange(nseg)[None, :]
    gmask = (idx[:, None] >= (seg + 1) * s - 1).astype(np.float32)           # (n, nseg)
    return {'cos': jnp.asarray(cos), 'sin': jnp.asarray(sin), 'rot': jnp.asarray(rot),
            'lmask': jnp.asarray(lmask), 'gmask': jnp.asarray(gmask)}


def pack_params(params, seq_len):
    scale = DIM_HEAD ** -0.5
    stk = lambda name: jnp.stack([lyr[name] for lyr in params['layers']], axis=0)
    wqkv = jnp.stack(
        [jnp.concatenate([lyr['to_q_w'] * scale, lyr['to_kv_w']], axis=1)   # scale folded into Wq
         for lyr in params['layers']], axis=0)                              # (DEPTH, DIM, 2*inner)
    packed = {
        'emb': params['emb'],
        'ang': stk('attn_norm_g'), 'anb': stk('attn_norm_b'),
        'wqkv': wqkv,
        'wdyn': stk('dyn_w'),
        'lg': stk('local_g'), 'lb': stk('local_b'),
        'gg': stk('global_g'), 'gb': stk('global_b'),
        'wo': stk('to_out_w'), 'bo': stk('to_out_b'),
        'fng': stk('ff_norm_g'), 'fnb': stk('ff_norm_b'),
        'w1': stk('ff_w1'), 'b1': stk('ff_b1'),
        'w2': stk('ff_w2'), 'b2': stk('ff_b2'),
        'fg': params['final_g'], 'fb': params['final_b'],
        'wl': params['logit_w'], 'bl': params['logit_b'],
    }
    packed.update(build_constants(seq_len))
    return packed


# --------------------------------------- main ---------------------------------------------
if __name__ == "__main__":
    assert R < SEGMENT_SIZE, "r must be < segment_size for the causal model"
    assert SEQ_LEN % lcm(WINDOW_SIZE, SEGMENT_SIZE) == 0, "padding path not implemented"

    key = jax.random.PRNGKey(0)
    pkey, dkey = jax.random.split(key)
    params = init_params(pkey)
    packed = pack_params(params, SEQ_LEN)
    tokens = jax.random.randint(dkey, (BATCH, SEQ_LEN), 0, NUM_TOKENS, dtype=jnp.int32)

    logits = jax.jit(forward)(packed, tokens)
    jax.block_until_ready(logits)
    assert logits.shape == (BATCH, SEQ_LEN, NUM_TOKENS)
    assert bool(jnp.all(jnp.isfinite(logits)))
    print("KERNEL_OK")
</pallas_src>

<mosaic_0001>
module attributes {stable_mosaic.version = 11 : i64} {
  func.func @_transformer_kernel(%arg0: i32, %arg1: memref<1x16x1xi32, #tpu.memory_space<vmem>>, %arg2: memref<64x32xf32, #tpu.memory_space<vmem>>, %arg3: memref<16x64xf32, #tpu.memory_space<vmem>>, %arg4: memref<16x64xf32, #tpu.memory_space<vmem>>, %arg5: memref<64x64xf32, #tpu.memory_space<vmem>>, %arg6: memref<16x16xf32, #tpu.memory_space<vmem>>, %arg7: memref<16x2xf32, #tpu.memory_space<vmem>>, %arg8: memref<2x1x32xf32, #tpu.memory_space<vmem>>, %arg9: memref<2x1x32xf32, #tpu.memory_space<vmem>>, %arg10: memref<2x32x64xf32, #tpu.memory_space<vmem>>, %arg11: memref<2x1x16xf32, #tpu.memory_space<vmem>>, %arg12: memref<2x1x16xf32, #tpu.memory_space<vmem>>, %arg13: memref<2x1x16xf32, #tpu.memory_space<vmem>>, %arg14: memref<2x1x16xf32, #tpu.memory_space<vmem>>, %arg15: memref<2x1x16xf32, #tpu.memory_space<vmem>>, %arg16: memref<2x32x32xf32, #tpu.memory_space<vmem>>, %arg17: memref<2x1x32xf32, #tpu.memory_space<vmem>>, %arg18: memref<2x1x32xf32, #tpu.memory_space<vmem>>, %arg19: memref<2x1x32xf32, #tpu.memory_space<vmem>>, %arg20: memref<2x32x128xf32, #tpu.memory_space<vmem>>, %arg21: memref<2x1x128xf32, #tpu.memory_space<vmem>>, %arg22: memref<2x128x32xf32, #tpu.memory_space<vmem>>, %arg23: memref<2x1x32xf32, #tpu.memory_space<vmem>>, %arg24: memref<1x32xf32, #tpu.memory_space<vmem>>, %arg25: memref<1x32xf32, #tpu.memory_space<vmem>>, %arg26: memref<32x64xf32, #tpu.memory_space<vmem>>, %arg27: memref<1x64xf32, #tpu.memory_space<vmem>>, %arg28: memref<1x16x64xf32, #tpu.memory_space<vmem>>) attributes {dimension_semantics = [#tpu.dimension_semantics<parallel>], iteration_bounds = array<i64: 2>, scalar_prefetch = 0 : i64, scratch_operands = 0 : i64, tpu.core_type = #tpu.core_type<tc>, window_params = [{transform_indices = @transform_0, window_bounds = array<i64: 1, 16, 1>}, {pipeline_mode = #tpu.pipeline_mode<synchronous>, transform_indices = @transform_1, window_bounds = array<i64: 64, 32>}, {pipeline_mode = #tpu.pipeline_mode<synchronous>, transform_indices = @transform_2, window_bounds = array<i64: 16, 64>}, {pipeline_mode = #tpu.pipeline_mode<synchronous>, transform_indices = @transform_3, window_bounds = array<i64: 16, 64>}, {pipeline_mode = #tpu.pipeline_mode<synchronous>, transform_indices = @transform_4, window_bounds = array<i64: 64, 64>}, {pipeline_mode = #tpu.pipeline_mode<synchronous>, transform_indices = @transform_5, window_bounds = array<i64: 16, 16>}, {pipeline_mode = #tpu.pipeline_mode<synchronous>, transform_indices = @transform_6, window_bounds = array<i64: 16, 2>}, {pipeline_mode = #tpu.pipeline_mode<synchronous>, transform_indices = @transform_7, window_bounds = array<i64: 2, 1, 32>}, {pipeline_mode = #tpu.pipeline_mode<synchronous>, transform_indices = @transform_8, window_bounds = array<i64: 2, 1, 32>}, {pipeline_mode = #tpu.pipeline_mode<synchronous>, transform_indices = @transform_9, window_bounds = array<i64: 2, 32, 64>}, {pipeline_mode = #tpu.pipeline_mode<synchronous>, transform_indices = @transform_10, window_bounds = array<i64: 2, 1, 16>}, {pipeline_mode = #tpu.pipeline_mode<synchronous>, transform_indices = @transform_11, window_bounds = array<i64: 2, 1, 16>}, {pipeline_mode = #tpu.pipeline_mode<synchronous>, transform_indices = @transform_12, window_bounds = array<i64: 2, 1, 16>}, {pipeline_mode = #tpu.pipeline_mode<synchronous>, transform_indices = @transform_13, window_bounds = array<i64: 2, 1, 16>}, {pipeline_mode = #tpu.pipeline_mode<synchronous>, transform_indices = @transform_14, window_bounds = array<i64: 2, 1, 16>}, {pipeline_mode = #tpu.pipeline_mode<synchronous>, transform_indices = @transform_15, window_bounds = array<i64: 2, 32, 32>}, {pipeline_mode = #tpu.pipeline_mode<synchronous>, transform_indices = @transform_16, window_bounds = array<i64: 2, 1, 32>}, {pipeline_mode = #tpu.pipeline_mode<synchronous>, transform_indices = @transform_17, window_bounds = array<i64: 2, 1, 32>}, {pipeline_mode = #tpu.pipeline_mode<synchronous>, transform_indices = @transform_18, window_bounds = array<i64: 2, 1, 32>}, {pipeline_mode = #tpu.pipeline_mode<synchronous>, transform_indices = @transform_19, window_bounds = array<i64: 2, 32, 128>}, {pipeline_mode = #tpu.pipeline_mode<synchronous>, transform_indices = @transform_20, window_bounds = array<i64: 2, 1, 128>}, {pipeline_mode = #tpu.pipeline_mode<synchronous>, transform_indices = @transform_21, window_bounds = array<i64: 2, 128, 32>}, {pipeline_mode = #tpu.pipeline_mode<synchronous>, transform_indices = @transform_22, window_bounds = array<i64: 2, 1, 32>}, {pipeline_mode = #tpu.pipeline_mode<synchronous>, transform_indices = @transform_23, window_bounds = array<i64: 1, 32>}, {pipeline_mode = #tpu.pipeline_mode<synchronous>, transform_indices = @transform_24, window_bounds = array<i64: 1, 32>}, {pipeline_mode = #tpu.pipeline_mode<synchronous>, transform_indices = @transform_25, window_bounds = array<i64: 32, 64>}, {pipeline_mode = #tpu.pipeline_mode<synchronous>, transform_indices = @transform_26, window_bounds = array<i64: 1, 64>}, {transform_indices = @transform_27, window_bounds = array<i64: 1, 16, 64>}]} {
    %c0 = arith.constant 0 : index
    %c0_0 = arith.constant 0 : index
    %0 = vector.load %arg6[%c0, %c0_0] : memref<16x16xf32, #tpu.memory_space<vmem>>, vector<16x16xf32>
    %cst = arith.constant 5.000000e-01 : f32
    %1 = vector.broadcast %cst : f32 to vector<16x16xf32>
    %2 = arith.cmpf ogt, %0, %1 : vector<16x16xf32>
    %c0_1 = arith.constant 0 : index
    %c0_2 = arith.constant 0 : index
    %3 = vector.load %arg7[%c0_1, %c0_2] : memref<16x2xf32, #tpu.memory_space<vmem>>, vector<16x2xf32>
    %cst_3 = arith.constant 5.000000e-01 : f32
    %4 = vector.broadcast %cst_3 : f32 to vector<16x2xf32>
    %5 = arith.cmpf ogt, %3, %4 : vector<16x2xf32>
    %c0_4 = arith.constant 0 : index
    %c0_5 = arith.constant 0 : index
    %6 = vector.load %arg3[%c0_4, %c0_5] : memref<16x64xf32, #tpu.memory_space<vmem>>, vector<16x64xf32>
    %c0_6 = arith.constant 0 : index
    %c0_7 = arith.constant 0 : index
    %7 = vector.load %arg4[%c0_6, %c0_7] : memref<16x64xf32, #tpu.memory_space<vmem>>, vector<16x64xf32>
    %c0_8 = arith.constant 0 : index
    %c0_9 = arith.constant 0 : index
    %8 = vector.load %arg5[%c0_8, %c0_9] : memref<64x64xf32, #tpu.memory_space<vmem>>, vector<64x64xf32>
    %c0_10 = arith.constant 0 : index
    %c0_11 = arith.constant 0 : index
    %c0_12 = arith.constant 0 : index
    %9 = vector.load %arg1[%c0_10, %c0_11, %c0_12] : memref<1x16x1xi32, #tpu.memory_space<vmem>>, vector<1x16x1xi32>
    %10 = vector.shape_cast %9 : vector<1x16x1xi32> to vector<16x1xi32>
    %11 = tpu.iota {dimensions = array<i32: 1>} : vector<16x64xi32>
    %12 = vector.broadcast %10 : vector<16x1xi32> to vector<16x64xi32>
    %13 = arith.cmpi eq, %11, %12 : vector<16x64xi32>
    %14 = arith.extui %13 : vector<16x64xi1> to vector<16x64xi32>
    %15 = arith.sitofp %14 : vector<16x64xi32> to vector<16x64xf32>
    %c0_13 = arith.constant 0 : index
    %c0_14 = arith.constant 0 : index
    %16 = vector.load %arg2[%c0_13, %c0_14] : memref<64x32xf32, #tpu.memory_space<vmem>>, vector<64x32xf32>
    %cst_15 = arith.constant dense<0.000000e+00> : vector<16x32xf32>
    %17 = tpu.matmul %15, %16, %cst_15 {dimension_numbers = #tpu.dot_dimension_numbers<[1], [0], [0], [1], [0, 0, 1, 1], [], []>} : vector<16x64xf32>, vector<64x32xf32>, vector<16x32xf32> -> vector<16x32xf32>
    %c0_16 = arith.constant 0 : index
    %c0_17 = arith.constant 0 : index
    %c0_18 = arith.constant 0 : index
    %18 = vector.load %arg8[%c0_16, %c0_17, %c0_18] : memref<2x1x32xf32, #tpu.memory_space<vmem>>, vector<1x1x32xf32>
    %19 = vector.shape_cast %18 : vector<1x1x32xf32> to vector<1x32xf32>
    %c0_19 = arith.constant 0 : index
    %c0_20 = arith.constant 0 : index
    %c0_21 = arith.constant 0 : index
    %20 = vector.load %arg9[%c0_19, %c0_20, %c0_21] : memref<2x1x32xf32, #tpu.memory_space<vmem>>, vector<1x1x32xf32>
    %21 = vector.shape_cast %20 : vector<1x1x32xf32> to vector<1x32xf32>
    %c0_22 = arith.constant 0 : index
    %c0_23 = arith.constant 0 : index
    %c0_24 = arith.constant 0 : index
    %22 = vector.load %arg10[%c0_22, %c0_23, %c0_24] : memref<2x32x64xf32, #tpu.memory_space<vmem>>, vector<1x32x64xf32>
    %23 = vector.shape_cast %22 : vector<1x32x64xf32> to vector<32x64xf32>
    %c0_25 = arith.constant 0 : index
    %c0_26 = arith.constant 0 : index
    %c0_27 = arith.constant 0 : index
    %24 = vector.load %arg11[%c0_25, %c0_26, %c0_27] : memref<2x1x16xf32, #tpu.memory_space<vmem>>, vector<1x1x16xf32>
    %25 = vector.shape_cast %24 : vector<1x1x16xf32> to vector<1x16xf32>
    %c0_28 = arith.constant 0 : index
    %c0_29 = arith.constant 0 : index
    %c0_30 = arith.constant 0 : index
    %26 = vector.load %arg12[%c0_28, %c0_29, %c0_30] : memref<2x1x16xf32, #tpu.memory_space<vmem>>, vector<1x1x16xf32>
    %27 = vector.shape_cast %26 : vector<1x1x16xf32> to vector<1x16xf32>
    %c0_31 = arith.constant 0 : index
    %c0_32 = arith.constant 0 : index
    %c0_33 = arith.constant 0 : index
    %28 = vector.load %arg13[%c0_31, %c0_32, %c0_33] : memref<2x1x16xf32, #tpu.memory_space<vmem>>, vector<1x1x16xf32>
    %29 = vector.shape_cast %28 : vector<1x1x16xf32> to vector<1x16xf32>
    %c0_34 = arith.constant 0 : index
    %c0_35 = arith.constant 0 : index
    %c0_36 = arith.constant 0 : index
    %30 = vector.load %arg14[%c0_34, %c0_35, %c0_36] : memref<2x1x16xf32, #tpu.memory_space<vmem>>, vector<1x1x16xf32>
    %31 = vector.shape_cast %30 : vector<1x1x16xf32> to vector<1x16xf32>
    %c0_37 = arith.constant 0 : index
    %c0_38 = arith.constant 0 : index
    %c0_39 = arith.constant 0 : index
    %32 = vector.load %arg15[%c0_37, %c0_38, %c0_39] : memref<2x1x16xf32, #tpu.memory_space<vmem>>, vector<1x1x16xf32>
    %33 = vector.shape_cast %32 : vector<1x1x16xf32> to vector<1x16xf32>
    %c0_40 = arith.constant 0 : index
    %c0_41 = arith.constant 0 : index
    %c0_42 = arith.constant 0 : index
    %34 = vector.load %arg16[%c0_40, %c0_41, %c0_42] : memref<2x32x32xf32, #tpu.memory_space<vmem>>, vector<1x32x32xf32>
    %35 = vector.shape_cast %34 : vector<1x32x32xf32> to vector<32x32xf32>
    %c0_43 = arith.constant 0 : index
    %c0_44 = arith.constant 0 : index
    %c0_45 = arith.constant 0 : index
    %36 = vector.load %arg17[%c0_43, %c0_44, %c0_45] : memref<2x1x32xf32, #tpu.memory_space<vmem>>, vector<1x1x32xf32>
    %37 = vector.shape_cast %36 : vector<1x1x32xf32> to vector<1x32xf32>
    %c0_46 = arith.constant 0 : index
    %c0_47 = arith.constant 0 : index
    %c0_48 = arith.constant 0 : index
    %38 = vector.load %arg18[%c0_46, %c0_47, %c0_48] : memref<2x1x32xf32, #tpu.memory_space<vmem>>, vector<1x1x32xf32>
    %39 = vector.shape_cast %38 : vector<1x1x32xf32> to vector<1x32xf32>
    %c0_49 = arith.constant 0 : index
    %c0_50 = arith.constant 0 : index
    %c0_51 = arith.constant 0 : index
    %40 = vector.load %arg19[%c0_49, %c0_50, %c0_51] : memref<2x1x32xf32, #tpu.memory_space<vmem>>, vector<1x1x32xf32>
    %41 = vector.shape_cast %40 : vector<1x1x32xf32> to vector<1x32xf32>
    %c0_52 = arith.constant 0 : index
    %c0_53 = arith.constant 0 : index
    %c0_54 = arith.constant 0 : index
    %42 = vector.load %arg20[%c0_52, %c0_53, %c0_54] : memref<2x32x128xf32, #tpu.memory_space<vmem>>, vector<1x32x128xf32>
    %43 = vector.shape_cast %42 : vector<1x32x128xf32> to vector<32x128xf32>
    %c0_55 = arith.constant 0 : index
    %c0_56 = arith.constant 0 : index
    %c0_57 = arith.constant 0 : index
    %44 = vector.load %arg21[%c0_55, %c0_56, %c0_57] : memref<2x1x128xf32, #tpu.memory_space<vmem>>, vector<1x1x128xf32>
    %45 = vector.shape_cast %44 : vector<1x1x128xf32> to vector<1x128xf32>
    %c0_58 = arith.constant 0 : index
    %c0_59 = arith.constant 0 : index
    %c0_60 = arith.constant 0 : index
    %46 = vector.load %arg22[%c0_58, %c0_59, %c0_60] : memref<2x128x32xf32, #tpu.memory_space<vmem>>, vector<1x128x32xf32>
    %47 = vector.shape_cast %46 : vector<1x128x32xf32> to vector<128x32xf32>
    %c0_61 = arith.constant 0 : index
    %c0_62 = arith.constant 0 : index
    %c0_63 = arith.constant 0 : index
    %48 = vector.load %arg23[%c0_61, %c0_62, %c0_63] : memref<2x1x32xf32, #tpu.memory_space<vmem>>, vector<1x1x32xf32>
    %49 = vector.shape_cast %48 : vector<1x1x32xf32> to vector<1x32xf32>
    %cst_64 = arith.constant dense<0.000000e+00> : vector<16xf32>
    %50 = vector.multi_reduction <add>, %17, %cst_64 [1] : vector<16x32xf32> to vector<16xf32>
    %51 = vector.shape_cast %50 : vector<16xf32> to vector<16x1xf32>
    %cst_65 = arith.constant 3.200000e+01 : f32
    %52 = vector.broadcast %cst_65 : f32 to vector<16x1xf32>
    %53 = arith.divf %51, %52 : vector<16x1xf32>
    %54 = vector.broadcast %53 : vector<16x1xf32> to vector<16x32xf32>
    %55 = arith.subf %17, %54 : vector<16x32xf32>
    %56 = arith.mulf %55, %55 : vector<16x32xf32>
    %cst_66 = arith.constant dense<0.000000e+00> : vector<16xf32>
    %57 = vector.multi_reduction <add>, %56, %cst_66 [1] : vector<16x32xf32> to vector<16xf32>
    %58 = vector.shape_cast %57 : vector<16xf32> to vector<16x1xf32>
    %cst_67 = arith.constant 3.200000e+01 : f32
    %59 = vector.broadcast %cst_67 : f32 to vector<16x1xf32>
    %60 = arith.divf %58, %59 : vector<16x1xf32>
    %61 = vector.broadcast %53 : vector<16x1xf32> to vector<16x32xf32>
    %62 = arith.subf %17, %61 : vector<16x32xf32>
    %cst_68 = arith.constant 9.99999974E-6 : f32
    %63 = vector.broadcast %cst_68 : f32 to vector<16x1xf32>
    %64 = arith.addf %60, %63 : vector<16x1xf32>
    %65 = math.rsqrt %64 : vector<16x1xf32>
    %66 = vector.broadcast %65 : vector<16x1xf32> to vector<16x32xf32>
    %67 = arith.mulf %62, %66 : vector<16x32xf32>
    %68 = vector.broadcast %19 : vector<1x32xf32> to vector<16x32xf32>
    %69 = arith.mulf %67, %68 : vector<16x32xf32>
    %70 = vector.broadcast %21 : vector<1x32xf32> to vector<16x32xf32>
    %71 = arith.addf %69, %70 : vector<16x32xf32>
    %cst_69 = arith.constant dense<0.000000e+00> : vector<16x64xf32>
    %72 = tpu.matmul %71, %23, %cst_69 {dimension_numbers = #tpu.dot_dimension_numbers<[1], [0], [0], [1], [0, 0, 1, 1], [], []>} : vector<16x32xf32>, vector<32x64xf32>, vector<16x64xf32> -> vector<16x64xf32>
    %73 = arith.mulf %72, %6 : vector<16x64xf32>
    %cst_70 = arith.constant dense<0.000000e+00> : vector<16x64xf32>
    %74 = tpu.matmul %72, %8, %cst_70 {dimension_numbers = #tpu.dot_dimension_numbers<[1], [0], [0], [1], [0, 0, 1, 1], [], []>} : vector<16x64xf32>, vector<64x64xf32>, vector<16x64xf32> -> vector<16x64xf32>
    %75 = arith.mulf %74, %7 : vector<16x64xf32>
    %76 = arith.addf %73, %75 : vector<16x64xf32>
    %77 = vector.extract_strided_slice %76 {offsets = [0, 0], sizes = [16, 16], strides = [1, 1]} : vector<16x64xf32> to vector<16x16xf32>
    %78 = vector.extract_strided_slice %76 {offsets = [0, 32], sizes = [16, 16], strides = [1, 1]} : vector<16x64xf32> to vector<16x16xf32>
    %cst_71 = arith.constant dense<0.000000e+00> : vector<16xf32>
    %79 = vector.multi_reduction <add>, %78, %cst_71 [1] : vector<16x16xf32> to vector<16xf32>
    %80 = vector.shape_cast %79 : vector<16xf32> to vector<16x1xf32>
    %cst_72 = arith.constant 1.600000e+01 : f32
    %81 = vector.broadcast %cst_72 : f32 to vector<16x1xf32>
    %82 = arith.divf %80, %81 : vector<16x1xf32>
    %83 = vector.broadcast %82 : vector<16x1xf32> to vector<16x16xf32>
    %84 = arith.subf %78, %83 : vector<16x16xf32>
    %85 = arith.mulf %84, %84 : vector<16x16xf32>
    %cst_73 = arith.constant dense<0.000000e+00> : vector<16xf32>
    %86 = vector.multi_reduction <add>, %85, %cst_73 [1] : vector<16x16xf32> to vector<16xf32>
    %87 = vector.shape_cast %86 : vector<16xf32> to vector<16x1xf32>
    %cst_74 = arith.constant 1.600000e+01 : f32
    %88 = vector.broadcast %cst_74 : f32 to vector<16x1xf32>
    %89 = arith.divf %87, %88 : vector<16x1xf32>
    %90 = vector.broadcast %82 : vector<16x1xf32> to vector<16x16xf32>
    %91 = arith.subf %78, %90 : vector<16x16xf32>
    %cst_75 = arith.constant 9.99999974E-6 : f32
    %92 = vector.broadcast %cst_75 : f32 to vector<16x1xf32>
    %93 = arith.addf %89, %92 : vector<16x1xf32>
    %94 = math.rsqrt %93 : vector<16x1xf32>
    %95 = vector.broadcast %94 : vector<16x1xf32> to vector<16x16xf32>
    %96 = arith.mulf %91, %95 : vector<16x16xf32>
    %97 = vector.broadcast %27 : vector<1x16xf32> to vector<16x16xf32>
    %98 = arith.mulf %96, %97 : vector<16x16xf32>
    %99 = vector.broadcast %29 : vector<1x16xf32> to vector<16x16xf32>
    %100 = arith.addf %98, %99 : vector<16x16xf32>
    %101 = vector.shape_cast %78 : vector<16x16xf32> to vector<2x8x16xf32>
    %102 = vector.shape_cast %25 : vector<1x16xf32> to vector<1x1x16xf32>
    %103 = vector.broadcast %102 : vector<1x1x16xf32> to vector<2x8x16xf32>
    %104 = arith.mulf %101, %103 : vector<2x8x16xf32>
    %cst_76 = arith.constant dense<0.000000e+00> : vector<2x8xf32>
    %105 = vector.multi_reduction <add>, %104, %cst_76 [2] : vector<2x8x16xf32> to vector<2x8xf32>
    %106 = vector.shape_cast %105 : vector<2x8xf32> to vector<2x8x1xf32>
    %cst_77 = arith.constant dense<0xFF800000> : vector<2x1xf32>
    %107 = vector.multi_reduction <maximumf>, %106, %cst_77 [1] : vector<2x8x1xf32> to vector<2x1xf32>
    %108 = vector.shape_cast %107 : vector<2x1xf32> to vector<2x1x1xf32>
    %109 = vector.broadcast %108 : vector<2x1x1xf32> to vector<2x8x1xf32>
    %110 = arith.subf %106, %109 : vector<2x8x1xf32>
    %111 = math.exp %110 : vector<2x8x1xf32>
    %cst_78 = arith.constant dense<0.000000e+00> : vector<2x1xf32>
    %112 = vector.multi_reduction <add>, %111, %cst_78 [1] : vector<2x8x1xf32> to vector<2x1xf32>
    %113 = vector.shape_cast %112 : vector<2x1xf32> to vector<2x1x1xf32>
    %114 = vector.broadcast %113 : vector<2x1x1xf32> to vector<2x8x1xf32>
    %115 = arith.divf %111, %114 : vector<2x8x1xf32>
    %116 = vector.broadcast %115 : vector<2x8x1xf32> to vector<2x8x16xf32>
    %117 = arith.mulf %101, %116 : vector<2x8x16xf32>
    %cst_79 = arith.constant dense<0.000000e+00> : vector<2x16xf32>
    %118 = vector.multi_reduction <add>, %117, %cst_79 [1] : vector<2x8x16xf32> to vector<2x16xf32>
    %cst_80 = arith.constant dense<0.000000e+00> : vector<2xf32>
    %119 = vector.multi_reduction <add>, %118, %cst_80 [1] : vector<2x16xf32> to vector<2xf32>
    %120 = vector.shape_cast %119 : vector<2xf32> to vector<2x1xf32>
    %cst_81 = arith.constant 1.600000e+01 : f32
    %121 = vector.broadcast %cst_81 : f32 to vector<2x1xf32>
    %122 = arith.divf %120, %121 : vector<2x1xf32>
    %123 = vector.broadcast %122 : vector<2x1xf32> to vector<2x16xf32>
    %124 = arith.subf %118, %123 : vector<2x16xf32>
    %125 = arith.mulf %124, %124 : vector<2x16xf32>
    %cst_82 = arith.constant dense<0.000000e+00> : vector<2xf32>
    %126 = vector.multi_reduction <add>, %125, %cst_82 [1] : vector<2x16xf32> to vector<2xf32>
    %127 = vector.shape_cast %126 : vector<2xf32> to vector<2x1xf32>
    %cst_83 = arith.constant 1.600000e+01 : f32
    %128 = vector.broadcast %cst_83 : f32 to vector<2x1xf32>
    %129 = arith.divf %127, %128 : vector<2x1xf32>
    %130 = vector.broadcast %122 : vector<2x1xf32> to vector<2x16xf32>
    %131 = arith.subf %118, %130 : vector<2x16xf32>
    %cst_84 = arith.constant 9.99999974E-6 : f32
    %132 = vector.broadcast %cst_84 : f32 to vector<2x1xf32>
    %133 = arith.addf %129, %132 : vector<2x1xf32>
    %134 = math.rsqrt %133 : vector<2x1xf32>
    %135 = vector.broadcast %134 : vector<2x1xf32> to vector<2x16xf32>
    %136 = arith.mulf %131, %135 : vector<2x16xf32>
    %137 = vector.broadcast %31 : vector<1x16xf32> to vector<2x16xf32>
    %138 = arith.mulf %136, %137 : vector<2x16xf32>
    %139 = vector.broadcast %33 : vector<1x16xf32> to vector<2x16xf32>
    %140 = arith.addf %138, %139 : vector<2x16xf32>
    "tpu.trace_start"() <{level = 10 : i32, message = "id,jd->ij"}> : () -> ()
    %cst_85 = arith.constant dense<0.000000e+00> : vector<16x16xf32>
    %141 = tpu.matmul %77, %100, %cst_85 {dimension_numbers = #tpu.dot_dimension_numbers<[1], [1], [0], [0], [0, 0, 1, 0], [], []>} : vector<16x16xf32>, vector<16x16xf32>, vector<16x16xf32> -> vector<16x16xf32>
    "tpu.trace_stop"() : () -> ()
    "tpu.trace_start"() <{level = 10 : i32, message = "id,gd->ig"}> : () -> ()
    %cst_86 = arith.constant dense<0.000000e+00> : vector<16x2xf32>
    %142 = tpu.matmul %77, %140, %cst_86 {dimension_numbers = #tpu.dot_dimension_numbers<[1], [1], [0], [0], [0, 0, 1, 0], [], []>} : vector<16x16xf32>, vector<2x16xf32>, vector<16x2xf32> -> vector<16x2xf32>
    %cst_87 = arith.constant -3.40282347E+38 : f32
    "tpu.trace_stop"() : () -> ()
    %143 = vector.broadcast %cst_87 : f32 to vector<16x16xf32>
    %144 = arith.select %2, %141, %143 : vector<16x16xi1>, vector<16x16xf32>
    %cst_88 = arith.constant -3.40282347E+38 : f32
    %145 = vector.broadcast %cst_88 : f32 to vector<16x2xf32>
    %146 = arith.select %5, %142, %145 : vector<16x2xi1>, vector<16x2xf32>
    %cst_89 = arith.constant dense<0xFF800000> : vector<16xf32>
    %147 = vector.multi_reduction <maximumf>, %144, %cst_89 [1] : vector<16x16xf32> to vector<16xf32>
    %148 = vector.shape_cast %147 : vector<16xf32> to vector<16x1xf32>
    %cst_90 = arith.constant dense<0xFF800000> : vector<16xf32>
    %149 = vector.multi_reduction <maximumf>, %146, %cst_90 [1] : vector<16x2xf32> to vector<16xf32>
    %150 = vector.shape_cast %149 : vector<16xf32> to vector<16x1xf32>
    %151 = arith.maximumf %148, %150 : vector<16x1xf32>
    %152 = vector.broadcast %151 : vector<16x1xf32> to vector<16x16xf32>
    %153 = arith.subf %144, %152 : vector<16x16xf32>
    %154 = math.exp %153 : vector<16x16xf32>
    %cst_91 = arith.constant 0.000000e+00 : f32
    %155 = vector.broadcast %cst_91 : f32 to vector<16x16xf32>
    %156 = arith.select %2, %154, %155 : vector<16x16xi1>, vector<16x16xf32>
    %157 = vector.broadcast %151 : vector<16x1xf32> to vector<16x2xf32>
    %158 = arith.subf %146, %157 : vector<16x2xf32>
    %159 = math.exp %158 : vector<16x2xf32>
    %cst_92 = arith.constant 0.000000e+00 : f32
    %160 = vector.broadcast %cst_92 : f32 to vector<16x2xf32>
    %161 = arith.select %5, %159, %160 : vector<16x2xi1>, vector<16x2xf32>
    %cst_93 = arith.constant dense<0.000000e+00> : vector<16xf32>
    %162 = vector.multi_reduction <add>, %156, %cst_93 [1] : vector<16x16xf32> to vector<16xf32>
    %163 = vector.shape_cast %162 : vector<16xf32> to vector<16x1xf32>
    %cst_94 = arith.constant dense<0.000000e+00> : vector<16xf32>
    %164 = vector.multi_reduction <add>, %161, %cst_94 [1] : vector<16x2xf32> to vector<16xf32>
    %165 = vector.shape_cast %164 : vector<16xf32> to vector<16x1xf32>
    %166 = arith.addf %163, %165 : vector<16x1xf32>
    %cst_95 = arith.constant dense<0.000000e+00> : vector<16x16xf32>
    %167 = tpu.matmul %156, %100, %cst_95 {dimension_numbers = #tpu.dot_dimension_numbers<[1], [0], [0], [1], [0, 0, 1, 1], [], []>} : vector<16x16xf32>, vector<16x16xf32>, vector<16x16xf32> -> vector<16x16xf32>
    %cst_96 = arith.constant dense<0.000000e+00> : vector<16x16xf32>
    %168 = tpu.matmul %161, %140, %cst_96 {dimension_numbers = #tpu.dot_dimension_numbers<[1], [0], [0], [1], [0, 0, 1, 1], [], []>} : vector<16x2xf32>, vector<2x16xf32>, vector<16x16xf32> -> vector<16x16xf32>
    %169 = arith.addf %167, %168 : vector<16x16xf32>
    %170 = vector.broadcast %166 : vector<16x1xf32> to vector<16x16xf32>
    %171 = arith.divf %169, %170 : vector<16x16xf32>
    %172 = vector.extract_strided_slice %35 {offsets = [0, 0], sizes = [16, 32], strides = [1, 1]} : vector<32x32xf32> to vector<16x32xf32>
    %cst_97 = arith.constant dense<0.000000e+00> : vector<16x32xf32>
    %173 = tpu.matmul %171, %172, %cst_97 {dimension_numbers = #tpu.dot_dimension_numbers<[1], [0], [0], [1], [0, 0, 1, 1], [], []>} : vector<16x16xf32>, vector<16x32xf32>, vector<16x32xf32> -> vector<16x32xf32>
    %174 = vector.broadcast %37 : vector<1x32xf32> to vector<16x32xf32>
    %175 = arith.addf %174, %173 : vector<16x32xf32>
    %176 = vector.extract_strided_slice %76 {offsets = [0, 16], sizes = [16, 16], strides = [1, 1]} : vector<16x64xf32> to vector<16x16xf32>
    %177 = vector.extract_strided_slice %76 {offsets = [0, 48], sizes = [16, 16], strides = [1, 1]} : vector<16x64xf32> to vector<16x16xf32>
    %cst_98 = arith.constant dense<0.000000e+00> : vector<16xf32>
    %178 = vector.multi_reduction <add>, %177, %cst_98 [1] : vector<16x16xf32> to vector<16xf32>
    %179 = vector.shape_cast %178 : vector<16xf32> to vector<16x1xf32>
    %cst_99 = arith.constant 1.600000e+01 : f32
    %180 = vector.broadcast %cst_99 : f32 to vector<16x1xf32>
    %181 = arith.divf %179, %180 : vector<16x1xf32>
    %182 = vector.broadcast %181 : vector<16x1xf32> to vector<16x16xf32>
    %183 = arith.subf %177, %182 : vector<16x16xf32>
    %184 = arith.mulf %183, %183 : vector<16x16xf32>
    %cst_100 = arith.constant dense<0.000000e+00> : vector<16xf32>
    %185 = vector.multi_reduction <add>, %184, %cst_100 [1] : vector<16x16xf32> to vector<16xf32>
    %186 = vector.shape_cast %185 : vector<16xf32> to vector<16x1xf32>
    %cst_101 = arith.constant 1.600000e+01 : f32
    %187 = vector.broadcast %cst_101 : f32 to vector<16x1xf32>
    %188 = arith.divf %186, %187 : vector<16x1xf32>
    %189 = vector.broadcast %181 : vector<16x1xf32> to vector<16x16xf32>
    %190 = arith.subf %177, %189 : vector<16x16xf32>
    %cst_102 = arith.constant 9.99999974E-6 : f32
    %191 = vector.broadcast %cst_102 : f32 to vector<16x1xf32>
    %192 = arith.addf %188, %191 : vector<16x1xf32>
    %193 = math.rsqrt %192 : vector<16x1xf32>
    %194 = vector.broadcast %193 : vector<16x1xf32> to vector<16x16xf32>
    %195 = arith.mulf %190, %194 : vector<16x16xf32>
    %196 = vector.broadcast %27 : vector<1x16xf32> to vector<16x16xf32>
    %197 = arith.mulf %195, %196 : vector<16x16xf32>
    %198 = vector.broadcast %29 : vector<1x16xf32> to vector<16x16xf32>
    %199 = arith.addf %197, %198 : vector<16x16xf32>
    %200 = vector.shape_cast %177 : vector<16x16xf32> to vector<2x8x16xf32>
    %201 = vector.shape_cast %25 : vector<1x16xf32> to vector<1x1x16xf32>
    %202 = vector.broadcast %201 : vector<1x1x16xf32> to vector<2x8x16xf32>
    %203 = arith.mulf %200, %202 : vector<2x8x16xf32>
    %cst_103 = arith.constant dense<0.000000e+00> : vector<2x8xf32>
    %204 = vector.multi_reduction <add>, %203, %cst_103 [2] : vector<2x8x16xf32> to vector<2x8xf32>
    %205 = vector.shape_cast %204 : vector<2x8xf32> to vector<2x8x1xf32>
    %cst_104 = arith.constant dense<0xFF800000> : vector<2x1xf32>
    %206 = vector.multi_reduction <maximumf>, %205, %cst_104 [1] : vector<2x8x1xf32> to vector<2x1xf32>
    %207 = vector.shape_cast %206 : vector<2x1xf32> to vector<2x1x1xf32>
    %208 = vector.broadcast %207 : vector<2x1x1xf32> to vector<2x8x1xf32>
    %209 = arith.subf %205, %208 : vector<2x8x1xf32>
    %210 = math.exp %209 : vector<2x8x1xf32>
    %cst_105 = arith.constant dense<0.000000e+00> : vector<2x1xf32>
    %211 = vector.multi_reduction <add>, %210, %cst_105 [1] : vector<2x8x1xf32> to vector<2x1xf32>
    %212 = vector.shape_cast %211 : vector<2x1xf32> to vector<2x1x1xf32>
    %213 = vector.broadcast %212 : vector<2x1x1xf32> to vector<2x8x1xf32>
    %214 = arith.divf %210, %213 : vector<2x8x1xf32>
    %215 = vector.broadcast %214 : vector<2x8x1xf32> to vector<2x8x16xf32>
    %216 = arith.mulf %200, %215 : vector<2x8x16xf32>
    %cst_106 = arith.constant dense<0.000000e+00> : vector<2x16xf32>
    %217 = vector.multi_reduction <add>, %216, %cst_106 [1] : vector<2x8x16xf32> to vector<2x16xf32>
    %cst_107 = arith.constant dense<0.000000e+00> : vector<2xf32>
    %218 = vector.multi_reduction <add>, %217, %cst_107 [1] : vector<2x16xf32> to vector<2xf32>
    %219 = vector.shape_cast %218 : vector<2xf32> to vector<2x1xf32>
    %cst_108 = arith.constant 1.600000e+01 : f32
    %220 = vector.broadcast %cst_108 : f32 to vector<2x1xf32>
    %221 = arith.divf %219, %220 : vector<2x1xf32>
    %222 = vector.broadcast %221 : vector<2x1xf32> to vector<2x16xf32>
    %223 = arith.subf %217, %222 : vector<2x16xf32>
    %224 = arith.mulf %223, %223 : vector<2x16xf32>
    %cst_109 = arith.constant dense<0.000000e+00> : vector<2xf32>
    %225 = vector.multi_reduction <add>, %224, %cst_109 [1] : vector<2x16xf32> to vector<2xf32>
    %226 = vector.shape_cast %225 : vector<2xf32> to vector<2x1xf32>
    %cst_110 = arith.constant 1.600000e+01 : f32
    %227 = vector.broadcast %cst_110 : f32 to vector<2x1xf32>
    %228 = arith.divf %226, %227 : vector<2x1xf32>
    %229 = vector.broadcast %221 : vector<2x1xf32> to vector<2x16xf32>
    %230 = arith.subf %217, %229 : vector<2x16xf32>
    %cst_111 = arith.constant 9.99999974E-6 : f32
    %231 = vector.broadcast %cst_111 : f32 to vector<2x1xf32>
    %232 = arith.addf %228, %231 : vector<2x1xf32>
    %233 = math.rsqrt %232 : vector<2x1xf32>
    %234 = vector.broadcast %233 : vector<2x1xf32> to vector<2x16xf32>
    %235 = arith.mulf %230, %234 : vector<2x16xf32>
    %236 = vector.broadcast %31 : vector<1x16xf32> to vector<2x16xf32>
    %237 = arith.mulf %235, %236 : vector<2x16xf32>
    %238 = vector.broadcast %33 : vector<1x16xf32> to vector<2x16xf32>
    %239 = arith.addf %237, %238 : vector<2x16xf32>
    "tpu.trace_start"() <{level = 10 : i32, message = "id,jd->ij"}> : () -> ()
    %cst_112 = arith.constant dense<0.000000e+00> : vector<16x16xf32>
    %240 = tpu.matmul %176, %199, %cst_112 {dimension_numbers = #tpu.dot_dimension_numbers<[1], [1], [0], [0], [0, 0, 1, 0], [], []>} : vector<16x16xf32>, vector<16x16xf32>, vector<16x16xf32> -> vector<16x16xf32>
    "tpu.trace_stop"() : () -> ()
    "tpu.trace_start"() <{level = 10 : i32, message = "id,gd->ig"}> : () -> ()
    %cst_113 = arith.constant dense<0.000000e+00> : vector<16x2xf32>
    %241 = tpu.matmul %176, %239, %cst_113 {dimension_numbers = #tpu.dot_dimension_numbers<[1], [1], [0], [0], [0, 0, 1, 0], [], []>} : vector<16x16xf32>, vector<2x16xf32>, vector<16x2xf32> -> vector<16x2xf32>
    %cst_114 = arith.constant -3.40282347E+38 : f32
    "tpu.trace_stop"() : () -> ()
    %242 = vector.broadcast %cst_114 : f32 to vector<16x16xf32>
    %243 = arith.select %2, %240, %242 : vector<16x16xi1>, vector<16x16xf32>
    %cst_115 = arith.constant -3.40282347E+38 : f32
    %244 = vector.broadcast %cst_115 : f32 to vector<16x2xf32>
    %245 = arith.select %5, %241, %244 : vector<16x2xi1>, vector<16x2xf32>
    %cst_116 = arith.constant dense<0xFF800000> : vector<16xf32>
    %246 = vector.multi_reduction <maximumf>, %243, %cst_116 [1] : vector<16x16xf32> to vector<16xf32>
    %247 = vector.shape_cast %246 : vector<16xf32> to vector<16x1xf32>
    %cst_117 = arith.constant dense<0xFF800000> : vector<16xf32>
    %248 = vector.multi_reduction <maximumf>, %245, %cst_117 [1] : vector<16x2xf32> to vector<16xf32>
    %249 = vector.shape_cast %248 : vector<16xf32> to vector<16x1xf32>
    %250 = arith.maximumf %247, %249 : vector<16x1xf32>
    %251 = vector.broadcast %250 : vector<16x1xf32> to vector<16x16xf32>
    %252 = arith.subf %243, %251 : vector<16x16xf32>
    %253 = math.exp %252 : vector<16x16xf32>
    %cst_118 = arith.constant 0.000000e+00 : f32
    %254 = vector.broadcast %cst_118 : f32 to vector<16x16xf32>
    %255 = arith.select %2, %253, %254 : vector<16x16xi1>, vector<16x16xf32>
    %256 = vector.broadcast %250 : vector<16x1xf32> to vector<16x2xf32>
    %257 = arith.subf %245, %256 : vector<16x2xf32>
    %258 = math.exp %257 : vector<16x2xf32>
    %cst_119 = arith.constant 0.000000e+00 : f32
    %259 = vector.broadcast %cst_119 : f32 to vector<16x2xf32>
    %260 = arith.select %5, %258, %259 : vector<16x2xi1>, vector<16x2xf32>
    %cst_120 = arith.constant dense<0.000000e+00> : vector<16xf32>
    %261 = vector.multi_reduction <add>, %255, %cst_120 [1] : vector<16x16xf32> to vector<16xf32>
    %262 = vector.shape_cast %261 : vector<16xf32> to vector<16x1xf32>
    %cst_121 = arith.constant dense<0.000000e+00> : vector<16xf32>
    %263 = vector.multi_reduction <add>, %260, %cst_121 [1] : vector<16x2xf32> to vector<16xf32>
    %264 = vector.shape_cast %263 : vector<16xf32> to vector<16x1xf32>
    %265 = arith.addf %262, %264 : vector<16x1xf32>
    %cst_122 = arith.constant dense<0.000000e+00> : vector<16x16xf32>
    %266 = tpu.matmul %255, %199, %cst_122 {dimension_numbers = #tpu.dot_dimension_numbers<[1], [0], [0], [1], [0, 0, 1, 1], [], []>} : vector<16x16xf32>, vector<16x16xf32>, vector<16x16xf32> -> vector<16x16xf32>
    %cst_123 = arith.constant dense<0.000000e+00> : vector<16x16xf32>
    %267 = tpu.matmul %260, %239, %cst_123 {dimension_numbers = #tpu.dot_dimension_numbers<[1], [0], [0], [1], [0, 0, 1, 1], [], []>} : vector<16x2xf32>, vector<2x16xf32>, vector<16x16xf32> -> vector<16x16xf32>
    %268 = arith.addf %266, %267 : vector<16x16xf32>
    %269 = vector.broadcast %265 : vector<16x1xf32> to vector<16x16xf32>
    %270 = arith.divf %268, %269 : vector<16x16xf32>
    %271 = vector.extract_strided_slice %35 {offsets = [16, 0], sizes = [16, 32], strides = [1, 1]} : vector<32x32xf32> to vector<16x32xf32>
    %cst_124 = arith.constant dense<0.000000e+00> : vector<16x32xf32>
    %272 = tpu.matmul %270, %271, %cst_124 {dimension_numbers = #tpu.dot_dimension_numbers<[1], [0], [0], [1], [0, 0, 1, 1], [], []>} : vector<16x16xf32>, vector<16x32xf32>, vector<16x32xf32> -> vector<16x32xf32>
    %273 = arith.addf %175, %272 : vector<16x32xf32>
    %274 = arith.addf %17, %273 : vector<16x32xf32>
    %cst_125 = arith.constant dense<0.000000e+00> : vector<16xf32>
    %275 = vector.multi_reduction <add>, %274, %cst_125 [1] : vector<16x32xf32> to vector<16xf32>
    %276 = vector.shape_cast %275 : vector<16xf32> to vector<16x1xf32>
    %cst_126 = arith.constant 3.200000e+01 : f32
    %277 = vector.broadcast %cst_126 : f32 to vector<16x1xf32>
    %278 = arith.divf %276, %277 : vector<16x1xf32>
    %279 = vector.broadcast %278 : vector<16x1xf32> to vector<16x32xf32>
    %280 = arith.subf %274, %279 : vector<16x32xf32>
    %281 = arith.mulf %280, %280 : vector<16x32xf32>
    %cst_127 = arith.constant dense<0.000000e+00> : vector<16xf32>
    %282 = vector.multi_reduction <add>, %281, %cst_127 [1] : vector<16x32xf32> to vector<16xf32>
    %283 = vector.shape_cast %282 : vector<16xf32> to vector<16x1xf32>
    %cst_128 = arith.constant 3.200000e+01 : f32
    %284 = vector.broadcast %cst_128 : f32 to vector<16x1xf32>
    %285 = arith.divf %283, %284 : vector<16x1xf32>
    %286 = vector.broadcast %278 : vector<16x1xf32> to vector<16x32xf32>
    %287 = arith.subf %274, %286 : vector<16x32xf32>
    %cst_129 = arith.constant 9.99999974E-6 : f32
    %288 = vector.broadcast %cst_129 : f32 to vector<16x1xf32>
    %289 = arith.addf %285, %288 : vector<16x1xf32>
    %290 = math.rsqrt %289 : vector<16x1xf32>
    %291 = vector.broadcast %290 : vector<16x1xf32> to vector<16x32xf32>
    %292 = arith.mulf %287, %291 : vector<16x32xf32>
    %293 = vector.broadcast %39 : vector<1x32xf32> to vector<16x32xf32>
    %294 = arith.mulf %292, %293 : vector<16x32xf32>
    %295 = vector.broadcast %41 : vector<1x32xf32> to vector<16x32xf32>
    %296 = arith.addf %294, %295 : vector<16x32xf32>
    %cst_130 = arith.constant dense<0.000000e+00> : vector<16x128xf32>
    %297 = tpu.matmul %296, %43, %cst_130 {dimension_numbers = #tpu.dot_dimension_numbers<[1], [0], [0], [1], [0, 0, 1, 1], [], []>} : vector<16x32xf32>, vector<32x128xf32>, vector<16x128xf32> -> vector<16x128xf32>
    %298 = vector.broadcast %45 : vector<1x128xf32> to vector<16x128xf32>
    %299 = arith.addf %297, %298 : vector<16x128xf32>
    %cst_131 = arith.constant 5.000000e-01 : f32
    %300 = vector.broadcast %cst_131 : f32 to vector<16x128xf32>
    %301 = arith.mulf %300, %299 : vector<16x128xf32>
    %cst_132 = arith.constant 0.707106769 : f32
    %302 = vector.broadcast %cst_132 : f32 to vector<16x128xf32>
    %303 = arith.mulf %299, %302 : vector<16x128xf32>
    %304 = math.absf %303 : vector<16x128xf32>
    %cst_133 = arith.constant 5.000000e-01 : f32
    %305 = vector.broadcast %cst_133 : f32 to vector<16x128xf32>
    %306 = arith.mulf %305, %304 : vector<16x128xf32>
    %cst_134 = arith.constant 1.000000e+00 : f32
    %307 = vector.broadcast %cst_134 : f32 to vector<16x128xf32>
    %308 = arith.addf %307, %306 : vector<16x128xf32>
    %cst_135 = arith.constant 1.000000e+00 : f32
    %309 = vector.broadcast %cst_135 : f32 to vector<16x128xf32>
    %310 = arith.divf %309, %308 : vector<16x128xf32>
    %cst_136 = arith.constant 0.170872763 : f32
    %311 = vector.broadcast %cst_136 : f32 to vector<16x128xf32>
    %312 = arith.mulf %310, %311 : vector<16x128xf32>
    %cst_137 = arith.constant -0.822152256 : f32
    %313 = vector.broadcast %cst_137 : f32 to vector<16x128xf32>
    %314 = arith.addf %313, %312 : vector<16x128xf32>
    %315 = arith.mulf %310, %314 : vector<16x128xf32>
    %cst_138 = arith.constant 1.48851585 : f32
    %316 = vector.broadcast %cst_138 : f32 to vector<16x128xf32>
    %317 = arith.addf %316, %315 : vector<16x128xf32>
    %318 = arith.mulf %310, %317 : vector<16x128xf32>
    %cst_139 = arith.constant -1.13520396 : f32
    %319 = vector.broadcast %cst_139 : f32 to vector<16x128xf32>
    %320 = arith.addf %319, %318 : vector<16x128xf32>
    %321 = arith.mulf %310, %320 : vector<16x128xf32>
    %cst_140 = arith.constant 0.278868079 : f32
    %322 = vector.broadcast %cst_140 : f32 to vector<16x128xf32>
    %323 = arith.addf %322, %321 : vector<16x128xf32>
    %324 = arith.mulf %310, %323 : vector<16x128xf32>
    %cst_141 = arith.constant -0.186288059 : f32
    %325 = vector.broadcast %cst_141 : f32 to vector<16x128xf32>
    %326 = arith.addf %325, %324 : vector<16x128xf32>
    %327 = arith.mulf %310, %326 : vector<16x128xf32>
    %cst_142 = arith.constant 0.0967841818 : f32
    %328 = vector.broadcast %cst_142 : f32 to vector<16x128xf32>
    %329 = arith.addf %328, %327 : vector<16x128xf32>
    %330 = arith.mulf %310, %329 : vector<16x128xf32>
    %cst_143 = arith.constant 0.374091953 : f32
    %331 = vector.broadcast %cst_143 : f32 to vector<16x128xf32>
    %332 = arith.addf %331, %330 : vector<16x128xf32>
    %333 = arith.mulf %310, %332 : vector<16x128xf32>
    %cst_144 = arith.constant 1.00002372 : f32
    %334 = vector.broadcast %cst_144 : f32 to vector<16x128xf32>
    %335 = arith.addf %334, %333 : vector<16x128xf32>
    %336 = arith.mulf %310, %335 : vector<16x128xf32>
    %cst_145 = arith.constant -1.26551223 : f32
    %337 = vector.broadcast %cst_145 : f32 to vector<16x128xf32>
    %338 = arith.addf %337, %336 : vector<16x128xf32>
    %cst_146 = arith.constant 0.000000e+00 : f32
    %339 = vector.broadcast %cst_146 : f32 to vector<16x128xf32>
    %340 = arith.subf %339, %304 : vector<16x128xf32>
    %341 = arith.mulf %340, %304 : vector<16x128xf32>
    %342 = arith.addf %341, %338 : vector<16x128xf32>
    %343 = math.exp %342 : vector<16x128xf32>
    %344 = arith.mulf %310, %343 : vector<16x128xf32>
    %cst_147 = arith.constant 1.000000e+00 : f32
    %345 = vector.broadcast %cst_147 : f32 to vector<16x128xf32>
    %346 = arith.subf %345, %344 : vector<16x128xf32>
    %cst_148 = arith.constant 0.000000e+00 : f32
    %347 = vector.broadcast %cst_148 : f32 to vector<16x128xf32>
    %348 = arith.cmpf oge, %303, %347 : vector<16x128xf32>
    %cst_149 = arith.constant 0.000000e+00 : f32
    %349 = vector.broadcast %cst_149 : f32 to vector<16x128xf32>
    %350 = arith.subf %349, %346 : vector<16x128xf32>
    %351 = arith.select %348, %346, %350 : vector<16x128xi1>, vector<16x128xf32>
    %cst_150 = arith.constant 1.000000e+00 : f32
    %352 = vector.broadcast %cst_150 : f32 to vector<16x128xf32>
    %353 = arith.addf %352, %351 : vector<16x128xf32>
    %354 = arith.mulf %301, %353 : vector<16x128xf32>
    %cst_151 = arith.constant dense<0.000000e+00> : vector<16x32xf32>
    %355 = tpu.matmul %354, %47, %cst_151 {dimension_numbers = #tpu.dot_dimension_numbers<[1], [0], [0], [1], [0, 0, 1, 1], [], []>} : vector<16x128xf32>, vector<128x32xf32>, vector<16x32xf32> -> vector<16x32xf32>
    %356 = arith.addf %274, %355 : vector<16x32xf32>
    %357 = vector.broadcast %49 : vector<1x32xf32> to vector<16x32xf32>
    %358 = arith.addf %356, %357 : vector<16x32xf32>
    %c1 = arith.constant 1 : index
    %c0_152 = arith.constant 0 : index
    %c0_153 = arith.constant 0 : index
    %359 = vector.load %arg8[%c1, %c0_152, %c0_153] : memref<2x1x32xf32, #tpu.memory_space<vmem>>, vector<1x1x32xf32>
    %360 = vector.shape_cast %359 : vector<1x1x32xf32> to vector<1x32xf32>
    %c1_154 = arith.constant 1 : index
    %c0_155 = arith.constant 0 : index
    %c0_156 = arith.constant 0 : index
    %361 = vector.load %arg9[%c1_154, %c0_155, %c0_156] : memref<2x1x32xf32, #tpu.memory_space<vmem>>, vector<1x1x32xf32>
    %362 = vector.shape_cast %361 : vector<1x1x32xf32> to vector<1x32xf32>
    %c1_157 = arith.constant 1 : index
    %c0_158 = arith.constant 0 : index
    %c0_159 = arith.constant 0 : index
    %363 = vector.load %arg10[%c1_157, %c0_158, %c0_159] : memref<2x32x64xf32, #tpu.memory_space<vmem>>, vector<1x32x64xf32>
    %364 = vector.shape_cast %363 : vector<1x32x64xf32> to vector<32x64xf32>
    %c1_160 = arith.constant 1 : index
    %c0_161 = arith.constant 0 : index
    %c0_162 = arith.constant 0 : index
    %365 = vector.load %arg11[%c1_160, %c0_161, %c0_162] : memref<2x1x16xf32, #tpu.memory_space<vmem>>, vector<1x1x16xf32>
    %366 = vector.shape_cast %365 : vector<1x1x16xf32> to vector<1x16xf32>
    %c1_163 = arith.constant 1 : index
    %c0_164 = arith.constant 0 : index
    %c0_165 = arith.constant 0 : index
    %367 = vector.load %arg12[%c1_163, %c0_164, %c0_165] : memref<2x1x16xf32, #tpu.memory_space<vmem>>, vector<1x1x16xf32>
    %368 = vector.shape_cast %367 : vector<1x1x16xf32> to vector<1x16xf32>
    %c1_166 = arith.constant 1 : index
    %c0_167 = arith.constant 0 : index
    %c0_168 = arith.constant 0 : index
    %369 = vector.load %arg13[%c1_166, %c0_167, %c0_168] : memref<2x1x16xf32, #tpu.memory_space<vmem>>, vector<1x1x16xf32>
    %370 = vector.shape_cast %369 : vector<1x1x16xf32> to vector<1x16xf32>
    %c1_169 = arith.constant 1 : index
    %c0_170 = arith.constant 0 : index
    %c0_171 = arith.constant 0 : index
    %371 = vector.load %arg14[%c1_169, %c0_170, %c0_171] : memref<2x1x16xf32, #tpu.memory_space<vmem>>, vector<1x1x16xf32>
    %372 = vector.shape_cast %371 : vector<1x1x16xf32> to vector<1x16xf32>
    %c1_172 = arith.constant 1 : index
    %c0_173 = arith.constant 0 : index
    %c0_174 = arith.constant 0 : index
    %373 = vector.load %arg15[%c1_172, %c0_173, %c0_174] : memref<2x1x16xf32, #tpu.memory_space<vmem>>, vector<1x1x16xf32>
    %374 = vector.shape_cast %373 : vector<1x1x16xf32> to vector<1x16xf32>
    %c1_175 = arith.constant 1 : index
    %c0_176 = arith.constant 0 : index
    %c0_177 = arith.constant 0 : index
    %375 = vector.load %arg16[%c1_175, %c0_176, %c0_177] : memref<2x32x32xf32, #tpu.memory_space<vmem>>, vector<1x32x32xf32>
    %376 = vector.shape_cast %375 : vector<1x32x32xf32> to vector<32x32xf32>
    %c1_178 = arith.constant 1 : index
    %c0_179 = arith.constant 0 : index
    %c0_180 = arith.constant 0 : index
    %377 = vector.load %arg17[%c1_178, %c0_179, %c0_180] : memref<2x1x32xf32, #tpu.memory_space<vmem>>, vector<1x1x32xf32>
    %378 = vector.shape_cast %377 : vector<1x1x32xf32> to vector<1x32xf32>
    %c1_181 = arith.constant 1 : index
    %c0_182 = arith.constant 0 : index
    %c0_183 = arith.constant 0 : index
    %379 = vector.load %arg18[%c1_181, %c0_182, %c0_183] : memref<2x1x32xf32, #tpu.memory_space<vmem>>, vector<1x1x32xf32>
    %380 = vector.shape_cast %379 : vector<1x1x32xf32> to vector<1x32xf32>
    %c1_184 = arith.constant 1 : index
    %c0_185 = arith.constant 0 : index
    %c0_186 = arith.constant 0 : index
    %381 = vector.load %arg19[%c1_184, %c0_185, %c0_186] : memref<2x1x32xf32, #tpu.memory_space<vmem>>, vector<1x1x32xf32>
    %382 = vector.shape_cast %381 : vector<1x1x32xf32> to vector<1x32xf32>
    %c1_187 = arith.constant 1 : index
    %c0_188 = arith.constant 0 : index
    %c0_189 = arith.constant 0 : index
    %383 = vector.load %arg20[%c1_187, %c0_188, %c0_189] : memref<2x32x128xf32, #tpu.memory_space<vmem>>, vector<1x32x128xf32>
    %384 = vector.shape_cast %383 : vector<1x32x128xf32> to vector<32x128xf32>
    %c1_190 = arith.constant 1 : index
    %c0_191 = arith.constant 0 : index
    %c0_192 = arith.constant 0 : index
    %385 = vector.load %arg21[%c1_190, %c0_191, %c0_192] : memref<2x1x128xf32, #tpu.memory_space<vmem>>, vector<1x1x128xf32>
    %386 = vector.shape_cast %385 : vector<1x1x128xf32> to vector<1x128xf32>
    %c1_193 = arith.constant 1 : index
    %c0_194 = arith.constant 0 : index
    %c0_195 = arith.constant 0 : index
    %387 = vector.load %arg22[%c1_193, %c0_194, %c0_195] : memref<2x128x32xf32, #tpu.memory_space<vmem>>, vector<1x128x32xf32>
    %388 = vector.shape_cast %387 : vector<1x128x32xf32> to vector<128x32xf32>
    %c1_196 = arith.constant 1 : index
    %c0_197 = arith.constant 0 : index
    %c0_198 = arith.constant 0 : index
    %389 = vector.load %arg23[%c1_196, %c0_197, %c0_198] : memref<2x1x32xf32, #tpu.memory_space<vmem>>, vector<1x1x32xf32>
    %390 = vector.shape_cast %389 : vector<1x1x32xf32> to vector<1x32xf32>
    %cst_199 = arith.constant dense<0.000000e+00> : vector<16xf32>
    %391 = vector.multi_reduction <add>, %358, %cst_199 [1] : vector<16x32xf32> to vector<16xf32>
    %392 = vector.shape_cast %391 : vector<16xf32> to vector<16x1xf32>
    %cst_200 = arith.constant 3.200000e+01 : f32
    %393 = vector.broadcast %cst_200 : f32 to vector<16x1xf32>
    %394 = arith.divf %392, %393 : vector<16x1xf32>
    %395 = vector.broadcast %394 : vector<16x1xf32> to vector<16x32xf32>
    %396 = arith.subf %358, %395 : vector<16x32xf32>
    %397 = arith.mulf %396, %396 : vector<16x32xf32>
    %cst_201 = arith.constant dense<0.000000e+00> : vector<16xf32>
    %398 = vector.multi_reduction <add>, %397, %cst_201 [1] : vector<16x32xf32> to vector<16xf32>
    %399 = vector.shape_cast %398 : vector<16xf32> to vector<16x1xf32>
    %cst_202 = arith.constant 3.200000e+01 : f32
    %400 = vector.broadcast %cst_202 : f32 to vector<16x1xf32>
    %401 = arith.divf %399, %400 : vector<16x1xf32>
    %402 = vector.broadcast %394 : vector<16x1xf32> to vector<16x32xf32>
    %403 = arith.subf %358, %402 : vector<16x32xf32>
    %cst_203 = arith.constant 9.99999974E-6 : f32
    %404 = vector.broadcast %cst_203 : f32 to vector<16x1xf32>
    %405 = arith.addf %401, %404 : vector<16x1xf32>
    %406 = math.rsqrt %405 : vector<16x1xf32>
    %407 = vector.broadcast %406 : vector<16x1xf32> to vector<16x32xf32>
    %408 = arith.mulf %403, %407 : vector<16x32xf32>
    %409 = vector.broadcast %360 : vector<1x32xf32> to vector<16x32xf32>
    %410 = arith.mulf %408, %409 : vector<16x32xf32>
    %411 = vector.broadcast %362 : vector<1x32xf32> to vector<16x32xf32>
    %412 = arith.addf %410, %411 : vector<16x32xf32>
    %cst_204 = arith.constant dense<0.000000e+00> : vector<16x64xf32>
    %413 = tpu.matmul %412, %364, %cst_204 {dimension_numbers = #tpu.dot_dimension_numbers<[1], [0], [0], [1], [0, 0, 1, 1], [], []>} : vector<16x32xf32>, vector<32x64xf32>, vector<16x64xf32> -> vector<16x64xf32>
    %414 = arith.mulf %413, %6 : vector<16x64xf32>
    %cst_205 = arith.constant dense<0.000000e+00> : vector<16x64xf32>
    %415 = tpu.matmul %413, %8, %cst_205 {dimension_numbers = #tpu.dot_dimension_numbers<[1], [0], [0], [1], [0, 0, 1, 1], [], []>} : vector<16x64xf32>, vector<64x64xf32>, vector<16x64xf32> -> vector<16x64xf32>
    %416 = arith.mulf %415, %7 : vector<16x64xf32>
    %417 = arith.addf %414, %416 : vector<16x64xf32>
    %418 = vector.extract_strided_slice %417 {offsets = [0, 0], sizes = [16, 16], strides = [1, 1]} : vector<16x64xf32> to vector<16x16xf32>
    %419 = vector.extract_strided_slice %417 {offsets = [0, 32], sizes = [16, 16], strides = [1, 1]} : vector<16x64xf32> to vector<16x16xf32>
    %cst_206 = arith.constant dense<0.000000e+00> : vector<16xf32>
    %420 = vector.multi_reduction <add>, %419, %cst_206 [1] : vector<16x16xf32> to vector<16xf32>
    %421 = vector.shape_cast %420 : vector<16xf32> to vector<16x1xf32>
    %cst_207 = arith.constant 1.600000e+01 : f32
    %422 = vector.broadcast %cst_207 : f32 to vector<16x1xf32>
    %423 = arith.divf %421, %422 : vector<16x1xf32>
    %424 = vector.broadcast %423 : vector<16x1xf32> to vector<16x16xf32>
    %425 = arith.subf %419, %424 : vector<16x16xf32>
    %426 = arith.mulf %425, %425 : vector<16x16xf32>
    %cst_208 = arith.constant dense<0.000000e+00> : vector<16xf32>
    %427 = vector.multi_reduction <add>, %426, %cst_208 [1] : vector<16x16xf32> to vector<16xf32>
    %428 = vector.shape_cast %427 : vector<16xf32> to vector<16x1xf32>
    %cst_209 = arith.constant 1.600000e+01 : f32
    %429 = vector.broadcast %cst_209 : f32 to vector<16x1xf32>
    %430 = arith.divf %428, %429 : vector<16x1xf32>
    %431 = vector.broadcast %423 : vector<16x1xf32> to vector<16x16xf32>
    %432 = arith.subf %419, %431 : vector<16x16xf32>
    %cst_210 = arith.constant 9.99999974E-6 : f32
    %433 = vector.broadcast %cst_210 : f32 to vector<16x1xf32>
    %434 = arith.addf %430, %433 : vector<16x1xf32>
    %435 = math.rsqrt %434 : vector<16x1xf32>
    %436 = vector.broadcast %435 : vector<16x1xf32> to vector<16x16xf32>
    %437 = arith.mulf %432, %436 : vector<16x16xf32>
    %438 = vector.broadcast %368 : vector<1x16xf32> to vector<16x16xf32>
    %439 = arith.mulf %437, %438 : vector<16x16xf32>
    %440 = vector.broadcast %370 : vector<1x16xf32> to vector<16x16xf32>
    %441 = arith.addf %439, %440 : vector<16x16xf32>
    %442 = vector.shape_cast %419 : vector<16x16xf32> to vector<2x8x16xf32>
    %443 = vector.shape_cast %366 : vector<1x16xf32> to vector<1x1x16xf32>
    %444 = vector.broadcast %443 : vector<1x1x16xf32> to vector<2x8x16xf32>
    %445 = arith.mulf %442, %444 : vector<2x8x16xf32>
    %cst_211 = arith.constant dense<0.000000e+00> : vector<2x8xf32>
    %446 = vector.multi_reduction <add>, %445, %cst_211 [2] : vector<2x8x16xf32> to vector<2x8xf32>
    %447 = vector.shape_cast %446 : vector<2x8xf32> to vector<2x8x1xf32>
    %cst_212 = arith.constant dense<0xFF800000> : vector<2x1xf32>
    %448 = vector.multi_reduction <maximumf>, %447, %cst_212 [1] : vector<2x8x1xf32> to vector<2x1xf32>
    %449 = vector.shape_cast %448 : vector<2x1xf32> to vector<2x1x1xf32>
    %450 = vector.broadcast %449 : vector<2x1x1xf32> to vector<2x8x1xf32>
    %451 = arith.subf %447, %450 : vector<2x8x1xf32>
    %452 = math.exp %451 : vector<2x8x1xf32>
    %cst_213 = arith.constant dense<0.000000e+00> : vector<2x1xf32>
    %453 = vector.multi_reduction <add>, %452, %cst_213 [1] : vector<2x8x1xf32> to vector<2x1xf32>
    %454 = vector.shape_cast %453 : vector<2x1xf32> to vector<2x1x1xf32>
    %455 = vector.broadcast %454 : vector<2x1x1xf32> to vector<2x8x1xf32>
    %456 = arith.divf %452, %455 : vector<2x8x1xf32>
    %457 = vector.broadcast %456 : vector<2x8x1xf32> to vector<2x8x16xf32>
    %458 = arith.mulf %442, %457 : vector<2x8x16xf32>
    %cst_214 = arith.constant dense<0.000000e+00> : vector<2x16xf32>
    %459 = vector.multi_reduction <add>, %458, %cst_214 [1] : vector<2x8x16xf32> to vector<2x16xf32>
    %cst_215 = arith.constant dense<0.000000e+00> : vector<2xf32>
    %460 = vector.multi_reduction <add>, %459, %cst_215 [1] : vector<2x16xf32> to vector<2xf32>
    %461 = vector.shape_cast %460 : vector<2xf32> to vector<2x1xf32>
    %cst_216 = arith.constant 1.600000e+01 : f32
    %462 = vector.broadcast %cst_216 : f32 to vector<2x1xf32>
    %463 = arith.divf %461, %462 : vector<2x1xf32>
    %464 = vector.broadcast %463 : vector<2x1xf32> to vector<2x16xf32>
    %465 = arith.subf %459, %464 : vector<2x16xf32>
    %466 = arith.mulf %465, %465 : vector<2x16xf32>
    %cst_217 = arith.constant dense<0.000000e+00> : vector<2xf32>
    %467 = vector.multi_reduction <add>, %466, %cst_217 [1] : vector<2x16xf32> to vector<2xf32>
    %468 = vector.shape_cast %467 : vector<2xf32> to vector<2x1xf32>
    %cst_218 = arith.constant 1.600000e+01 : f32
    %469 = vector.broadcast %cst_218 : f32 to vector<2x1xf32>
    %470 = arith.divf %468, %469 : vector<2x1xf32>
    %471 = vector.broadcast %463 : vector<2x1xf32> to vector<2x16xf32>
    %472 = arith.subf %459, %471 : vector<2x16xf32>
    %cst_219 = arith.constant 9.99999974E-6 : f32
    %473 = vector.broadcast %cst_219 : f32 to vector<2x1xf32>
    %474 = arith.addf %470, %473 : vector<2x1xf32>
    %475 = math.rsqrt %474 : vector<2x1xf32>
    %476 = vector.broadcast %475 : vector<2x1xf32> to vector<2x16xf32>
    %477 = arith.mulf %472, %476 : vector<2x16xf32>
    %478 = vector.broadcast %372 : vector<1x16xf32> to vector<2x16xf32>
    %479 = arith.mulf %477, %478 : vector<2x16xf32>
    %480 = vector.broadcast %374 : vector<1x16xf32> to vector<2x16xf32>
    %481 = arith.addf %479, %480 : vector<2x16xf32>
    "tpu.trace_start"() <{level = 10 : i32, message = "id,jd->ij"}> : () -> ()
    %cst_220 = arith.constant dense<0.000000e+00> : vector<16x16xf32>
    %482 = tpu.matmul %418, %441, %cst_220 {dimension_numbers = #tpu.dot_dimension_numbers<[1], [1], [0], [0], [0, 0, 1, 0], [], []>} : vector<16x16xf32>, vector<16x16xf32>, vector<16x16xf32> -> vector<16x16xf32>
    "tpu.trace_stop"() : () -> ()
    "tpu.trace_start"() <{level = 10 : i32, message = "id,gd->ig"}> : () -> ()
    %cst_221 = arith.constant dense<0.000000e+00> : vector<16x2xf32>
    %483 = tpu.matmul %418, %481, %cst_221 {dimension_numbers = #tpu.dot_dimension_numbers<[1], [1], [0], [0], [0, 0, 1, 0], [], []>} : vector<16x16xf32>, vector<2x16xf32>, vector<16x2xf32> -> vector<16x2xf32>
    %cst_222 = arith.constant -3.40282347E+38 : f32
    "tpu.trace_stop"() : () -> ()
    %484 = vector.broadcast %cst_222 : f32 to vector<16x16xf32>
    %485 = arith.select %2, %482, %484 : vector<16x16xi1>, vector<16x16xf32>
    %cst_223 = arith.constant -3.40282347E+38 : f32
    %486 = vector.broadcast %cst_223 : f32 to vector<16x2xf32>
    %487 = arith.select %5, %483, %486 : vector<16x2xi1>, vector<16x2xf32>
    %cst_224 = arith.constant dense<0xFF800000> : vector<16xf32>
    %488 = vector.multi_reduction <maximumf>, %485, %cst_224 [1] : vector<16x16xf32> to vector<16xf32>
    %489 = vector.shape_cast %488 : vector<16xf32> to vector<16x1xf32>
    %cst_225 = arith.constant dense<0xFF800000> : vector<16xf32>
    %490 = vector.multi_reduction <maximumf>, %487, %cst_225 [1] : vector<16x2xf32> to vector<16xf32>
    %491 = vector.shape_cast %490 : vector<16xf32> to vector<16x1xf32>
    %492 = arith.maximumf %489, %491 : vector<16x1xf32>
    %493 = vector.broadcast %492 : vector<16x1xf32> to vector<16x16xf32>
    %494 = arith.subf %485, %493 : vector<16x16xf32>
    %495 = math.exp %494 : vector<16x16xf32>
    %cst_226 = arith.constant 0.000000e+00 : f32
    %496 = vector.broadcast %cst_226 : f32 to vector<16x16xf32>
    %497 = arith.select %2, %495, %496 : vector<16x16xi1>, vector<16x16xf32>
    %498 = vector.broadcast %492 : vector<16x1xf32> to vector<16x2xf32>
    %499 = arith.subf %487, %498 : vector<16x2xf32>
    %500 = math.exp %499 : vector<16x2xf32>
    %cst_227 = arith.constant 0.000000e+00 : f32
    %501 = vector.broadcast %cst_227 : f32 to vector<16x2xf32>
    %502 = arith.select %5, %500, %501 : vector<16x2xi1>, vector<16x2xf32>
    %cst_228 = arith.constant dense<0.000000e+00> : vector<16xf32>
    %503 = vector.multi_reduction <add>, %497, %cst_228 [1] : vector<16x16xf32> to vector<16xf32>
    %504 = vector.shape_cast %503 : vector<16xf32> to vector<16x1xf32>
    %cst_229 = arith.constant dense<0.000000e+00> : vector<16xf32>
    %505 = vector.multi_reduction <add>, %502, %cst_229 [1] : vector<16x2xf32> to vector<16xf32>
    %506 = vector.shape_cast %505 : vector<16xf32> to vector<16x1xf32>
    %507 = arith.addf %504, %506 : vector<16x1xf32>
    %cst_230 = arith.constant dense<0.000000e+00> : vector<16x16xf32>
    %508 = tpu.matmul %497, %441, %cst_230 {dimension_numbers = #tpu.dot_dimension_numbers<[1], [0], [0], [1], [0, 0, 1, 1], [], []>} : vector<16x16xf32>, vector<16x16xf32>, vector<16x16xf32> -> vector<16x16xf32>
    %cst_231 = arith.constant dense<0.000000e+00> : vector<16x16xf32>
    %509 = tpu.matmul %502, %481, %cst_231 {dimension_numbers = #tpu.dot_dimension_numbers<[1], [0], [0], [1], [0, 0, 1, 1], [], []>} : vector<16x2xf32>, vector<2x16xf32>, vector<16x16xf32> -> vector<16x16xf32>
    %510 = arith.addf %508, %509 : vector<16x16xf32>
    %511 = vector.broadcast %507 : vector<16x1xf32> to vector<16x16xf32>
    %512 = arith.divf %510, %511 : vector<16x16xf32>
    %513 = vector.extract_strided_slice %376 {offsets = [0, 0], sizes = [16, 32], strides = [1, 1]} : vector<32x32xf32> to vector<16x32xf32>
    %cst_232 = arith.constant dense<0.000000e+00> : vector<16x32xf32>
    %514 = tpu.matmul %512, %513, %cst_232 {dimension_numbers = #tpu.dot_dimension_numbers<[1], [0], [0], [1], [0, 0, 1, 1], [], []>} : vector<16x16xf32>, vector<16x32xf32>, vector<16x32xf32> -> vector<16x32xf32>
    %515 = vector.broadcast %378 : vector<1x32xf32> to vector<16x32xf32>
    %516 = arith.addf %515, %514 : vector<16x32xf32>
    %517 = vector.extract_strided_slice %417 {offsets = [0, 16], sizes = [16, 16], strides = [1, 1]} : vector<16x64xf32> to vector<16x16xf32>
    %518 = vector.extract_strided_slice %417 {offsets = [0, 48], sizes = [16, 16], strides = [1, 1]} : vector<16x64xf32> to vector<16x16xf32>
    %cst_233 = arith.constant dense<0.000000e+00> : vector<16xf32>
    %519 = vector.multi_reduction <add>, %518, %cst_233 [1] : vector<16x16xf32> to vector<16xf32>
    %520 = vector.shape_cast %519 : vector<16xf32> to vector<16x1xf32>
    %cst_234 = arith.constant 1.600000e+01 : f32
    %521 = vector.broadcast %cst_234 : f32 to vector<16x1xf32>
    %522 = arith.divf %520, %521 : vector<16x1xf32>
    %523 = vector.broadcast %522 : vector<16x1xf32> to vector<16x16xf32>
    %524 = arith.subf %518, %523 : vector<16x16xf32>
    %525 = arith.mulf %524, %524 : vector<16x16xf32>
    %cst_235 = arith.constant dense<0.000000e+00> : vector<16xf32>
    %526 = vector.multi_reduction <add>, %525, %cst_235 [1] : vector<16x16xf32> to vector<16xf32>
    %527 = vector.shape_cast %526 : vector<16xf32> to vector<16x1xf32>
    %cst_236 = arith.constant 1.600000e+01 : f32
    %528 = vector.broadcast %cst_236 : f32 to vector<16x1xf32>
    %529 = arith.divf %527, %528 : vector<16x1xf32>
    %530 = vector.broadcast %522 : vector<16x1xf32> to vector<16x16xf32>
    %531 = arith.subf %518, %530 : vector<16x16xf32>
    %cst_237 = arith.constant 9.99999974E-6 : f32
    %532 = vector.broadcast %cst_237 : f32 to vector<16x1xf32>
    %533 = arith.addf %529, %532 : vector<16x1xf32>
    %534 = math.rsqrt %533 : vector<16x1xf32>
    %535 = vector.broadcast %534 : vector<16x1xf32> to vector<16x16xf32>
    %536 = arith.mulf %531, %535 : vector<16x16xf32>
    %537 = vector.broadcast %368 : vector<1x16xf32> to vector<16x16xf32>
    %538 = arith.mulf %536, %537 : vector<16x16xf32>
    %539 = vector.broadcast %370 : vector<1x16xf32> to vector<16x16xf32>
    %540 = arith.addf %538, %539 : vector<16x16xf32>
    %541 = vector.shape_cast %518 : vector<16x16xf32> to vector<2x8x16xf32>
    %542 = vector.shape_cast %366 : vector<1x16xf32> to vector<1x1x16xf32>
    %543 = vector.broadcast %542 : vector<1x1x16xf32> to vector<2x8x16xf32>
    %544 = arith.mulf %541, %543 : vector<2x8x16xf32>
    %cst_238 = arith.constant dense<0.000000e+00> : vector<2x8xf32>
    %545 = vector.multi_reduction <add>, %544, %cst_238 [2] : vector<2x8x16xf32> to vector<2x8xf32>
    %546 = vector.shape_cast %545 : vector<2x8xf32> to vector<2x8x1xf32>
    %cst_239 = arith.constant dense<0xFF800000> : vector<2x1xf32>
    %547 = vector.multi_reduction <maximumf>, %546, %cst_239 [1] : vector<2x8x1xf32> to vector<2x1xf32>
    %548 = vector.shape_cast %547 : vector<2x1xf32> to vector<2x1x1xf32>
    %549 = vector.broadcast %548 : vector<2x1x1xf32> to vector<2x8x1xf32>
    %550 = arith.subf %546, %549 : vector<2x8x1xf32>
    %551 = math.exp %550 : vector<2x8x1xf32>
    %cst_240 = arith.constant dense<0.000000e+00> : vector<2x1xf32>
    %552 = vector.multi_reduction <add>, %551, %cst_240 [1] : vector<2x8x1xf32> to vector<2x1xf32>
    %553 = vector.shape_cast %552 : vector<2x1xf32> to vector<2x1x1xf32>
    %554 = vector.broadcast %553 : vector<2x1x1xf32> to vector<2x8x1xf32>
    %555 = arith.divf %551, %554 : vector<2x8x1xf32>
    %556 = vector.broadcast %555 : vector<2x8x1xf32> to vector<2x8x16xf32>
    %557 = arith.mulf %541, %556 : vector<2x8x16xf32>
    %cst_241 = arith.constant dense<0.000000e+00> : vector<2x16xf32>
    %558 = vector.multi_reduction <add>, %557, %cst_241 [1] : vector<2x8x16xf32> to vector<2x16xf32>
    %cst_242 = arith.constant dense<0.000000e+00> : vector<2xf32>
    %559 = vector.multi_reduction <add>, %558, %cst_242 [1] : vector<2x16xf32> to vector<2xf32>
    %560 = vector.shape_cast %559 : vector<2xf32> to vector<2x1xf32>
    %cst_243 = arith.constant 1.600000e+01 : f32
    %561 = vector.broadcast %cst_243 : f32 to vector<2x1xf32>
    %562 = arith.divf %560, %561 : vector<2x1xf32>
    %563 = vector.broadcast %562 : vector<2x1xf32> to vector<2x16xf32>
    %564 = arith.subf %558, %563 : vector<2x16xf32>
    %565 = arith.mulf %564, %564 : vector<2x16xf32>
    %cst_244 = arith.constant dense<0.000000e+00> : vector<2xf32>
    %566 = vector.multi_reduction <add>, %565, %cst_244 [1] : vector<2x16xf32> to vector<2xf32>
    %567 = vector.shape_cast %566 : vector<2xf32> to vector<2x1xf32>
    %cst_245 = arith.constant 1.600000e+01 : f32
    %568 = vector.broadcast %cst_245 : f32 to vector<2x1xf32>
    %569 = arith.divf %567, %568 : vector<2x1xf32>
    %570 = vector.broadcast %562 : vector<2x1xf32> to vector<2x16xf32>
    %571 = arith.subf %558, %570 : vector<2x16xf32>
    %cst_246 = arith.constant 9.99999974E-6 : f32
    %572 = vector.broadcast %cst_246 : f32 to vector<2x1xf32>
    %573 = arith.addf %569, %572 : vector<2x1xf32>
    %574 = math.rsqrt %573 : vector<2x1xf32>
    %575 = vector.broadcast %574 : vector<2x1xf32> to vector<2x16xf32>
    %576 = arith.mulf %571, %575 : vector<2x16xf32>
    %577 = vector.broadcast %372 : vector<1x16xf32> to vector<2x16xf32>
    %578 = arith.mulf %576, %577 : vector<2x16xf32>
    %579 = vector.broadcast %374 : vector<1x16xf32> to vector<2x16xf32>
    %580 = arith.addf %578, %579 : vector<2x16xf32>
    "tpu.trace_start"() <{level = 10 : i32, message = "id,jd->ij"}> : () -> ()
    %cst_247 = arith.constant dense<0.000000e+00> : vector<16x16xf32>
    %581 = tpu.matmul %517, %540, %cst_247 {dimension_numbers = #tpu.dot_dimension_numbers<[1], [1], [0], [0], [0, 0, 1, 0], [], []>} : vector<16x16xf32>, vector<16x16xf32>, vector<16x16xf32> -> vector<16x16xf32>
    "tpu.trace_stop"() : () -> ()
    "tpu.trace_start"() <{level = 10 : i32, message = "id,gd->ig"}> : () -> ()
    %cst_248 = arith.constant dense<0.000000e+00> : vector<16x2xf32>
    %582 = tpu.matmul %517, %580, %cst_248 {dimension_numbers = #tpu.dot_dimension_numbers<[1], [1], [0], [0], [0, 0, 1, 0], [], []>} : vector<16x16xf32>, vector<2x16xf32>, vector<16x2xf32> -> vector<16x2xf32>
    %cst_249 = arith.constant -3.40282347E+38 : f32
    "tpu.trace_stop"() : () -> ()
    %583 = vector.broadcast %cst_249 : f32 to vector<16x16xf32>
    %584 = arith.select %2, %581, %583 : vector<16x16xi1>, vector<16x16xf32>
    %cst_250 = arith.constant -3.40282347E+38 : f32
    %585 = vector.broadcast %cst_250 : f32 to vector<16x2xf32>
    %586 = arith.select %5, %582, %585 : vector<16x2xi1>, vector<16x2xf32>
    %cst_251 = arith.constant dense<0xFF800000> : vector<16xf32>
    %587 = vector.multi_reduction <maximumf>, %584, %cst_251 [1] : vector<16x16xf32> to vector<16xf32>
    %588 = vector.shape_cast %587 : vector<16xf32> to vector<16x1xf32>
    %cst_252 = arith.constant dense<0xFF800000> : vector<16xf32>
    %589 = vector.multi_reduction <maximumf>, %586, %cst_252 [1] : vector<16x2xf32> to vector<16xf32>
    %590 = vector.shape_cast %589 : vector<16xf32> to vector<16x1xf32>
    %591 = arith.maximumf %588, %590 : vector<16x1xf32>
    %592 = vector.broadcast %591 : vector<16x1xf32> to vector<16x16xf32>
    %593 = arith.subf %584, %592 : vector<16x16xf32>
    %594 = math.exp %593 : vector<16x16xf32>
    %cst_253 = arith.constant 0.000000e+00 : f32
    %595 = vector.broadcast %cst_253 : f32 to vector<16x16xf32>
    %596 = arith.select %2, %594, %595 : vector<16x16xi1>, vector<16x16xf32>
    %597 = vector.broadcast %591 : vector<16x1xf32> to vector<16x2xf32>
    %598 = arith.subf %586, %597 : vector<16x2xf32>
    %599 = math.exp %598 : vector<16x2xf32>
    %cst_254 = arith.constant 0.000000e+00 : f32
    %600 = vector.broadcast %cst_254 : f32 to vector<16x2xf32>
    %601 = arith.select %5, %599, %600 : vector<16x2xi1>, vector<16x2xf32>
    %cst_255 = arith.constant dense<0.000000e+00> : vector<16xf32>
    %602 = vector.multi_reduction <add>, %596, %cst_255 [1] : vector<16x16xf32> to vector<16xf32>
    %603 = vector.shape_cast %602 : vector<16xf32> to vector<16x1xf32>
    %cst_256 = arith.constant dense<0.000000e+00> : vector<16xf32>
    %604 = vector.multi_reduction <add>, %601, %cst_256 [1] : vector<16x2xf32> to vector<16xf32>
    %605 = vector.shape_cast %604 : vector<16xf32> to vector<16x1xf32>
    %606 = arith.addf %603, %605 : vector<16x1xf32>
    %cst_257 = arith.constant dense<0.000000e+00> : vector<16x16xf32>
    %607 = tpu.matmul %596, %540, %cst_257 {dimension_numbers = #tpu.dot_dimension_numbers<[1], [0], [0], [1], [0, 0, 1, 1], [], []>} : vector<16x16xf32>, vector<16x16xf32>, vector<16x16xf32> -> vector<16x16xf32>
    %cst_258 = arith.constant dense<0.000000e+00> : vector<16x16xf32>
    %608 = tpu.matmul %601, %580, %cst_258 {dimension_numbers = #tpu.dot_dimension_numbers<[1], [0], [0], [1], [0, 0, 1, 1], [], []>} : vector<16x2xf32>, vector<2x16xf32>, vector<16x16xf32> -> vector<16x16xf32>
    %609 = arith.addf %607, %608 : vector<16x16xf32>
    %610 = vector.broadcast %606 : vector<16x1xf32> to vector<16x16xf32>
    %611 = arith.divf %609, %610 : vector<16x16xf32>
    %612 = vector.extract_strided_slice %376 {offsets = [16, 0], sizes = [16, 32], strides = [1, 1]} : vector<32x32xf32> to vector<16x32xf32>
    %cst_259 = arith.constant dense<0.000000e+00> : vector<16x32xf32>
    %613 = tpu.matmul %611, %612, %cst_259 {dimension_numbers = #tpu.dot_dimension_numbers<[1], [0], [0], [1], [0, 0, 1, 1], [], []>} : vector<16x16xf32>, vector<16x32xf32>, vector<16x32xf32> -> vector<16x32xf32>
    %614 = arith.addf %516, %613 : vector<16x32xf32>
    %615 = arith.addf %358, %614 : vector<16x32xf32>
    %cst_260 = arith.constant dense<0.000000e+00> : vector<16xf32>
    %616 = vector.multi_reduction <add>, %615, %cst_260 [1] : vector<16x32xf32> to vector<16xf32>
    %617 = vector.shape_cast %616 : vector<16xf32> to vector<16x1xf32>
    %cst_261 = arith.constant 3.200000e+01 : f32
    %618 = vector.broadcast %cst_261 : f32 to vector<16x1xf32>
    %619 = arith.divf %617, %618 : vector<16x1xf32>
    %620 = vector.broadcast %619 : vector<16x1xf32> to vector<16x32xf32>
    %621 = arith.subf %615, %620 : vector<16x32xf32>
    %622 = arith.mulf %621, %621 : vector<16x32xf32>
    %cst_262 = arith.constant dense<0.000000e+00> : vector<16xf32>
    %623 = vector.multi_reduction <add>, %622, %cst_262 [1] : vector<16x32xf32> to vector<16xf32>
    %624 = vector.shape_cast %623 : vector<16xf32> to vector<16x1xf32>
    %cst_263 = arith.constant 3.200000e+01 : f32
    %625 = vector.broadcast %cst_263 : f32 to vector<16x1xf32>
    %626 = arith.divf %624, %625 : vector<16x1xf32>
    %627 = vector.broadcast %619 : vector<16x1xf32> to vector<16x32xf32>
    %628 = arith.subf %615, %627 : vector<16x32xf32>
    %cst_264 = arith.constant 9.99999974E-6 : f32
    %629 = vector.broadcast %cst_264 : f32 to vector<16x1xf32>
    %630 = arith.addf %626, %629 : vector<16x1xf32>
    %631 = math.rsqrt %630 : vector<16x1xf32>
    %632 = vector.broadcast %631 : vector<16x1xf32> to vector<16x32xf32>
    %633 = arith.mulf %628, %632 : vector<16x32xf32>
    %634 = vector.broadcast %380 : vector<1x32xf32> to vector<16x32xf32>
    %635 = arith.mulf %633, %634 : vector<16x32xf32>
    %636 = vector.broadcast %382 : vector<1x32xf32> to vector<16x32xf32>
    %637 = arith.addf %635, %636 : vector<16x32xf32>
    %cst_265 = arith.constant dense<0.000000e+00> : vector<16x128xf32>
    %638 = tpu.matmul %637, %384, %cst_265 {dimension_numbers = #tpu.dot_dimension_numbers<[1], [0], [0], [1], [0, 0, 1, 1], [], []>} : vector<16x32xf32>, vector<32x128xf32>, vector<16x128xf32> -> vector<16x128xf32>
    %639 = vector.broadcast %386 : vector<1x128xf32> to vector<16x128xf32>
    %640 = arith.addf %638, %639 : vector<16x128xf32>
    %cst_266 = arith.constant 5.000000e-01 : f32
    %641 = vector.broadcast %cst_266 : f32 to vector<16x128xf32>
    %642 = arith.mulf %641, %640 : vector<16x128xf32>
    %cst_267 = arith.constant 0.707106769 : f32
    %643 = vector.broadcast %cst_267 : f32 to vector<16x128xf32>
    %644 = arith.mulf %640, %643 : vector<16x128xf32>
    %645 = math.absf %644 : vector<16x128xf32>
    %cst_268 = arith.constant 5.000000e-01 : f32
    %646 = vector.broadcast %cst_268 : f32 to vector<16x128xf32>
    %647 = arith.mulf %646, %645 : vector<16x128xf32>
    %cst_269 = arith.constant 1.000000e+00 : f32
    %648 = vector.broadcast %cst_269 : f32 to vector<16x128xf32>
    %649 = arith.addf %648, %647 : vector<16x128xf32>
    %cst_270 = arith.constant 1.000000e+00 : f32
    %650 = vector.broadcast %cst_270 : f32 to vector<16x128xf32>
    %651 = arith.divf %650, %649 : vector<16x128xf32>
    %cst_271 = arith.constant 0.170872763 : f32
    %652 = vector.broadcast %cst_271 : f32 to vector<16x128xf32>
    %653 = arith.mulf %651, %652 : vector<16x128xf32>
    %cst_272 = arith.constant -0.822152256 : f32
    %654 = vector.broadcast %cst_272 : f32 to vector<16x128xf32>
    %655 = arith.addf %654, %653 : vector<16x128xf32>
    %656 = arith.mulf %651, %655 : vector<16x128xf32>
    %cst_273 = arith.constant 1.48851585 : f32
    %657 = vector.broadcast %cst_273 : f32 to vector<16x128xf32>
    %658 = arith.addf %657, %656 : vector<16x128xf32>
    %659 = arith.mulf %651, %658 : vector<16x128xf32>
    %cst_274 = arith.constant -1.13520396 : f32
    %660 = vector.broadcast %cst_274 : f32 to vector<16x128xf32>
    %661 = arith.addf %660, %659 : vector<16x128xf32>
    %662 = arith.mulf %651, %661 : vector<16x128xf32>
    %cst_275 = arith.constant 0.278868079 : f32
    %663 = vector.broadcast %cst_275 : f32 to vector<16x128xf32>
    %664 = arith.addf %663, %662 : vector<16x128xf32>
    %665 = arith.mulf %651, %664 : vector<16x128xf32>
    %cst_276 = arith.constant -0.186288059 : f32
    %666 = vector.broadcast %cst_276 : f32 to vector<16x128xf32>
    %667 = arith.addf %666, %665 : vector<16x128xf32>
    %668 = arith.mulf %651, %667 : vector<16x128xf32>
    %cst_277 = arith.constant 0.0967841818 : f32
    %669 = vector.broadcast %cst_277 : f32 to vector<16x128xf32>
    %670 = arith.addf %669, %668 : vector<16x128xf32>
    %671 = arith.mulf %651, %670 : vector<16x128xf32>
    %cst_278 = arith.constant 0.374091953 : f32
    %672 = vector.broadcast %cst_278 : f32 to vector<16x128xf32>
    %673 = arith.addf %672, %671 : vector<16x128xf32>
    %674 = arith.mulf %651, %673 : vector<16x128xf32>
    %cst_279 = arith.constant 1.00002372 : f32
    %675 = vector.broadcast %cst_279 : f32 to vector<16x128xf32>
    %676 = arith.addf %675, %674 : vector<16x128xf32>
    %677 = arith.mulf %651, %676 : vector<16x128xf32>
    %cst_280 = arith.constant -1.26551223 : f32
    %678 = vector.broadcast %cst_280 : f32 to vector<16x128xf32>
    %679 = arith.addf %678, %677 : vector<16x128xf32>
    %cst_281 = arith.constant 0.000000e+00 : f32
    %680 = vector.broadcast %cst_281 : f32 to vector<16x128xf32>
    %681 = arith.subf %680, %645 : vector<16x128xf32>
    %682 = arith.mulf %681, %645 : vector<16x128xf32>
    %683 = arith.addf %682, %679 : vector<16x128xf32>
    %684 = math.exp %683 : vector<16x128xf32>
    %685 = arith.mulf %651, %684 : vector<16x128xf32>
    %cst_282 = arith.constant 1.000000e+00 : f32
    %686 = vector.broadcast %cst_282 : f32 to vector<16x128xf32>
    %687 = arith.subf %686, %685 : vector<16x128xf32>
    %cst_283 = arith.constant 0.000000e+00 : f32
    %688 = vector.broadcast %cst_283 : f32 to vector<16x128xf32>
    %689 = arith.cmpf oge, %644, %688 : vector<16x128xf32>
    %cst_284 = arith.constant 0.000000e+00 : f32
    %690 = vector.broadcast %cst_284 : f32 to vector<16x128xf32>
    %691 = arith.subf %690, %687 : vector<16x128xf32>
    %692 = arith.select %689, %687, %691 : vector<16x128xi1>, vector<16x128xf32>
    %cst_285 = arith.constant 1.000000e+00 : f32
    %693 = vector.broadcast %cst_285 : f32 to vector<16x128xf32>
    %694 = arith.addf %693, %692 : vector<16x128xf32>
    %695 = arith.mulf %642, %694 : vector<16x128xf32>
    %cst_286 = arith.constant dense<0.000000e+00> : vector<16x32xf32>
    %696 = tpu.matmul %695, %388, %cst_286 {dimension_numbers = #tpu.dot_dimension_numbers<[1], [0], [0], [1], [0, 0, 1, 1], [], []>} : vector<16x128xf32>, vector<128x32xf32>, vector<16x32xf32> -> vector<16x32xf32>
    %697 = arith.addf %615, %696 : vector<16x32xf32>
    %698 = vector.broadcast %390 : vector<1x32xf32> to vector<16x32xf32>
    %699 = arith.addf %697, %698 : vector<16x32xf32>
    %c0_287 = arith.constant 0 : index
    %c0_288 = arith.constant 0 : index
    %700 = vector.load %arg24[%c0_287, %c0_288] : memref<1x32xf32, #tpu.memory_space<vmem>>, vector<1x32xf32>
    %c0_289 = arith.constant 0 : index
    %c0_290 = arith.constant 0 : index
    %701 = vector.load %arg25[%c0_289, %c0_290] : memref<1x32xf32, #tpu.memory_space<vmem>>, vector<1x32xf32>
    %cst_291 = arith.constant dense<0.000000e+00> : vector<16xf32>
    %702 = vector.multi_reduction <add>, %699, %cst_291 [1] : vector<16x32xf32> to vector<16xf32>
    %703 = vector.shape_cast %702 : vector<16xf32> to vector<16x1xf32>
    %cst_292 = arith.constant 3.200000e+01 : f32
    %704 = vector.broadcast %cst_292 : f32 to vector<16x1xf32>
    %705 = arith.divf %703, %704 : vector<16x1xf32>
    %706 = vector.broadcast %705 : vector<16x1xf32> to vector<16x32xf32>
    %707 = arith.subf %699, %706 : vector<16x32xf32>
    %708 = arith.mulf %707, %707 : vector<16x32xf32>
    %cst_293 = arith.constant dense<0.000000e+00> : vector<16xf32>
    %709 = vector.multi_reduction <add>, %708, %cst_293 [1] : vector<16x32xf32> to vector<16xf32>
    %710 = vector.shape_cast %709 : vector<16xf32> to vector<16x1xf32>
    %cst_294 = arith.constant 3.200000e+01 : f32
    %711 = vector.broadcast %cst_294 : f32 to vector<16x1xf32>
    %712 = arith.divf %710, %711 : vector<16x1xf32>
    %713 = vector.broadcast %705 : vector<16x1xf32> to vector<16x32xf32>
    %714 = arith.subf %699, %713 : vector<16x32xf32>
    %cst_295 = arith.constant 9.99999974E-6 : f32
    %715 = vector.broadcast %cst_295 : f32 to vector<16x1xf32>
    %716 = arith.addf %712, %715 : vector<16x1xf32>
    %717 = math.rsqrt %716 : vector<16x1xf32>
    %718 = vector.broadcast %717 : vector<16x1xf32> to vector<16x32xf32>
    %719 = arith.mulf %714, %718 : vector<16x32xf32>
    %720 = vector.broadcast %700 : vector<1x32xf32> to vector<16x32xf32>
    %721 = arith.mulf %719, %720 : vector<16x32xf32>
    %722 = vector.broadcast %701 : vector<1x32xf32> to vector<16x32xf32>
    %723 = arith.addf %721, %722 : vector<16x32xf32>
    %c0_296 = arith.constant 0 : index
    %c0_297 = arith.constant 0 : index
    %724 = vector.load %arg26[%c0_296, %c0_297] : memref<32x64xf32, #tpu.memory_space<vmem>>, vector<32x64xf32>
    %cst_298 = arith.constant dense<0.000000e+00> : vector<16x64xf32>
    %725 = tpu.matmul %723, %724, %cst_298 {dimension_numbers = #tpu.dot_dimension_numbers<[1], [0], [0], [1], [0, 0, 1, 1], [], []>} : vector<16x32xf32>, vector<32x64xf32>, vector<16x64xf32> -> vector<16x64xf32>
    %c0_299 = arith.constant 0 : index
    %c0_300 = arith.constant 0 : index
    %726 = vector.load %arg27[%c0_299, %c0_300] : memref<1x64xf32, #tpu.memory_space<vmem>>, vector<1x64xf32>
    %727 = vector.broadcast %726 : vector<1x64xf32> to vector<16x64xf32>
    %728 = arith.addf %725, %727 : vector<16x64xf32>
    %c0_301 = arith.constant 0 : index
    %c0_302 = arith.constant 0 : index
    %c0_303 = arith.constant 0 : index
    %729 = vector.load %arg28[%c0_301, %c0_302, %c0_303] : memref<1x16x64xf32, #tpu.memory_space<vmem>>, vector<1x16x64xf32>
    %730 = vector.shape_cast %729 : vector<1x16x64xf32> to vector<16x64xf32>
    %731 = vector.shape_cast %728 : vector<16x64xf32> to vector<1x16x64xf32>
    tpu.vector_store %arg28[%c0_301, %c0_302, %c0_303], %731 {strides = array<i32>} : memref<1x16x64xf32, #tpu.memory_space<vmem>>, vector<1x16x64xf32>,
    return
  }
  func.func @transform_0(%arg0: i32) -> (i32, i32, i32) {
    %c0_i32 = arith.constant 0 : i32
    %c0_i32_0 = arith.constant 0 : i32
    %c0_i32_1 = arith.constant 0 : i32
    return %arg0, %c0_i32, %c0_i32_0 : i32, i32, i32
  }
  func.func @transform_1(%arg0: i32) -> (i32, i32) {
    %c0_i32 = arith.constant 0 : i32
    %c0_i32_0 = arith.constant 0 : i32
    %c0_i32_1 = arith.constant 0 : i32
    return %c0_i32, %c0_i32_0 : i32, i32
  }
  func.func @transform_2(%arg0: i32) -> (i32, i32) {
    %c0_i32 = arith.constant 0 : i32
    %c0_i32_0 = arith.constant 0 : i32
    %c0_i32_1 = arith.constant 0 : i32
    return %c0_i32, %c0_i32_0 : i32, i32
  }
  func.func @transform_3(%arg0: i32) -> (i32, i32) {
    %c0_i32 = arith.constant 0 : i32
    %c0_i32_0 = arith.constant 0 : i32
    %c0_i32_1 = arith.constant 0 : i32
    return %c0_i32, %c0_i32_0 : i32, i32
  }
  func.func @transform_4(%arg0: i32) -> (i32, i32) {
    %c0_i32 = arith.constant 0 : i32
    %c0_i32_0 = arith.constant 0 : i32
    %c0_i32_1 = arith.constant 0 : i32
    return %c0_i32, %c0_i32_0 : i32, i32
  }
  func.func @transform_5(%arg0: i32) -> (i32, i32) {
    %c0_i32 = arith.constant 0 : i32
    %c0_i32_0 = arith.constant 0 : i32
    %c0_i32_1 = arith.constant 0 : i32
    return %c0_i32, %c0_i32_0 : i32, i32
  }
  func.func @transform_6(%arg0: i32) -> (i32, i32) {
    %c0_i32 = arith.constant 0 : i32
    %c0_i32_0 = arith.constant 0 : i32
    %c0_i32_1 = arith.constant 0 : i32
    return %c0_i32, %c0_i32_0 : i32, i32
  }
  func.func @transform_7(%arg0: i32) -> (i32, i32, i32) {
    %c0_i32 = arith.constant 0 : i32
    %c0_i32_0 = arith.constant 0 : i32
    %c0_i32_1 = arith.constant 0 : i32
    %c0_i32_2 = arith.constant 0 : i32
    return %c0_i32, %c0_i32_0, %c0_i32_1 : i32, i32, i32
  }
  func.func @transform_8(%arg0: i32) -> (i32, i32, i32) {
    %c0_i32 = arith.constant 0 : i32
    %c0_i32_0 = arith.constant 0 : i32
    %c0_i32_1 = arith.constant 0 : i32
    %c0_i32_2 = arith.constant 0 : i32
    return %c0_i32, %c0_i32_0, %c0_i32_1 : i32, i32, i32
  }
  func.func @transform_9(%arg0: i32) -> (i32, i32, i32) {
    %c0_i32 = arith.constant 0 : i32
    %c0_i32_0 = arith.constant 0 : i32
    %c0_i32_1 = arith.constant 0 : i32
    %c0_i32_2 = arith.constant 0 : i32
    return %c0_i32, %c0_i32_0, %c0_i32_1 : i32, i32, i32
  }
  func.func @transform_10(%arg0: i32) -> (i32, i32, i32) {
    %c0_i32 = arith.constant 0 : i32
    %c0_i32_0 = arith.constant 0 : i32
    %c0_i32_1 = arith.constant 0 : i32
    %c0_i32_2 = arith.constant 0 : i32
    return %c0_i32, %c0_i32_0, %c0_i32_1 : i32, i32, i32
  }
  func.func @transform_11(%arg0: i32) -> (i32, i32, i32) {
    %c0_i32 = arith.constant 0 : i32
    %c0_i32_0 = arith.constant 0 : i32
    %c0_i32_1 = arith.constant 0 : i32
    %c0_i32_2 = arith.constant 0 : i32
    return %c0_i32, %c0_i32_0, %c0_i32_1 : i32, i32, i32
  }
  func.func @transform_12(%arg0: i32) -> (i32, i32, i32) {
    %c0_i32 = arith.constant 0 : i32
    %c0_i32_0 = arith.constant 0 : i32
    %c0_i32_1 = arith.constant 0 : i32
    %c0_i32_2 = arith.constant 0 : i32
    return %c0_i32, %c0_i32_0, %c0_i32_1 : i32, i32, i32
  }
  func.func @transform_13(%arg0: i32) -> (i32, i32, i32) {
    %c0_i32 = arith.constant 0 : i32
    %c0_i32_0 = arith.constant 0 : i32
    %c0_i32_1 = arith.constant 0 : i32
    %c0_i32_2 = arith.constant 0 : i32
    return %c0_i32, %c0_i32_0, %c0_i32_1 : i32, i32, i32
  }
  func.func @transform_14(%arg0: i32) -> (i32, i32, i32) {
    %c0_i32 = arith.constant 0 : i32
    %c0_i32_0 = arith.constant 0 : i32
    %c0_i32_1 = arith.constant 0 : i32
    %c0_i32_2 = arith.constant 0 : i32
    return %c0_i32, %c0_i32_0, %c0_i32_1 : i32, i32, i32
  }
  func.func @transform_15(%arg0: i32) -> (i32, i32, i32) {
    %c0_i32 = arith.constant 0 : i32
    %c0_i32_0 = arith.constant 0 : i32
    %c0_i32_1 = arith.constant 0 : i32
    %c0_i32_2 = arith.constant 0 : i32
    return %c0_i32, %c0_i32_0, %c0_i32_1 : i32, i32, i32
  }
  func.func @transform_16(%arg0: i32) -> (i32, i32, i32) {
    %c0_i32 = arith.constant 0 : i32
    %c0_i32_0 = arith.constant 0 : i32
    %c0_i32_1 = arith.constant 0 : i32
    %c0_i32_2 = arith.constant 0 : i32
    return %c0_i32, %c0_i32_0, %c0_i32_1 : i32, i32, i32
  }
  func.func @transform_17(%arg0: i32) -> (i32, i32, i32) {
    %c0_i32 = arith.constant 0 : i32
    %c0_i32_0 = arith.constant 0 : i32
    %c0_i32_1 = arith.constant 0 : i32
    %c0_i32_2 = arith.constant 0 : i32
    return %c0_i32, %c0_i32_0, %c0_i32_1 : i32, i32, i32
  }
  func.func @transform_18(%arg0: i32) -> (i32, i32, i32) {
    %c0_i32 = arith.constant 0 : i32
    %c0_i32_0 = arith.constant 0 : i32
    %c0_i32_1 = arith.constant 0 : i32
    %c0_i32_2 = arith.constant 0 : i32
    return %c0_i32, %c0_i32_0, %c0_i32_1 : i32, i32, i32
  }
  func.func @transform_19(%arg0: i32) -> (i32, i32, i32) {
    %c0_i32 = arith.constant 0 : i32
    %c0_i32_0 = arith.constant 0 : i32
    %c0_i32_1 = arith.constant 0 : i32
    %c0_i32_2 = arith.constant 0 : i32
    return %c0_i32, %c0_i32_0, %c0_i32_1 : i32, i32, i32
  }
  func.func @transform_20(%arg0: i32) -> (i32, i32, i32) {
    %c0_i32 = arith.constant 0 : i32
    %c0_i32_0 = arith.constant 0 : i32
    %c0_i32_1 = arith.constant 0 : i32
    %c0_i32_2 = arith.constant 0 : i32
    return %c0_i32, %c0_i32_0, %c0_i32_1 : i32, i32, i32
  }
  func.func @transform_21(%arg0: i32) -> (i32, i32, i32) {
    %c0_i32 = arith.constant 0 : i32
    %c0_i32_0 = arith.constant 0 : i32
    %c0_i32_1 = arith.constant 0 : i32
    %c0_i32_2 = arith.constant 0 : i32
    return %c0_i32, %c0_i32_0, %c0_i32_1 : i32, i32, i32
  }
  func.func @transform_22(%arg0: i32) -> (i32, i32, i32) {
    %c0_i32 = arith.constant 0 : i32
    %c0_i32_0 = arith.constant 0 : i32
    %c0_i32_1 = arith.constant 0 : i32
    %c0_i32_2 = arith.constant 0 : i32
    return %c0_i32, %c0_i32_0, %c0_i32_1 : i32, i32, i32
  }
  func.func @transform_23(%arg0: i32) -> (i32, i32) {
    %c0_i32 = arith.constant 0 : i32
    %c0_i32_0 = arith.constant 0 : i32
    %c0_i32_1 = arith.constant 0 : i32
    return %c0_i32, %c0_i32_0 : i32, i32
  }
  func.func @transform_24(%arg0: i32) -> (i32, i32) {
    %c0_i32 = arith.constant 0 : i32
    %c0_i32_0 = arith.constant 0 : i32
    %c0_i32_1 = arith.constant 0 : i32
    return %c0_i32, %c0_i32_0 : i32, i32
  }
  func.func @transform_25(%arg0: i32) -> (i32, i32) {
    %c0_i32 = arith.constant 0 : i32
    %c0_i32_0 = arith.constant 0 : i32
    %c0_i32_1 = arith.constant 0 : i32
    return %c0_i32, %c0_i32_0 : i32, i32
  }
  func.func @transform_26(%arg0: i32) -> (i32, i32) {
    %c0_i32 = arith.constant 0 : i32
    %c0_i32_0 = arith.constant 0 : i32
    %c0_i32_1 = arith.constant 0 : i32
    return %c0_i32, %c0_i32_0 : i32, i32
  }
  func.func @transform_27(%arg0: i32) -> (i32, i32, i32) {
    %c0_i32 = arith.constant 0 : i32
    %c0_i32_0 = arith.constant 0 : i32
    %c0_i32_1 = arith.constant 0 : i32
    return %arg0, %c0_i32, %c0_i32_0 : i32, i32, i32
  }
}

</mosaic_0001>

<bundles_post_ra>
// kernel: forward.1
= control target key start
LH: loop header
LB: loop body
LE: loop exit
PB: predicated region body
PF: predicated region fallthrough
CT: control target
= control target key end

     0   :  { %s5492_s0 = inlined_call_operand.vmem [shape: s32[2,16,1], index: 0, kind: input, shape index: {}]   ;;  %s5493_s1 = inlined_call_operand.vmem [shape: f32[64,32], index: 1, kind: input, shape index: {}]   ;;  %s5494_s2 = inlined_call_operand.vmem [shape: f32[16,64], index: 2, kind: input, shape index: {}]   ;;  %s5495_s3 = inlined_call_operand.vmem [shape: f32[16,64], index: 3, kind: input, shape index: {}]   ;;  %s5496_s4 = inlined_call_operand.vmem [shape: f32[64,64], index: 4, kind: input, shape index: {}]   ;;  %s5497_s5 = inlined_call_operand.vmem [shape: f32[16,16], index: 5, kind: input, shape index: {}]   ;;  %s5498_s6 = inlined_call_operand.vmem [shape: f32[16,2], index: 6, kind: input, shape index: {}]   ;;  %s5499_s7 = inlined_call_operand.vmem [shape: f32[2,1,32], index: 7, kind: input, shape index: {}]   ;;  %s5500_s8 = inlined_call_operand.vmem [shape: f32[2,1,32], index: 8, kind: input, shape index: {}]   ;;  %s5501_s9 = inlined_call_operand.vmem [shape: f32[2,32,64], index: 9, kind: input, shape index: {}]   ;;  %s5502_s10 = inlined_call_operand.vmem [shape: f32[2,1,16], index: 10, kind: input, shape index: {}]   ;;  %s5503_s11 = inlined_call_operand.vmem [shape: f32[2,1,16], index: 11, kind: input, shape index: {}]   ;;  %s5504_s12 = inlined_call_operand.vmem [shape: f32[2,1,16], index: 12, kind: input, shape index: {}]   ;;  %s5505_s13 = inlined_call_operand.vmem [shape: f32[2,1,16], index: 13, kind: input, shape index: {}]   ;;  %s5506_s14 = inlined_call_operand.vmem [shape: f32[2,1,16], index: 14, kind: input, shape index: {}]   ;;  %s5507_s15 = inlined_call_operand.vmem [shape: f32[2,32,32], index: 15, kind: input, shape index: {}]   ;;  %s5508_s16 = inlined_call_operand.vmem [shape: f32[2,1,32], index: 16, kind: input, shape index: {}]   ;;  %s5509_s17 = inlined_call_operand.vmem [shape: f32[2,1,32], index: 17, kind: input, shape index: {}]   ;;  %s5510_s18 = inlined_call_operand.vmem [shape: f32[2,1,32], index: 18, kind: input, shape index: {}]   ;;  %s5511_s19 = inlined_call_operand.vmem [shape: f32[2,32,128], index: 19, kind: input, shape index: {}]   ;;  %s5512_s20 = inlined_call_operand.vmem [shape: f32[2,1,128], index: 20, kind: input, shape index: {}]   ;;  %s5513_s21 = inlined_call_operand.vmem [shape: f32[2,128,32], index: 21, kind: input, shape index: {}]   ;;  %s5514_s22 = inlined_call_operand.vmem [shape: f32[2,1,32], index: 22, kind: input, shape index: {}]   ;;  %s5515_s23 = inlined_call_operand.vmem [shape: f32[1,32], index: 23, kind: input, shape index: {}]   ;;  %s5516_s24 = inlined_call_operand.vmem [shape: f32[1,32], index: 24, kind: input, shape index: {}]   ;;  %s5517_s25 = inlined_call_operand.vmem [shape: f32[32,64], index: 25, kind: input, shape index: {}]   ;;  %s5518_s26 = inlined_call_operand.vmem [shape: f32[1,64], index: 26, kind: input, shape index: {}]   ;;  %s5519_s27 = inlined_call_operand.hbm [shape: f32[2,16,64], index: 27, kind: output, shape index: {}]  }
   0x1   :  { %5565 = sst [smem:[#allocation14_spill]] %s5492_s0 }
   0x2   :  { %5566 = sst [smem:[#allocation15_spill]] %s5493_s1 }
   0x3   :  { %5567 = sst [smem:[#allocation16_spill]] %s5494_s2 }
   0x4   :  { %5568 = sst [smem:[#allocation17_spill]] %s5495_s3 }
   0x5   :  { %5569 = sst [smem:[#allocation18_spill]] %s5496_s4 }
   0x6   :  { %5570 = sst [smem:[#allocation19_spill]] %s5497_s5 }
   0x7   :  { %5571 = sst [smem:[#allocation20_spill]] %s5498_s6 }
   0x8   :  { %5572 = sst [smem:[#allocation21_spill]] %s5499_s7 }
   0x9   :  { %5573 = sst [smem:[#allocation22_spill]] %s5500_s8 }
   0xa   :  { %5574 = sst [smem:[#allocation23_spill]] %s5501_s9 }
   0xb   :  { %5575 = sst [smem:[#allocation24_spill]] %s5502_s10 }
   0xc   :  { %5576 = sst [smem:[#allocation25_spill]] %s5503_s11 }
   0xd   :  { %5577 = sst [smem:[#allocation26_spill]] %s5504_s12 }
   0xe   :  { %5578 = sst [smem:[#allocation27_spill]] %s5515_s23 }
   0xf   :  { %5579 = sst [smem:[#allocation28_spill]] %s5516_s24 }
  0x10   :  { %5580 = sst [smem:[#allocation29_spill]] %s5517_s25 }
  0x11   :  { %5581 = sst [smem:[#allocation30_spill]] %s5518_s26 }
  0x12   :  { %5582 = sst [smem:[#allocation31_spill]] %s5519_s27 }
  0x13   :  { %32 = vsyncpa [#allocation3], 0 }
  0x14   :  { %34 = vsyncpa [#allocation3 + $0x1], 0  ;;  %s4303_s7 = smov 0   ;;  %s4305_s4 = smov 0  }
  0x15   :  { %s4307_s8 = smov 0   ;;  %s4309_s30 = smov 0  }
  0x16 LB: > { %5583 = sst [smem:[#allocation5_spill]] %s4138_s7  ;;  %s4324_s9 = sadd.s32 4294967295, %s4150_s30   ;;  %s4150_s30 = sphi %s4309_s30, %s5642_s30   ;;  %s4146_s8 = sphi %s4307_s8, %s5645_s8   ;;  %s4142_s4 = sphi %s4305_s4, %s5644_s4   ;;  %s4138_s7 = sphi %s4303_s7, %s5643_s7  }
  0x17   : > { %5584 = sst [smem:[#allocation6_spill]] %s4142_s4  ;;  %s3724_s5 = sadd.s32 4294967294, %s4150_s30  }
  0x18   : > { %5585 = sst [smem:[#allocation7_spill]] %s4146_s8  ;;  %s4328_s28 = sadd.s32 1, %s4150_s30  }
  0x19   : > { %5586 = sst [smem:[#allocation8_spill]] %s4150_s30  ;;  %s619_s0 = sadd.s32 1, %s4146_s8 }
  0x1a   : > { %5587 = sst [smem:[#allocation9_spill]] %s4324_s9  ;;  %s616_s10 = ssub.s32 %s4150_s30, %s4328_s28 }
  0x1b   : > { %5588 = sst [smem:[#allocation10_spill]] %s4328_s28  ;;  %p629_p0 = scmp.ne.s32.totalorder %s4146_s8, %s4142_s4 }
  0x1c   : > { %p617_p1 = scmp.eq.s32.totalorder %s616_s10, 0  ;;  %p630_p2 = scmp.eq.s32.totalorder %s4324_s9, 1 }
  0x1d   : > { %p635_p3 = scmp.ne.s32.totalorder %s4142_s4, %s4138_s7  ;;  %p636_p4 = scmp.eq.s32.totalorder %s3724_s5, 1 }
  0x1e   : > { %s4339_s29 = scalar_select %p617_p1, %s4146_s8, %s619_s0  }
  0x1f   : > { %p4341_p5 = por %p630_p2, %p629_p0  ;;  %p4345_p6 = por %p636_p4, %p635_p3 }
  0x20   : > { %5589 = sst [smem:[#allocation11_spill]] %s4339_s29  ;;  %p3727_p7 = scmp.ge.s32.totalorder %s4150_s30, 1 }
  0x21   : > { %s5590_s1 = scalar_select %p4341_p5, 1, 0 }
  0x22   : > { %s5592_s6 = scalar_select %p4345_p6, 1, 0 }
  0x23   : > { %5591 = sst [smem:[#allocation12_spill]] %s5590_s1  ;;  %p740_p8 = scmp.lt.s32.totalorder %s4150_s30, 3 }
  0x24   : > { %5593 = sst [smem:[#allocation13_spill]] %s5592_s6 }
  0x25   : > { %p741_p9 = pnand %p3727_p7, %p740_p8 }
  0x26   : > { %p812_p10 = scmp.lt.s32.totalorder (!%p741_p9), %s4324_s9, 1  ;;  %s5594_s3 = sld [smem:[#allocation15_spill]] (!%p741_p9) }
  0x27   : > { %744 = sbr.rel (%p741_p9) target bundleno = 7050 (0x1b8a), region = 128  ;;  %s5595_s30 = sld [smem:[#allocation14_spill]] (!%p741_p9) }
  0x28   : > { %s5598_s29 = sld [smem:[#allocation18_spill]] (!%p741_p9)  ;;  %s5542_s6 = smov (!%p741_p9), 32  }
  0x29   : > { %s5601_s8 = sld [smem:[#allocation24_spill]] (!%p741_p9)  ;;  %s5546_s26 = smov (!%p741_p9), 96  }
  0x2a   : > { %s5606_s12 = sld [smem:[#allocation26_spill]] (!%p741_p9)  ;;  %s5607_s2 = smov (!%p741_p9), 32  }
  0x2b   : > { %s5611_s5 = sld [smem:[#allocation19_spill]] (!%p741_p9)  ;;  %s5550_s0 = smov (!%p741_p9), 112  }
  0x2c   : > { %v860_v0 = vld [vmem:[%s5594_s3 + $0x38] sm:$0xff]  ;;  %v859_v1 = vld [vmem:[%s5594_s3 + $0x30] sm:$0xff]  ;;  %v4152_v2 = vmov 0   ;;  %s813_s10 = scalar_select %p812_p10, %s4324_s9, 1  ;;  %v858_v3 = vld [vmem:[%s5594_s3 + $0x28] sm:$0xff]  ;;  %v839_v11 = vlaneseq  ;;  %vm861_vm0 = vcmask 523264  }
  0x2d   : > { %3904 = vset.pattern.permute.xlu0 %v4152_v2  ;;  %876 = vmatpush.msra.mxu0 %v860_v0  ;;  %v857_v4 = vld [vmem:[%s5594_s3 + $0x20] sm:$0xff]  ;;  %v856_v5 = vld [vmem:[%s5594_s3 + $0x18] sm:$0xff]  ;;  %v855_v7 = vld [vmem:[%s5594_s3 + $0x10] sm:$0xff]  ;;  %v4153_v14 = vmov 0.0   ;;  %vm931_vm3 = vcmask 261120   ;;  %v4154_v22 = vmov 32.0  }
  0x2e   : > { %s3850_s7 = sshll.u32 %s813_s10, 4  ;;  %v854_v8 = vld [vmem:[%s5594_s3 + $0x8] sm:$0xff]  ;;  %v853_v10 = vld [vmem:[%s5594_s3] sm:$0xff]  ;;  %v840_v12 = vand.u32 127, %v839_v11  ;;  %3932 = vrcp.f32 %v4154_v22  ;;  %v836_v46 = vld [vmem:[%s5598_s29 + $0x38] sm:$0xff]  ;;  %s5600_s10 = sld [smem:[#allocation22_spill]] }
  0x2f   : > { %877 = vmatpush.msra.mxu0 %v859_v1  ;;  %s816_s27 = scalar_lea.vmem %s5595_s30, %s3850_s7  ;;  %s5596_s7 = sld [smem:[#allocation23_spill]]  ;;  %v835_v47 = vld [vmem:[%s5598_s29 + $0x30] sm:$0xff]  ;;  %1038 = vmatpush.msra.mxu2 %v836_v46  ;;  %v834_v48 = vld [vmem:[%s5598_s29 + $0x28] sm:$0xff]  ;;  %v833_v51 = vld [vmem:[%s5598_s29 + $0x20] sm:$0xff]  ;;  %vm1065_vm11 = vcmask 130048  }
  0x30   : > { %v837_v6 = vld [vmem:[%s816_s27] sm:$0xff]  ;;  %v838_v9 = vld [vmem:[%s816_s27 + $0x8] sm:$0xff]  ;;  %v832_v54 = vld [vmem:[%s5598_s29 + $0x18] sm:$0xff]  ;;  %s5599_s27 = sld [smem:[#allocation21_spill]]  ;;  %s5602_s28 = smov %s5601_s8 }
  0x31   : > { %878 = vmatpush.msra.mxu0 %v858_v3  ;;  %842 = vperm.xlu0 %3904, %v837_v6   ;;  %v831_v56 = vld [vmem:[%s5598_s29 + $0x10] sm:$0xff]  ;;  %v830_v58 = vld [vmem:[%s5598_s29 + $0x8] sm:$0xff]  ;;  %s5603_s30 = sld [smem:[#allocation16_spill]]  ;;  %s5544_s3 = smov 48  }
  0x32   : > { %1039 = vmatpush.msra.mxu2 %v835_v47  ;;  %s5605_s9 = sld [smem:[#allocation17_spill]] }
  0x33   : > { %879 = vmatpush.msra.mxu0 %v857_v4  ;;  %s5634_s4 = sld [smem:[#allocation6_spill]] }
  0x34   : > { %v3933_v23 = vpop.eup %3932  ;;  %1040 = vmatpush.msra.mxu2 %v834_v48  ;;  %v3906_v4 = vld [vmem:[%s5600_s10] ss:$0 sm:$0xff] }
  0x35   : > { %880 = vmatpush.msra.mxu0 %v856_v5  ;;  %v939_v24 = vmul.f32 32.0, %v3933_v23  ;;  %vm943_vm4 = vweird.f32 %v3933_v23  ;;  %s5597_s1 = smov %s5596_s7  ;;  %v896_v39 = vld [vmem:[%s5596_s7 + $0x18] sm:$0xff]  ;;  %s5613_s7 = smov 96  }
  0x36   : > { %1011 = vmatpush.msra.mxu1 %v896_v39  ;;  %v895_v40 = vld [vmem:[%s5597_s1 + $0x10] sm:$0xff]  ;;  %v894_v41 = vld [vmem:[%s5597_s1 + $0x8] sm:$0xff]  ;;  %v893_v42 = vld [vmem:[%s5597_s1] sm:$0xff]  ;;  %1041 = vmatpush.msra.mxu2 %v833_v51 }
  0x37   : > { %881 = vmatpush.msra.mxu0 %v855_v7  ;;  %v940_v25 = vsub.f32 1.0, %v939_v24  ;;  %v3905_v0 = vld [vmem:[%s5599_s27] ss:$0 sm:$0xff]  ;;  %s5604_s11 = smov %s5603_s30 }
  0x38   : > { %1012 = vmatpush.msra.mxu1 %v895_v40  ;;  %1042 = vmatpush.msra.mxu2 %v832_v54 }
  0x39   : > { %882 = vmatpush.msra.mxu0 %v854_v8  ;;  %845 = vperm.xlu0 %3904, %v838_v9   ;;  %v941_v26 = vmul.f32 %v3933_v23, %v940_v25  ;;  %s809_s23 = sand.u32 1, %s5634_s4  }
  0x3a   : > { %1013 = vmatpush.msra.mxu1 %v894_v41  ;;  %1043 = vmatpush.msra.mxu2 %v831_v56  ;;  %s3728_s25 = sshll.u32 %s809_s23, 4  ;;  %s3647_s4 = scalar_lea.sflag [#allocation3], %s809_s23 }
  0x3b   : > { %883 = vmatpush.msra.mxu0 %v853_v10  ;;  %v942_v27 = vadd.f32 %v3933_v23, %v941_v26 }
  0x3c   : > { %1014 = vmatpush.msra.mxu1 %v893_v42  ;;  %1044 = vmatpush.msra.mxu2 %v830_v58 }
  0x3d   : > { %v4390_v28 = vsel %vm943_vm4, %v3933_v23, %v942_v27 }
  0xa3   : > { %v843_v13 = vpop.permute.xlu0 %842 }
  0xa4   : > { %vm847_vm1 = vcmp.eq.s32.totalorder %v840_v12, %v843_v13 }
  0xa5   : > { %v3731_v15 = vsel %vm847_vm1, 1.0, %v4153_v14  ;;  %vm1222_vm1 = vcmask 392448  }
  0xa6   : > { %3733 = vmatmul.msk.f32.vlgmr.msra.gmra.mxu0 %vm861_vm0, %v3731_v15  ;;  %v4447_v15 = vld [vmem:[%s5601_s8] ss:$0 sm:$0xff]  ;;  %s5608_s8 = sld [smem:[#allocation25_spill]] }
  0xa7   : > { %1141 = vrot.lane.b32.xlu0 %v4447_v15, %s5542_s6  ;;  %s5552_s6 = smov 80  }
  0xab   : > { %v846_v16 = vpop.permute.xlu0 %845 }
  0xac   : > { %vm848_vm2 = vcmp.eq.s32.totalorder %v840_v12, %v846_v16 }
  0xad   : > { %v3732_v17 = vsel %vm848_vm2, 1.0, %v4153_v14  ;;  %v829_v14 = vld [vmem:[%s5598_s29] sm:$0xff] }
  0xae   : > { %3734 = vmatmul.msk.f32.gmra.mxu0 %vm861_vm0, %v3732_v17  ;;  %1045 = vmatpush.msra.mxu2 %v829_v14 }
 0x119   : > { %v1142_v25 = vpop.permute.xlu0 %1141 }
 0x123   : > { %v4382_v18 = vpop.f32.mrf.mxu0 }
 0x124   : > { %v932_v19 = vsel %vm931_vm3, %v4382_v18, 0.0 }
 0x125   : > { %933 = vadd.xlane.f32.xlu1 %v932_v19  ;;  %v825_v19 = vld [vmem:[%s5603_s30] sm:$0xff] }
 0x12b   : > { %v4386_v20 = vpop.f32.mrf.mxu0 }
 0x12c   : > { %v935_v21 = vsel %vm931_vm3, %v4386_v20, 0.0 }
 0x12d   : > { %936 = vadd.xlane.f32.xlu1 %v935_v21  ;;  %v827_v21 = vld [vmem:[%s5605_s9] sm:$0xff] }
 0x198   : > { %v934_v29 = vpop.xlane.xlu1 %933 }
 0x199   : > { %v945_v30 = vmul.f32 %v4390_v28, %v934_v29  ;;  %v826_v29 = vld [vmem:[%s5604_s11 + $0x8] sm:$0xff] }
 0x19b   : > { %v947_v31 = vsub.f32 %v4382_v18, %v945_v30  ;;  %v828_v30 = vld [vmem:[%s5605_s9 + $0x8] sm:$0xff] }
 0x19d   : > { %v949_v32 = vmul.f32 %v947_v31, %v947_v31 }
 0x19f   : > { %v951_v33 = vsel %vm931_vm3, %v949_v32, 0.0 }
 0x1a0   : > { %952 = vadd.xlane.f32.xlu2 %v951_v33  ;;  %v937_v34 = vpop.xlane.xlu1 %936 }
 0x1a1   : > { %v946_v35 = vmul.f32 %v4390_v28, %v937_v34 }
 0x1a3   : > { %v948_v36 = vsub.f32 %v4386_v20, %v946_v35 }
 0x1a5   : > { %v950_v37 = vmul.f32 %v948_v36, %v948_v36 }
 0x1a7   : > { %v954_v38 = vsel %vm931_vm3, %v950_v37, 0.0 }
 0x1a8   : > { %955 = vadd.xlane.f32.xlu2 %v954_v38 }
 0x213   : > { %v953_v43 = vpop.xlane.xlu2 %952 }
 0x214   : > { %v957_v44 = vmul.f32 %v953_v43, %v4390_v28 }
 0x216   : > { %v959_v45 = vadd.f32 1e-05, %v957_v44 }
 0x218   : > { %3934 = vrsqrt.f32 %v959_v45  ;;  %vm967_vm6 = vweird.f32 %v959_v45 }
 0x21b   : > { %v956_v49 = vpop.xlane.xlu2 %955 }
 0x21c   : > { %v958_v50 = vmul.f32 %v956_v49, %v4390_v28 }
 0x21e   : > { %v3935_v52 = vpop.eup %3934  ;;  %v960_v53 = vadd.f32 1e-05, %v958_v50 }
 0x21f   : > { %v962_v55 = vmul.f32 %v3935_v52, %v959_v45  ;;  %vm968_vm5 = vweird.f32 %v3935_v52 }
 0x220   : > { %3936 = vrsqrt.f32 %v960_v53  ;;  %vm969_vm7 = vmor %vm967_vm6, %vm968_vm5  ;;  %vm977_vm9 = vweird.f32 %v960_v53 }
 0x221   : > { %v963_v57 = vmul.f32 %v3935_v52, %v962_v55 }
 0x223   : > { %v964_v59 = vmul.f32 0.5, %v963_v57 }
 0x225   : > { %v965_v60 = vsub.f32 1.5, %v964_v59 }
 0x226   : > { %v3937_v61 = vpop.eup %3936 }
 0x227   : > { %v966_v62 = vmul.f32 %v3935_v52, %v965_v60  ;;  %v972_v63 = vmul.f32 %v3937_v61, %v960_v53  ;;  %vm978_vm8 = vweird.f32 %v3937_v61 }
 0x228   : > { %vm979_vm10 = vmor %vm977_vm9, %vm978_vm8  ;;  %vm5549_vm8 = vcmask 123904  }
 0x229   : > { %v970_v1 = vsel %vm969_vm7, %v3935_v52, %v966_v62  ;;  %v973_v2 = vmul.f32 %v3937_v61, %v972_v63  ;;  %vm5555_vm7 = vcmask 1041409  }
 0x22a   : > { %v981_v3 = vmul.f32 %v970_v1, %v947_v31 }
 0x22b   : > { %v974_v5 = vmul.f32 0.5, %v973_v2 }
 0x22c   : > { %v986_v6 = vmul.f32 %v3905_v0, %v981_v3 }
 0x22d   : > { %v975_v7 = vsub.f32 1.5, %v974_v5 }
 0x22e   : > { %v991_v8 = vadd.f32 %v3906_v4, %v986_v6 }
 0x22f   : > { %v976_v9 = vmul.f32 %v3937_v61, %v975_v7 }
 0x230   : > { %3735 = vmatmul.msk.f32.vlgmr.msra.gmra.mxu1 %vm931_vm3, %v991_v8 }
 0x231   : > { %v980_v10 = vsel %vm979_vm10, %v3937_v61, %v976_v9 }
 0x232   : > { %v982_v11 = vmul.f32 %v980_v10, %v948_v36 }
 0x234   : > { %v987_v12 = vmul.f32 %v3905_v0, %v982_v11 }
 0x236   : > { %v992_v13 = vadd.f32 %v3906_v4, %v987_v12 }
 0x238   : > { %3736 = vmatmul.msk.f32.gmra.mxu1 %vm931_vm3, %v992_v13 }
 0x2ad   : > { %v1016_v16 = vpop.f32.mrf.mxu1 }
 0x2ae   : > { %3737 = vmatmul.msk.f32.vlgmr.msra.gmra.mxu2 %vm861_vm0, %v1016_v16  ;;  %v1022_v23 = vmul.f32 %v1016_v16, %v825_v19 }
 0x2b5   : > { %v1019_v17 = vpop.f32.mrf.mxu1 }
 0x2b6   : > { %3738 = vmatmul.msk.f32.gmra.mxu2 %vm861_vm0, %v1019_v17  ;;  %v1023_v32 = vmul.f32 %v1019_v17, %v826_v29 }
 0x331   : > { %v1047_v22 = vpop.f32.mrf.mxu2 }
 0x332   : > { %v1053_v24 = vmul.f32 %v1047_v22, %v827_v21 }
 0x334   : > { %v4459_v26 = vadd.f32 %v1053_v24, %v1022_v23 }
 0x336   : > { %v1144_v27 = vmul.f32 %v1142_v25, %v4459_v26 }
 0x338   : > { %1148 = vrot.lane.b32.xlu1 %v1144_v27, %s5546_s26 }
 0x339   : > { %v1050_v31 = vpop.f32.mrf.mxu2 }
 0x33a   : > { %v1054_v33 = vmul.f32 %v1050_v31, %v828_v30 }
 0x33c   : > { %v4469_v34 = vadd.f32 %v1054_v33, %v1023_v32 }
 0x33e   : > { %v1145_v35 = vmul.f32 %v1142_v25, %v4469_v34 }
 0x340   : > { %1150 = vrot.lane.b32.xlu2 %v1145_v35, %s5546_s26  ;;  %1061 = vrot.lane.b32.xlu1 %v4469_v34, %s5546_s26 }
 0x39a   : > { %v1151_v36 = vpop.permute.xlu2 %1150 }
 0x39b   : > { %v1157_v37 = vsel %vm1065_vm11, %v1151_v36, 0.0 }
 0x39c   : > { %1158 = vadd.xlane.f32.xlu2 %v1157_v37 }
 0x3aa   : > { %v1149_v38 = vpop.permute.xlu1 %1148 }
 0x3ab   : > { %v1154_v39 = vsel %vm1065_vm11, %v1149_v38, 0.0 }
 0x3ac   : > { %1155 = vadd.xlane.f32.xlu0 %v1154_v39 }
 0x3b2   : > { %v1062_v40 = vpop.permute.xlu1 %1061 }
 0x3b3   : > { %v1069_v41 = vsel %vm1065_vm11, %v1062_v40, 0.0 }
 0x3b4   : > { %1070 = vadd.xlane.f32.xlu0 %v1069_v41 }
 0x40f   : > { %v1159_v42 = vpop.xlane.xlu2 %1158 }
 0x410   : > { %v1166_v43 = vrot.slane %v1159_v42, 4 }
 0x412   : > { %v1167_v44 = vmax.f32 %v1159_v42, %v1166_v43 }
 0x414   : > { %v1168_v45 = vrot.slane %v1167_v44, 2 }
 0x416   : > { %v1169_v46 = vmax.f32 %v1167_v44, %v1168_v45 }
 0x418   : > { %v1170_v47 = vrot.slane %v1169_v46, 1 }
 0x41a   : > { %v1171_v48 = vmax.f32 %v1169_v46, %v1170_v47 }
 0x41c   : > { %v1173_v49 = vsub.f32 %v1159_v42, %v1171_v48 }
 0x41e   : > { %v1176_v50 = vmul.f32 1.442695, %v1173_v49 }
 0x41f   : > { %v1156_v51 = vpop.xlane.xlu0 %1155 }
 0x420   : > { %3938 = vpow2.f32 %v1176_v50  ;;  %v1160_v52 = vrot.slane %v1156_v51, 4 }
 0x422   : > { %v1161_v53 = vmax.f32 %v1156_v51, %v1160_v52 }
 0x424   : > { %v1162_v54 = vrot.slane %v1161_v53, 2 }
 0x426   : > { %v3939_v55 = vpop.eup %3938  ;;  %v1163_v56 = vmax.f32 %v1161_v53, %v1162_v54 }
 0x427   : > { %v1184_v57 = vrot.slane %v3939_v55, 4 }
 0x428   : > { %v1164_v58 = vrot.slane %v1163_v56, 1 }
 0x429   : > { %v1185_v59 = vadd.f32 %v3939_v55, %v1184_v57 }
 0x42a   : > { %v1165_v60 = vmax.f32 %v1163_v56, %v1164_v58 }
 0x42b   : > { %v1186_v61 = vrot.slane %v1185_v59, 2 }
 0x42c   : > { %v1172_v62 = vsub.f32 %v1156_v51, %v1165_v60 }
 0x42d   : > { %v1187_v63 = vadd.f32 %v1186_v61, %v1185_v59 }
 0x42e   : > { %v1174_v0 = vmul.f32 1.442695, %v1172_v62 }
 0x42f   : > { %v1188_v1 = vrot.slane %v1187_v63, 1 }
 0x430   : > { %3940 = vpow2.f32 %v1174_v0 }
 0x431   : > { %v1189_v2 = vadd.f32 %v1188_v1, %v1187_v63 }
 0x433   : > { %3942 = vrcp.f32 %v1189_v2  ;;  %v1216_v12 = vand.u32 2147483648, %v1189_v2  ;;  %v1214_v14 = vand.u32 2147483647, %v1189_v2  ;;  %vm1210_vm13 = vweird.f32 %v1189_v2 }
 0x435   : > { %v1217_v21 = vor.u32 1.1754944e-38, %v1216_v12  ;;  %vm1215_vm15 = vcmp.eq.f32.partialorder %v1214_v14, 8.507059e+37 }
 0x436   : > { %v3941_v3 = vpop.eup %3940 }
 0x437   : > { %v1178_v4 = vrot.slane %v3941_v3, 4 }
 0x439   : > { %v3943_v5 = vpop.eup %3942  ;;  %v1179_v6 = vadd.f32 %v3941_v3, %v1178_v4 }
 0x43a   : > { %v1206_v7 = vmul.f32 %v3943_v5, %v1189_v2  ;;  %vm1211_vm12 = vweird.f32 %v3943_v5 }
 0x43b   : > { %v1180_v8 = vrot.slane %v1179_v6, 2  ;;  %vm1212_vm14 = vmor %vm1210_vm13, %vm1211_vm12 }
 0x43c   : > { %v1207_v9 = vsub.f32 1.0, %v1206_v7 }
 0x43d   : > { %v1181_v10 = vadd.f32 %v1180_v8, %v1179_v6 }
 0x43e   : > { %v1208_v11 = vmul.f32 %v3943_v5, %v1207_v9 }
 0x43f   : > { %v1182_v13 = vrot.slane %v1181_v10, 1 }
 0x440   : > { %v1209_v16 = vadd.f32 %v3943_v5, %v1208_v11 }
 0x441   : > { %v1183_v17 = vadd.f32 %v1182_v13, %v1181_v10 }
 0x442   : > { %v1213_v19 = vsel %vm1212_vm14, %v3943_v5, %v1209_v16 }
 0x443   : > { %3944 = vrcp.f32 %v1183_v17  ;;  %v1218_v22 = vsel %vm1215_vm15, %v1217_v21, %v1213_v19  ;;  %v1201_v31 = vand.u32 2147483648, %v1183_v17  ;;  %v1199_v33 = vand.u32 2147483647, %v1183_v17 }
 0x444   : > { %v1219_v23 = vmul.f32 %v3939_v55, %v1218_v22  ;;  %vm1195_vm4 = vweird.f32 %v1183_v17  ;;  %v4158_v55 = vmov 16.0  }
 0x445   : > { %v1202_v37 = vor.u32 1.1754944e-38, %v1201_v31  ;;  %vm1200_vm6 = vcmp.eq.f32.partialorder %v1199_v33, 8.507059e+37  ;;  %3946 = vrcp.f32 %v4158_v55 }
 0x446   : > { %v1221_v24 = vmul.f32 %v1219_v23, %v4469_v34 }
 0x448   : > { %v1230_v30 = vsel %vm1222_vm1, %v1221_v24, 0.0 }
 0x449   : > { %v3945_v25 = vpop.eup %3944  ;;  %v1231_v35 = vrot.slane %v1230_v30, 4 }
 0x44a   : > { %v1191_v27 = vmul.f32 %v3945_v25, %v1183_v17  ;;  %vm1196_vm2 = vweird.f32 %v3945_v25 }
 0x44b   : > { %vm1197_vm5 = vmor %vm1195_vm4, %vm1196_vm2  ;;  %v1232_v40 = vadd.f32 %v1231_v35, %v1230_v30  ;;  %v3947_v58 = vpop.eup %3946  ;;  %v4528_v35 = vld [vmem:[%s5606_s12] ss:$0 sm:$0xff] }
 0x44c   : > { %v1192_v29 = vsub.f32 1.0, %v1191_v27  ;;  %v1073_v60 = vmul.f32 16.0, %v3947_v58  ;;  %vm1077_vm9 = vweird.f32 %v3947_v58 }
 0x44d   : > { %v1233_v43 = vrot.slane %v1232_v40, 2 }
 0x44e   : > { %v1193_v32 = vmul.f32 %v3945_v25, %v1192_v29  ;;  %v1074_v62 = vsub.f32 1.0, %v1073_v60 }
 0x44f   : > { %v1234_v47 = vadd.f32 %v1233_v43, %v1232_v40 }
 0x450   : > { %v1194_v36 = vadd.f32 %v3945_v25, %v1193_v32  ;;  %v1075_v0 = vmul.f32 %v3947_v58, %v1074_v62 }
 0x451   : > { %v1235_v50 = vrot.slane %v1234_v47, 1 }
 0x452   : > { %v1198_v38 = vsel %vm1197_vm5, %v3945_v25, %v1194_v36  ;;  %v4535_v36 = vld [vmem:[%s5608_s8] ss:$0 sm:$0xff] }
 0x453   : > { %v1203_v39 = vsel %vm1200_vm6, %v1202_v37, %v1198_v38  ;;  %v1236_v53 = vadd.f32 %v1235_v50, %v1234_v47  ;;  %vm5548_vm6 = vcmask 523648  }
 0x454   : > { %v1204_v41 = vmul.f32 %v3941_v3, %v1203_v39  ;;  %v1071_v3 = vpop.xlane.xlu0 %1070 }
 0x456   : > { %v1220_v42 = vmul.f32 %v1204_v41, %v4459_v26 }
 0x458   : > { %v1223_v44 = vsel %vm1222_vm1, %v1220_v42, 0.0 }
 0x459   : > { %v1224_v45 = vrot.slane %v1223_v44, 4 }
 0x45b   : > { %v1225_v46 = vadd.f32 %v1224_v45, %v1223_v44 }
 0x45d   : > { %v1226_v48 = vrot.slane %v1225_v46, 2 }
 0x45f   : > { %v1227_v49 = vadd.f32 %v1226_v48, %v1225_v46  ;;  %v4542_v46 = vld [vmem:[%s5505_s13] ss:$0 sm:$0xff] }
 0x461   : > { %v1228_v51 = vrot.slane %v1227_v49, 1 }
 0x463   : > { %v1229_v52 = vadd.f32 %v1228_v51, %v1227_v49 }
 0x465   : > { %v1240_v54 = vsel %vm5555_vm7, %v1236_v53, %v1229_v52 }
 0x466   : > { %1241 = vrot.lane.b32.xlu1 %v1240_v54, %s5546_s26 }
 0x46e   : > { %1059 = vrot.lane.b32.xlu1 %v4459_v26, %s5546_s26 }
 0x476   : > { %1611 = vrot.lane.b32.xlu1 %v4447_v15, %s5544_s3  ;;  %v1076_v15 = vadd.f32 %v3947_v58, %v1075_v0  ;;  %s5609_s3 = smov %s5608_s8  ;;  %s5610_s8 = smov 48  }
 0x478   : > { %v4492_v2 = vsel %vm1077_vm9, %v3947_v58, %v1076_v15 }
 0x479   : > { %v1080_v4 = vmul.f32 %v4492_v2, %v1071_v3  ;;  %v4554_v3 = vld [vmem:[%s5506_s14] ss:$0 sm:$0xff] }
 0x47b   : > { %v4498_v6 = vsub.f32 %v4469_v34, %v1080_v4 }
 0x47d   : > { %v1084_v7 = vmul.f32 %v4498_v6, %v4498_v6 }
 0x4d8   : > { %v1242_v56 = vpop.permute.xlu1 %1241 }
 0x4d9   : > { %v1245_v57 = vsel %vm5549_vm8, %v1242_v56, 0.0 }
 0x4da   : > { %1246 = vadd.xlane.f32.xlu1 %v1245_v57 }
 0x4e0   : > { %v1060_v59 = vpop.permute.xlu1 %1059 }
 0x4e1   : > { %v1066_v61 = vsel %vm1065_vm11, %v1060_v59, 0.0 }
 0x4e2   : > { %1067 = vadd.xlane.f32.xlu0 %v1066_v61 }
 0x4e8   : > { %v1612_v63 = vpop.permute.xlu1 %1611 }
 0x4e9   : > { %v1614_v1 = vmul.f32 %v1612_v63, %v4459_v26  ;;  %v1615_v5 = vmul.f32 %v1612_v63, %v4469_v34 }
 0x4eb   : > { %1618 = vrot.lane.b32.xlu2 %v1614_v1, %s5552_s6 }
 0x4f6   : > { %1620 = vrot.lane.b32.xlu0 %v1615_v5, %s5552_s6 }
 0x4fe   : > { %1089 = vrot.lane.b32.xlu0 %v1084_v7, %s5546_s26 }
 0x545   : > { %v1619_v29 = vpop.permute.xlu2 %1618 }
 0x546   : > { %v1624_v31 = vsel %vm1065_vm11, %v1619_v29, 0.0 }
 0x54d   : > { %v1247_v8 = vpop.xlane.xlu1 %1246 }
 0x54e   : > { %v1248_v9 = vmul.f32 %v1247_v8, %v4492_v2 }
 0x550   : > { %v1250_v10 = vrot.slane %v1248_v9, 1  ;;  %v4504_v11 = vsub.f32 %v1229_v52, %v1248_v9 }
 0x552   : > { %v4506_v12 = vsub.f32 %v1236_v53, %v1250_v10  ;;  %v1255_v16 = vmul.f32 %v4504_v11, %v4504_v11 }
 0x554   : > { %v1256_v13 = vmul.f32 %v4506_v12, %v4506_v12 }
 0x555   : > { %v1068_v14 = vpop.xlane.xlu0 %1067 }
 0x556   : > { %v1079_v17 = vmul.f32 %v4492_v2, %v1068_v14  ;;  %v1259_v19 = vrot.slane %v1256_v13, 7 }
 0x558   : > { %v4514_v21 = vsub.f32 %v4459_v26, %v1079_v17  ;;  %v1260_v22 = vsel %vm5555_vm7, %v1259_v19, %v1255_v16 }
 0x559   : > { %1261 = vrot.lane.b32.xlu0 %v1260_v22, %s5546_s26 }
 0x55a   : > { %v1083_v23 = vmul.f32 %v4514_v21, %v4514_v21 }
 0x55c   : > { %1087 = vrot.lane.b32.xlu2 %v1083_v23, %s5546_s26 }
 0x568   : > { %v1621_v24 = vpop.permute.xlu0 %1620 }
 0x569   : > { %v1627_v25 = vsel %vm1065_vm11, %v1621_v24, 0.0 }
 0x56a   : > { %1628 = vadd.xlane.f32.xlu1 %v1627_v25 }
 0x570   : > { %v1090_v27 = vpop.permute.xlu0 %1089 }
 0x571   : > { %v1096_v30 = vsel %vm1065_vm11, %v1090_v27, 0.0 }
 0x583   : > { %1097 = vadd.xlane.f32.xlu0 %v1096_v30 }
 0x585   : > { %1625 = vadd.xlane.f32.xlu2 %v1624_v31 }
 0x597   : > { %1287 = vrot.lane.b32.xlu0 %v4542_v46, %s5607_s2 }
 0x59d   : > { %1134 = vrot.lane.b32.xlu2 %v4528_v35, %s5607_s2 }
 0x5b6   : > { %v1088_v32 = vpop.permute.xlu2 %1087 }
 0x5b7   : > { %v1093_v33 = vsel %vm1065_vm11, %v1088_v32, 0.0 }
 0x5b8   : > { %1094 = vadd.xlane.f32.xlu1 %v1093_v33 }
 0x5cb   : > { %v1262_v48 = vpop.permute.xlu0 %1261 }
 0x5cc   : > { %v1264_v52 = vsel %vm5549_vm8, %v1262_v48, 0.0 }
 0x5d1   : > { %1127 = vrot.lane.b32.xlu1 %v4535_v36, %s5607_s2 }
 0x5dd   : > { %v1629_v37 = vpop.xlane.xlu1 %1628 }
 0x5de   : > { %v1636_v38 = vrot.slane %v1629_v37, 4 }
 0x5e0   : > { %v1637_v39 = vmax.f32 %v1629_v37, %v1636_v38 }
 0x5e2   : > { %v1638_v40 = vrot.slane %v1637_v39, 2 }
 0x5e4   : > { %v1639_v41 = vmax.f32 %v1637_v39, %v1638_v40 }
 0x5e6   : > { %v1640_v42 = vrot.slane %v1639_v41, 1 }
 0x5e8   : > { %v1641_v43 = vmax.f32 %v1639_v41, %v1640_v42 }
 0x5ea   : > { %v1643_v44 = vsub.f32 %v1629_v37, %v1641_v43 }
 0x5ec   : > { %v1646_v45 = vmul.f32 1.442695, %v1643_v44 }
 0x5ee   : > { %3948 = vpow2.f32 %v1646_v45 }
 0x5f4   : > { %v4544_v47 = vpop.eup %3948 }
 0x5f5   : > { %v1654_v49 = vrot.slane %v4544_v47, 4 }
 0x5f6   : > { %v1098_v9 = vpop.xlane.xlu0 %1097 }
 0x5f7   : > { %v1655_v53 = vadd.f32 %v4544_v47, %v1654_v49  ;;  %v1100_v14 = vmul.f32 %v1098_v9, %v4492_v2 }
 0x5f8   : > { %v1626_v50 = vpop.xlane.xlu2 %1625 }
 0x5f9   : > { %v1630_v51 = vrot.slane %v1626_v50, 4  ;;  %v1656_v56 = vrot.slane %v1655_v53, 2  ;;  %v1102_v19 = vadd.f32 1e-05, %v1100_v14 }
 0x5fb   : > { %v1631_v54 = vmax.f32 %v1626_v50, %v1630_v51  ;;  %1265 = vadd.xlane.f32.xlu1 %v1264_v52  ;;  %v1657_v59 = vadd.f32 %v1656_v56, %v1655_v53 }
 0x5fd   : > { %v1632_v55 = vrot.slane %v1631_v54, 2  ;;  %v1658_v62 = vrot.slane %v1657_v59, 1 }
 0x5ff   : > { %v1633_v57 = vmax.f32 %v1631_v54, %v1632_v55  ;;  %v1659_v0 = vadd.f32 %v1658_v62, %v1657_v59 }
 0x601   : > { %v1634_v58 = vrot.slane %v1633_v57, 1  ;;  %v1686_v29 = vand.u32 2147483648, %v1659_v0  ;;  %vm1680_vm12 = vweird.f32 %v1659_v0  ;;  %v1684_v31 = vand.u32 2147483647, %v1659_v0 }
 0x603   : > { %v1635_v60 = vmax.f32 %v1633_v57, %v1634_v58  ;;  %v1687_v40 = vor.u32 1.1754944e-38, %v1686_v29  ;;  %vm1685_vm4 = vcmp.eq.f32.partialorder %v1684_v31, 8.507059e+37 }
 0x605   : > { %v1642_v61 = vsub.f32 %v1626_v50, %v1635_v60 }
 0x607   : > { %v1644_v63 = vmul.f32 1.442695, %v1642_v61 }
 0x609   : > { %3950 = vpow2.f32 %v1644_v63 }
 0x60a   : > { %3952 = vrcp.f32 %v1659_v0 }
 0x60f   : > { %v3951_v1 = vpop.eup %3950 }
 0x610   : > { %v1648_v15 = vrot.slane %v3951_v1, 4  ;;  %v3953_v7 = vpop.eup %3952 }
 0x611   : > { %v1676_v13 = vmul.f32 %v3953_v7, %v1659_v0  ;;  %vm1681_vm10 = vweird.f32 %v3953_v7 }
 0x612   : > { %v1649_v4 = vadd.f32 %v3951_v1, %v1648_v15  ;;  %vm1682_vm14 = vmor %vm1680_vm12, %vm1681_vm10  ;;  %vm1119_vm10 = vweird.f32 %v1102_v19 }
 0x613   : > { %v1677_v17 = vsub.f32 1.0, %v1676_v13 }
 0x614   : > { %v1650_v5 = vrot.slane %v1649_v4, 2  ;;  %1294 = vrot.lane.b32.xlu1 %v4554_v3, %s5607_s2 }
 0x615   : > { %v1678_v22 = vmul.f32 %v3953_v7, %v1677_v17 }
 0x616   : > { %v1651_v8 = vadd.f32 %v1650_v5, %v1649_v4 }
 0x617   : > { %v1679_v25 = vadd.f32 %v3953_v7, %v1678_v22  ;;  %v1135_v22 = vpop.permute.xlu2 %1134 }
 0x618   : > { %v1652_v10 = vrot.slane %v1651_v8, 1 }
 0x619   : > { %v1683_v38 = vsel %vm1682_vm14, %v3953_v7, %v1679_v25 }
 0x61a   : > { %v1653_v16 = vadd.f32 %v1652_v10, %v1651_v8  ;;  %v1688_v45 = vsel %vm1685_vm4, %v1687_v40, %v1683_v38 }
 0x61b   : > { %v1689_v52 = vmul.f32 %v4544_v47, %v1688_v45 }
 0x61c   : > { %3954 = vrcp.f32 %v1653_v16  ;;  %v1671_v30 = vand.u32 2147483648, %v1653_v16  ;;  %v1669_v33 = vand.u32 2147483647, %v1653_v16  ;;  %vm1665_vm15 = vweird.f32 %v1653_v16 }
 0x61d   : > { %3956 = vrsqrt.f32 %v1102_v19  ;;  %v1691_v55 = vmul.f32 %v1689_v52, %v4469_v34 }
 0x61e   : > { %v1672_v41 = vor.u32 1.1754944e-38, %v1671_v30  ;;  %vm1670_vm5 = vcmp.eq.f32.partialorder %v1669_v33, 8.507059e+37 }
 0x61f   : > { %v1700_v59 = vsel %vm5548_vm6, %v1691_v55, 0.0 }
 0x620   : > { %v1701_v0 = vrot.slane %v1700_v59, 4 }
 0x622   : > { %v3955_v23 = vpop.eup %3954  ;;  %v1702_v5 = vadd.f32 %v1701_v0, %v1700_v59 }
 0x623   : > { %v1661_v24 = vmul.f32 %v3955_v23, %v1653_v16  ;;  %vm1666_vm13 = vweird.f32 %v3955_v23  ;;  %v3957_v37 = vpop.eup %3956 }
 0x624   : > { %vm1667_vm2 = vmor %vm1665_vm15, %vm1666_vm13  ;;  %v1114_v42 = vmul.f32 %v3957_v37, %v1102_v19  ;;  %vm1120_vm9 = vweird.f32 %v3957_v37  ;;  %v1703_v13 = vrot.slane %v1702_v5, 2 }
 0x625   : > { %v1662_v27 = vsub.f32 1.0, %v1661_v24  ;;  %vm1121_vm13 = vmor %vm1119_vm10, %vm1120_vm9  ;;  %vm5554_vm9 = vcmask 1041408  }
 0x626   : > { %v1115_v53 = vmul.f32 %v3957_v37, %v1114_v42  ;;  %v1704_v25 = vadd.f32 %v1703_v13, %v1702_v5 }
 0x627   : > { %v1663_v32 = vmul.f32 %v3955_v23, %v1662_v27 }
 0x628   : > { %v1116_v56 = vmul.f32 0.5, %v1115_v53  ;;  %v1705_v31 = vrot.slane %v1704_v25, 1 }
 0x629   : > { %v1664_v39 = vadd.f32 %v3955_v23, %v1663_v32 }
 0x62a   : > { %v1117_v60 = vsub.f32 1.5, %v1116_v56  ;;  %v4571_v33 = vadd.f32 %v1705_v31, %v1704_v25 }
 0x62b   : > { %v1095_v43 = vpop.xlane.xlu1 %1094  ;;  %v1668_v44 = vsel %vm1667_vm2, %v3955_v23, %v1664_v39 }
 0x62c   : > { %v1099_v48 = vmul.f32 %v1095_v43, %v4492_v2  ;;  %v1673_v49 = vsel %vm1670_vm5, %v1672_v41, %v1668_v44 }
 0x62d   : > { %v1674_v50 = vmul.f32 %v3951_v1, %v1673_v49  ;;  %v1118_v1 = vmul.f32 %v3957_v37, %v1117_v60 }
 0x62e   : > { %v1101_v51 = vadd.f32 1e-05, %v1099_v48 }
 0x62f   : > { %v1690_v54 = vmul.f32 %v1674_v50, %v4459_v26  ;;  %v1122_v8 = vsel %vm1121_vm13, %v3957_v37, %v1118_v1  ;;  %v1288_v50 = vpop.permute.xlu0 %1287 }
 0x630   : > { %3958 = vrsqrt.f32 %v1101_v51  ;;  %vm1109_vm14 = vweird.f32 %v1101_v51  ;;  %v1124_v16 = vmul.f32 %v1122_v8, %v4498_v6 }
 0x631   : > { %v1693_v57 = vsel %vm5548_vm6, %v1690_v54, 0.0 }
 0x632   : > { %v1694_v62 = vrot.slane %v1693_v57, 4 }
 0x634   : > { %v1695_v15 = vadd.f32 %v1694_v62, %v1693_v57 }
 0x636   : > { %v3959_v58 = vpop.eup %3958  ;;  %v1696_v9 = vrot.slane %v1695_v15, 2 }
 0x637   : > { %v1104_v61 = vmul.f32 %v3959_v58, %v1101_v51  ;;  %vm1110_vm12 = vweird.f32 %v3959_v58 }
 0x638   : > { %vm1111_vm15 = vmor %vm1109_vm14, %vm1110_vm12  ;;  %v1697_v23 = vadd.f32 %v1696_v9, %v1695_v15  ;;  %vm1377_vm14 = vcmask 15360  }
 0x639   : > { %v1105_v63 = vmul.f32 %v3959_v58, %v1104_v61 }
 0x63a   : > { %v1698_v30 = vrot.slane %v1697_v23, 1 }
 0x63b   : > { %v1106_v47 = vmul.f32 0.5, %v1105_v63 }
 0x63c   : > { %v4569_v32 = vadd.f32 %v1698_v30, %v1697_v23 }
 0x63d   : > { %v1107_v4 = vsub.f32 1.5, %v1106_v47 }
 0x63e   : > { %v1709_v6 = vsel %vm5555_vm7, %v4571_v33, %v4569_v32 }
 0x63f   : > { %v1108_v7 = vmul.f32 %v3959_v58, %v1107_v4 }
 0x641   : > { %v1112_v10 = vsel %vm1111_vm15, %v3959_v58, %v1108_v7 }
 0x642   : > { %v1123_v14 = vmul.f32 %v1112_v10, %v4514_v21 }
 0x643   : > { %v1128_v17 = vpop.permute.xlu1 %1127 }
 0x644   : > { %v1130_v24 = vmul.f32 %v1128_v17, %v1123_v14  ;;  %v1131_v19 = vmul.f32 %v1128_v17, %v1124_v16 }
 0x646   : > { %v1137_v27 = vadd.f32 %v1135_v22, %v1130_v24  ;;  %v1138_v29 = vadd.f32 %v1135_v22, %v1131_v19 }
 0x648   : > { %1303 = vrot.lane.b32.xlu1 %v1138_v29, %s5546_s26  ;;  %1301 = vrot.lane.b32.xlu2 %v1137_v27, %s5546_s26 }
 0x650   : > { %1710 = vrot.lane.b32.xlu1 %v1709_v6, %s5552_s6  ;;  %1545 = vrot.lane.b32.xlu2 %v4469_v34, %s5552_s6 }
 0x66e   : > { %v1266_v21 = vpop.xlane.xlu1 %1265 }
 0x66f   : > { %v1267_v37 = vmul.f32 %v1266_v21, %v4492_v2  ;;  %v4645_v21 = vld [vmem:[%s5611_s5] sm:$0xff] }
 0x670   : > { %vm819_vm12 = vcmp.gt.f32.partialorder %v4645_v21, 0.5 }
 0x671   : > { %v1268_v38 = vadd.f32 1e-05, %v1267_v37 }
 0x673   : > { %3960 = vrsqrt.f32 %v1268_v38  ;;  %vm1275_vm4 = vweird.f32 %v1268_v38 }
 0x679   : > { %v3961_v39 = vpop.eup %3960 }
 0x67a   : > { %v1270_v40 = vmul.f32 %v3961_v39, %v1268_v38  ;;  %vm1276_vm2 = vweird.f32 %v3961_v39 }
 0x67b   : > { %vm1277_vm5 = vmor %vm1275_vm4, %vm1276_vm2 }
 0x67c   : > { %v1271_v41 = vmul.f32 %v3961_v39, %v1270_v40 }
 0x67e   : > { %v1272_v42 = vmul.f32 0.5, %v1271_v41 }
 0x680   : > { %v1273_v43 = vsub.f32 1.5, %v1272_v42 }
 0x682   : > { %v1274_v44 = vmul.f32 %v3961_v39, %v1273_v43 }
 0x684   : > { %v1278_v45 = vsel %vm1277_vm5, %v3961_v39, %v1274_v44 }
 0x685   : > { %v1280_v48 = vrot.slane %v1278_v45, 1  ;;  %v1283_v49 = vmul.f32 %v1278_v45, %v4504_v11 }
 0x686   : > { %v1295_v54 = vpop.permute.xlu1 %1294 }
 0x687   : > { %v1284_v51 = vmul.f32 %v1280_v48, %v4506_v12  ;;  %v1290_v52 = vmul.f32 %v1288_v50, %v1283_v49 }
 0x689   : > { %v1291_v53 = vmul.f32 %v1288_v50, %v1284_v51  ;;  %v1297_v56 = vadd.f32 %v1295_v54, %v1290_v52 }
 0x68b   : > { %v1298_v55 = vadd.f32 %v1295_v54, %v1291_v53 }
 0x68d   : > { %v1338_v57 = vrot.slane %v1298_v55, 7 }
 0x68f   : > { %v1339_v58 = vsel %vm5555_vm7, %v1338_v57, %v1297_v56 }
 0x690   : > { %1340 = vrot.lane.b32.xlu0 %v1339_v58, %s5546_s26  ;;  %s5612_s26 = sld [smem:[#allocation20_spill]] }
 0x696   : > { %v4661_v38 = vld [vmem:[%s5612_s26 + $0x8] sm:$0xff]  ;;  %v4681_v50 = vld [vmem:[%s5612_s26] sm:$0xff]  ;;  %s5615_s26 = smov 80  }
 0x697   : > { %vm824_vm13 = vcmp.gt.f32.partialorder %v4661_v38, 0.5  ;;  %vm823_vm15 = vcmp.gt.f32.partialorder %v4681_v50, 0.5 }
 0x698   : > { %1543 = vrot.lane.b32.xlu0 %v4459_v26, %s5552_s6 }
 0x6a2   : > { %v1302_v59 = vpop.permute.xlu2 %1301 }
 0x6aa   : > { %v1546_v60 = vpop.permute.xlu2 %1545 }
 0x6ab   : > { %v1552_v11 = vsel %vm1065_vm11, %v1546_v60, 0.0 }
 0x6ac   : > { %1553 = vadd.xlane.f32.xlu2 %v1552_v11 }
 0x6ba   : > { %v1304_v61 = vpop.permute.xlu1 %1303 }
 0x6bb   : > { %3739 = vmatpush.xpose.msk.msrb.mxu2 %vm1065_vm11, %v1304_v61  ;;  %1470 = vmatpush.msrb.mxu0 %v1304_v61 }
 0x6bd   : > { %1471 = vmatpush.msrb.mxu0 %v1302_v59 }
 0x6bf   : > { %3740 = vmatpush.xpose.msk.msrb.mxu2 %vm1065_vm11, %v1302_v59 }
 0x6c2   : > { %3741 = vmatmul.msk.f32.vlgmr.msrb.gmra.mxu2 %vm1065_vm11, %v4459_v26  ;;  %v1711_v12 = vpop.permute.xlu1 %1710 }
 0x6c3   : > { %v1713_v62 = vsel %vm5549_vm8, %v1711_v12, 0.0 }
 0x6c4   : > { %1714 = vadd.xlane.f32.xlu1 %v1713_v62 }
 0x6ca   : > { %3742 = vmatmul.msk.f32.gmra.mxu2 %vm1065_vm11, %v4469_v34 }
 0x702   : > { %v1341_v63 = vpop.permute.xlu0 %1340 }
 0x703   : > { %3743 = vmatpush.xpose.msk.msrb.mxu1 %vm1065_vm11, %v1341_v63  ;;  %3746 = vmatpush.msk.msra.mxu3 %vm5554_vm9, %v1341_v63 }
 0x705   : > { %3852 = vmatpush.msrb.mxu3 %v1304_v61 }
 0x706   : > { %3744 = vmatmul.msk.f32.vlgmr.msrb.gmra.mxu1 %vm1065_vm11, %v4459_v26 }
 0x707   : > { %3853 = vmatpush.msrb.mxu3 %v1302_v59 }
 0x70a   : > { %v1544_v0 = vpop.permute.xlu0 %1543 }
 0x70b   : > { %v1549_v47 = vsel %vm1065_vm11, %v1544_v0, 0.0 }
 0x70c   : > { %1550 = vadd.xlane.f32.xlu0 %v1549_v47 }
 0x70e   : > { %3745 = vmatmul.msk.f32.gmra.mxu1 %vm1065_vm11, %v4469_v34 }
 0x71f   : > { %v1554_v1 = vpop.xlane.xlu2 %1553 }
 0x720   : > { %v1556_v15 = vmul.f32 %v1554_v1, %v4492_v2 }
 0x722   : > { %v4603_v4 = vsub.f32 %v4469_v34, %v1556_v15 }
 0x724   : > { %v1560_v5 = vmul.f32 %v4603_v4, %v4603_v4 }
 0x726   : > { %1565 = vrot.lane.b32.xlu2 %v1560_v5, %s5552_s6 }
 0x737   : > { %v1715_v7 = vpop.xlane.xlu1 %1714 }
 0x738   : > { %v1716_v8 = vmul.f32 %v1715_v7, %v4492_v2 }
 0x73a   : > { %v1718_v9 = vrot.slane %v1716_v8, 1  ;;  %v4610_v10 = vsub.f32 %v4569_v32, %v1716_v8 }
 0x73c   : > { %v4613_v13 = vsub.f32 %v4571_v33, %v1718_v9  ;;  %v1723_v16 = vmul.f32 %v4610_v10, %v4610_v10  ;;  %v4639_v33 = vld [vmem:[%s5611_s5 + $0x8] sm:$0xff]  ;;  %s5632_s5 = sld [smem:[#allocation27_spill]] }
 0x73d   : > { %vm820_vm10 = vcmp.gt.f32.partialorder %v4639_v33, 0.5  ;;  %v3782_v33 = vld [vmem:[%s5507_s15 + $0x30] sm:$0xff] }
 0x73e   : > { %v1724_v14 = vmul.f32 %v4613_v13, %v4613_v13 }
 0x740   : > { %v1727_v17 = vrot.slane %v1724_v14, 7 }
 0x742   : > { %v1728_v22 = vsel %vm5555_vm7, %v1727_v17, %v1723_v16 }
 0x743   : > { %1729 = vrot.lane.b32.xlu1 %v1728_v22, %s5552_s6 }
 0x745   : > { %v1330_v32 = vpop.f32.mrf.mxu2 }
 0x746   : > { %v4656_v37 = vsel %vm819_vm12, %v1330_v32, -3.4028235e+38 }
 0x747   : > { %v1371_v41 = vsel %vm1065_vm11, %v4656_v37, -inf }
 0x74d   : > { %v1333_v6 = vpop.f32.mrf.mxu2 }
 0x77f   : > { %v1551_v23 = vpop.xlane.xlu0 %1550 }
 0x780   : > { %v1555_v24 = vmul.f32 %v1551_v23, %v4492_v2  ;;  %v1566_v27 = vpop.permute.xlu2 %1565 }
 0x781   : > { %v1572_v29 = vsel %vm1065_vm11, %v1566_v27, 0.0 }
 0x782   : > { %v4623_v19 = vsub.f32 %v4459_v26, %v1555_v24 }
 0x784   : > { %v1559_v25 = vmul.f32 %v4623_v19, %v4623_v19 }
 0x786   : > { %1563 = vrot.lane.b32.xlu0 %v1559_v25, %s5552_s6 }
 0x7b0   : > { %1573 = vadd.xlane.f32.xlu0 %v1572_v29 }
 0x7b5   : > { %v1730_v30 = vpop.permute.xlu1 %1729 }
 0x7b6   : > { %v1732_v31 = vsel %vm5549_vm8, %v1730_v30, 0.0 }
 0x7b7   : > { %1733 = vadd.xlane.f32.xlu1 %v1732_v31 }
 0x7c4   : > { %1758 = vrot.lane.b32.xlu0 %v4554_v3, %s5610_s8  ;;  %v1361_v3 = vpop.f32.mrf.mxu1 }
 0x7cc   : > { %1606 = vrot.lane.b32.xlu0 %v4528_v35, %s5610_s8  ;;  %v4649_v35 = vsel %vm820_vm10, %v1333_v6, -3.4028235e+38  ;;  %v1364_v42 = vpop.f32.mrf.mxu1 }
 0x7cd   : > { %v4669_v43 = vsel %vm824_vm13, %v1364_v42, -3.4028235e+38 }
 0x7ce   : > { %v1381_v44 = vsel %vm1377_vm14, %v4669_v43, -inf }
 0x7d0   : > { %1753 = vrot.lane.b32.xlu1 %v4542_v46, %s5610_s8  ;;  %v1374_v46 = vsel %vm1065_vm11, %v4649_v35, -inf }
 0x7f6   : > { %1375 = vmax.xlane.f32.xlu0 %v1374_v46 }
 0x7f8   : > { %v1564_v39 = vpop.permute.xlu0 %1563 }
 0x7f9   : > { %v1569_v40 = vsel %vm1065_vm11, %v1564_v39, 0.0 }
 0x7fa   : > { %1570 = vadd.xlane.f32.xlu2 %v1569_v40  ;;  %1372 = vmax.xlane.f32.xlu1 %v1371_v41 }
 0x802   : > { %1382 = vmax.xlane.f32.xlu1 %v1381_v44 }
 0x812   : > { %1601 = vrot.lane.b32.xlu2 %v4535_v36, %s5610_s8  ;;  %v4686_v36 = vsel %vm823_vm15, %v1361_v3, -3.4028235e+38 }
 0x813   : > { %v1378_v54 = vsel %vm1377_vm14, %v4686_v36, -inf }
 0x81b   : > { %1763 = vrot.lane.b32.xlu1 %v4459_v26, %s5550_s0 }
 0x823   : > { %v1574_v58 = vpop.xlane.xlu0 %1573 }
 0x824   : > { %v1576_v0 = vmul.f32 %v1574_v58, %v4492_v2 }
 0x826   : > { %v1578_v15 = vadd.f32 1e-05, %v1576_v0 }
 0x82a   : > { %v1734_v45 = vpop.xlane.xlu1 %1733 }
 0x82b   : > { %v1735_v48 = vmul.f32 %v1734_v45, %v4492_v2 }
 0x82d   : > { %v1736_v49 = vadd.f32 1e-05, %v1735_v48 }
 0x82f   : > { %3962 = vrsqrt.f32 %v1736_v49  ;;  %vm1743_vm4 = vweird.f32 %v1736_v49 }
 0x830   : > { %3964 = vrsqrt.f32 %v1578_v15 }
 0x835   : > { %v3963_v51 = vpop.eup %3962 }
 0x836   : > { %v1738_v52 = vmul.f32 %v3963_v51, %v1736_v49  ;;  %vm1744_vm2 = vweird.f32 %v3963_v51  ;;  %v1759_v62 = vpop.permute.xlu0 %1758  ;;  %v3965_v8 = vpop.eup %3964 }
 0x837   : > { %vm1745_vm5 = vmor %vm1743_vm4, %vm1744_vm2  ;;  %v1590_v9 = vmul.f32 %v3965_v8, %v1578_v15  ;;  %vm1596_vm2 = vweird.f32 %v3965_v8  ;;  %vm1595_vm4 = vweird.f32 %v1578_v15 }
 0x838   : > { %v1739_v53 = vmul.f32 %v3963_v51, %v1738_v52 }
 0x83a   : > { %v1740_v26 = vmul.f32 0.5, %v1739_v53 }
 0x83b   : > { %1379 = vmax.xlane.f32.xlu2 %v1378_v54 }
 0x83c   : > { %v1741_v55 = vsub.f32 1.5, %v1740_v26 }
 0x83e   : > { %v1742_v56 = vmul.f32 %v3963_v51, %v1741_v55  ;;  %v1607_v30 = vpop.permute.xlu0 %1606 }
 0x840   : > { %v1746_v57 = vsel %vm1745_vm5, %v3963_v51, %v1742_v56  ;;  %vm1597_vm5 = vmor %vm1595_vm4, %vm1596_vm2 }
 0x841   : > { %v1748_v59 = vrot.slane %v1746_v57, 1  ;;  %v1751_v12 = vmul.f32 %v1746_v57, %v4610_v10 }
 0x842   : > { %v1754_v11 = vpop.permute.xlu1 %1753 }
 0x843   : > { %v1752_v60 = vmul.f32 %v1748_v59, %v4613_v13  ;;  %v1756_v47 = vmul.f32 %v1754_v11, %v1751_v12  ;;  %v1591_v13 = vmul.f32 %v3965_v8, %v1590_v9 }
 0x845   : > { %v1757_v61 = vmul.f32 %v1754_v11, %v1752_v60  ;;  %v1761_v5 = vadd.f32 %v1759_v62, %v1756_v47  ;;  %v1592_v14 = vmul.f32 0.5, %v1591_v13  ;;  %v903_v47 = vld [vmem:[%s5507_s15 + $0x8] sm:$0xff] }
 0x846   : > { %1529 = vmatpush.msra.mxu2 %v903_v47 }
 0x847   : > { %v1762_v63 = vadd.f32 %v1759_v62, %v1757_v61  ;;  %v1593_v16 = vsub.f32 1.5, %v1592_v14 }
 0x849   : > { %v1806_v1 = vrot.slane %v1762_v63, 7  ;;  %v1594_v17 = vmul.f32 %v3965_v8, %v1593_v16 }
 0x84b   : > { %v1807_v7 = vsel %vm5555_vm7, %v1806_v1, %v1761_v5  ;;  %v1598_v24 = vsel %vm1597_vm5, %v3965_v8, %v1594_v17  ;;  %v902_v1 = vld [vmem:[%s5507_s15] sm:$0xff] }
 0x84c   : > { %v1600_v25 = vmul.f32 %v1598_v24, %v4603_v4  ;;  %1530 = vmatpush.msra.mxu2 %v902_v1 }
 0x853   : > { %1808 = vrot.lane.b32.xlu2 %v1807_v7, %s5552_s6 }
 0x869   : > { %v1376_v49 = vpop.xlane.xlu0 %1375 }
 0x86d   : > { %v1571_v10 = vpop.xlane.xlu2 %1570  ;;  %v1373_v42 = vpop.xlane.xlu1 %1372 }
 0x86e   : > { %v1575_v22 = vmul.f32 %v1571_v10, %v4492_v2 }
 0x870   : > { %v1577_v23 = vadd.f32 1e-05, %v1575_v22 }
 0x872   : > { %3966 = vrsqrt.f32 %v1577_v23  ;;  %vm1585_vm8 = vweird.f32 %v1577_v23 }
 0x875   : > { %v1602_v27 = vpop.permute.xlu2 %1601  ;;  %v1383_v48 = vpop.xlane.xlu1 %1382 }
 0x876   : > { %v1605_v29 = vmul.f32 %v1602_v27, %v1600_v25  ;;  %v1385_v51 = vmax.f32 %v1376_v49, %v1383_v48 }
 0x878   : > { %v3967_v31 = vpop.eup %3966  ;;  %v1610_v32 = vadd.f32 %v1607_v30, %v1605_v29  ;;  %v1387_v52 = vsub.f32 %v4649_v35, %v1385_v51  ;;  %v1395_v58 = vsub.f32 %v4669_v43, %v1385_v51 }
 0x879   : > { %v1580_v6 = vmul.f32 %v3967_v31, %v1577_v23  ;;  %vm1586_vm6 = vweird.f32 %v3967_v31 }
 0x87a   : > { %1771 = vrot.lane.b32.xlu0 %v1610_v32, %s5552_s6  ;;  %vm1587_vm2 = vmor %vm1585_vm8, %vm1586_vm6  ;;  %v1390_v53 = vmul.f32 1.442695, %v1387_v52  ;;  %v1398_v35 = vmul.f32 1.442695, %v1395_v58 }
 0x87b   : > { %v1581_v3 = vmul.f32 %v3967_v31, %v1580_v6 }
 0x87c   : > { %3968 = vpow2.f32 %v1390_v53 }
 0x87d   : > { %v1582_v46 = vmul.f32 0.5, %v1581_v3 }
 0x87f   : > { %v1583_v39 = vsub.f32 1.5, %v1582_v46 }
 0x881   : > { %v1584_v40 = vmul.f32 %v3967_v31, %v1583_v39 }
 0x882   : > { %1765 = vrot.lane.b32.xlu0 %v4469_v34, %s5550_s0  ;;  %v3969_v26 = vpop.eup %3968  ;;  %s5636_s0 = sld [smem:[#allocation30_spill]] }
 0x883   : > { %v1588_v41 = vsel %vm1587_vm2, %v3967_v31, %v1584_v40  ;;  %v1393_v54 = vsel %vm820_vm10, %v3969_v26, 0.0 }
 0x884   : > { %v1599_v4 = vmul.f32 %v1588_v41, %v4623_v19  ;;  %v1405_v34 = vsel %vm1065_vm11, %v1393_v54, 0.0 }
 0x886   : > { %v1604_v44 = vmul.f32 %v1602_v27, %v1599_v4 }
 0x888   : > { %v1609_v45 = vadd.f32 %v1607_v30, %v1604_v44 }
 0x88a   : > { %1769 = vrot.lane.b32.xlu2 %v1609_v45, %s5552_s6 }
 0x88d   : > { %v1764_v5 = vpop.permute.xlu1 %1763 }
 0x8ac   : > { %1406 = vadd.xlane.f32.xlu0 %v1405_v34 }
 0x8ae   : > { %v1380_v19 = vpop.xlane.xlu2 %1379 }
 0x8af   : > { %v1384_v55 = vmax.f32 %v1373_v42, %v1380_v19 }
 0x8b1   : > { %v1386_v56 = vsub.f32 %v4656_v37, %v1384_v55  ;;  %v1394_v57 = vsub.f32 %v4686_v36, %v1384_v55 }
 0x8b3   : > { %v1388_v59 = vmul.f32 1.442695, %v1386_v56  ;;  %v1396_v60 = vmul.f32 1.442695, %v1394_v57 }
 0x8b5   : > { %3970 = vpow2.f32 %v1388_v59 }
 0x8b6   : > { %3972 = vpow2.f32 %v1396_v60  ;;  %v1809_v11 = vpop.permute.xlu2 %1808 }
 0x8b7   : > { %3760 = vmatpush.msk.msra.mxu0 %vm5554_vm9, %v1809_v11  ;;  %3974 = vpow2.f32 %v1398_v35 }
 0x8bb   : > { %v3971_v61 = vpop.eup %3970 }
 0x8bc   : > { %v3973_v12 = vpop.eup %3972  ;;  %v1392_v62 = vsel %vm819_vm12, %v3971_v61, 0.0 }
 0x8bd   : > { %v1400_v37 = vsel %vm823_vm15, %v3973_v12, 0.0  ;;  %3749 = vmatmul.msk.f32.vlgmr.msrb.gmra.mxu0 %vm1065_vm11, %v1392_v62  ;;  %v1402_v43 = vsel %vm1065_vm11, %v1392_v62, 0.0  ;;  %v3975_v63 = vpop.eup %3974 }
 0x8be   : > { %3747 = vmatmul.msk.f32.vlgmr.msra.gmra.mxu3 %vm1377_vm14, %v1400_v37  ;;  %v1408_v36 = vsel %vm1377_vm14, %v1400_v37, 0.0  ;;  %1403 = vadd.xlane.f32.xlu1 %v1402_v43  ;;  %v1401_v0 = vsel %vm824_vm13, %v3975_v63, 0.0 }
 0x8bf   : > { %3757 = vmatpush.xpose.msk.msra.mxu3 %vm1065_vm11, %v1809_v11  ;;  %1409 = vadd.xlane.f32.xlu2 %v1408_v36  ;;  %v1411_v15 = vsel %vm1377_vm14, %v1401_v0, 0.0 }
 0x8c6   : > { %3748 = vmatmul.msk.f32.gmra.mxu3 %vm1377_vm14, %v1401_v0 }
 0x8c7   : > { %1412 = vadd.xlane.f32.xlu2 %v1411_v15 }
 0x8ce   : > { %3750 = vmatmul.msk.f32.vlgmr.msrb.gmra.mxu3 %vm1065_vm11, %v1393_v54 }
 0x8d6   : > { %3758 = vmatmul.msk.f32.vlgmr.msra.gmra.mxu3 %vm1065_vm11, %v1764_v5 }
 0x8e4   : > { %v1770_v8 = vpop.permute.xlu2 %1769 }
 0x8ec   : > { %v1772_v7 = vpop.permute.xlu0 %1771 }
 0x8ed   : > { %3753 = vmatpush.xpose.msk.msra.mxu1 %vm1065_vm11, %v1772_v7  ;;  %1936 = vmatpush.msrb.mxu2 %v1772_v7 }
 0x8ef   : > { %1937 = vmatpush.msrb.mxu2 %v1770_v8 }
 0x8f1   : > { %3754 = vmatpush.xpose.msk.msra.mxu1 %vm1065_vm11, %v1770_v8 }
 0x8f4   : > { %v1766_v9 = vpop.permute.xlu0 %1765  ;;  %3755 = vmatmul.msk.f32.vlgmr.msra.gmra.mxu1 %vm1065_vm11, %v1764_v5 }
 0x8f5   : > { %3759 = vmatmul.msk.f32.gmra.mxu3 %vm1065_vm11, %v1766_v9 }
 0x8fc   : > { %3756 = vmatmul.msk.f32.gmra.mxu1 %vm1065_vm11, %v1766_v9 }
 0x91f   : > { %v1407_v10 = vpop.xlane.xlu0 %1406 }
 0x931   : > { %v1404_v13 = vpop.xlane.xlu1 %1403 }
 0x932   : > { %v1410_v14 = vpop.xlane.xlu2 %1409 }
 0x933   : > { %v1414_v16 = vadd.f32 %v1410_v14, %v1404_v13 }
 0x935   : > { %3976 = vrcp.f32 %v1414_v16  ;;  %v1490_v27 = vand.u32 2147483648, %v1414_v16  ;;  %v1488_v30 = vand.u32 2147483647, %v1414_v16  ;;  %vm1484_vm6 = vweird.f32 %v1414_v16 }
 0x937   : > { %v1491_v46 = vor.u32 1.1754944e-38, %v1490_v27  ;;  %vm1489_vm5 = vcmp.eq.f32.partialorder %v1488_v30, 8.507059e+37 }
 0x93a   : > { %v1413_v17 = vpop.xlane.xlu2 %1412  ;;  %v1473_v3 = vpop.f32.mrf.mxu0 }
 0x93b   : > { %v3977_v22 = vpop.eup %3976  ;;  %v1415_v23 = vadd.f32 %v1413_v17, %v1407_v10 }
 0x93c   : > { %v1480_v24 = vmul.f32 %v3977_v22, %v1414_v16  ;;  %vm1485_vm8 = vweird.f32 %v3977_v22 }
 0x93d   : > { %3978 = vrcp.f32 %v1415_v23  ;;  %vm1486_vm4 = vmor %vm1484_vm6, %vm1485_vm8  ;;  %v1505_v51 = vand.u32 2147483648, %v1415_v23  ;;  %vm1499_vm9 = vweird.f32 %v1415_v23  ;;  %v1503_v52 = vand.u32 2147483647, %v1415_v23 }
 0x93e   : > { %v1481_v25 = vsub.f32 1.0, %v1480_v24 }
 0x93f   : > { %v1506_v54 = vor.u32 1.1754944e-38, %v1505_v51  ;;  %vm1504_vm8 = vcmp.eq.f32.partialorder %v1503_v52, 8.507059e+37  ;;  %v4081_v52 = vld [vmem:[%s5598_s29 + $0x10] sm:$0xff] }
 0x940   : > { %v1482_v29 = vmul.f32 %v3977_v22, %v1481_v25 }
 0x941   : > { %v1442_v31 = vpop.f32.mrf.mxu3 }
 0x942   : > { %v1483_v32 = vadd.f32 %v3977_v22, %v1482_v29  ;;  %v1474_v40 = vadd.f32 %v1473_v3, %v1442_v31 }
 0x943   : > { %v3979_v6 = vpop.eup %3978 }
 0x944   : > { %v1495_v39 = vmul.f32 %v3979_v6, %v1415_v23  ;;  %v1487_v41 = vsel %vm1486_vm4, %v3977_v22, %v1483_v32  ;;  %vm1500_vm2 = vweird.f32 %v3979_v6 }
 0x945   : > { %v1492_v4 = vsel %vm1489_vm5, %v1491_v46, %v1487_v41  ;;  %vm1501_vm7 = vmor %vm1499_vm9, %vm1500_vm2  ;;  %v905_v46 = vld [vmem:[%s5507_s15 + $0x18] sm:$0xff]  ;;  %v4077_v41 = vld [vmem:[%s5598_s29 + $0x30] sm:$0xff] }
 0x946   : > { %v1496_v42 = vsub.f32 1.0, %v1495_v39  ;;  %v1493_v44 = vmul.f32 %v1492_v4, %v1474_v40  ;;  %1995 = vmatpush.msrb.mxu1 %v905_v46  ;;  %v904_v39 = vld [vmem:[%s5507_s15 + $0x10] sm:$0xff]  ;;  %v4076_v40 = vld [vmem:[%s5598_s29 + $0x38] sm:$0xff]  ;;  %v4078_v4 = vld [vmem:[%s5598_s29 + $0x28] sm:$0xff] }
 0x948   : > { %3751 = vmatmul.msk.f32.vlgmr.msra.gmra.mxu2 %vm1065_vm11, %v1493_v44  ;;  %v1497_v45 = vmul.f32 %v3979_v6, %v1496_v42  ;;  %1996 = vmatpush.msrb.mxu1 %v904_v39  ;;  %v4079_v42 = vld [vmem:[%s5598_s29 + $0x20] sm:$0xff] }
 0x949   : > { %v1445_v48 = vpop.f32.mrf.mxu3 }
 0x94a   : > { %v1498_v49 = vadd.f32 %v3979_v6, %v1497_v45  ;;  %2379 = vmatpush.msra.mxu1 %v4076_v40 }
 0x94c   : > { %v1502_v53 = vsel %vm1501_vm7, %v3979_v6, %v1498_v49  ;;  %2380 = vmatpush.msra.mxu1 %v4077_v41 }
 0x94d   : > { %v1507_v19 = vsel %vm1504_vm8, %v1506_v54, %v1502_v53  ;;  %v4082_v53 = vld [vmem:[%s5598_s29 + $0x8] sm:$0xff] }
 0x94e   : > { %2381 = vmatpush.msra.mxu1 %v4078_v4 }
 0x950   : > { %2382 = vmatpush.msra.mxu1 %v4079_v42 }
 0x951   : > { %v1476_v26 = vpop.f32.mrf.mxu3 }
 0x952   : > { %v1477_v34 = vadd.f32 %v1476_v26, %v1445_v48  ;;  %v4080_v48 = vld [vmem:[%s5598_s29 + $0x18] sm:$0xff]  ;;  %v4083_v26 = vld [vmem:[%s5598_s29] sm:$0xff] }
 0x953   : > { %2383 = vmatpush.msra.mxu1 %v4080_v48 }
 0x954   : > { %v1508_v55 = vmul.f32 %v1507_v19, %v1477_v34 }
 0x955   : > { %2384 = vmatpush.msra.mxu1 %v4081_v52  ;;  %v910_v52 = vld [vmem:[%s5511_s19 + $0x8] sm:$0xff] }
 0x956   : > { %3752 = vmatmul.msk.f32.gmra.mxu2 %vm1065_vm11, %v1508_v55 }
 0x957   : > { %2385 = vmatpush.msra.mxu1 %v4082_v53  ;;  %v909_v53 = vld [vmem:[%s5511_s19] sm:$0xff] }
 0x959   : > { %v1829_v56 = vpop.f32.mrf.mxu3  ;;  %2386 = vmatpush.msra.mxu1 %v4083_v26 }
 0x95a   : > { %v1837_v57 = vsel %vm823_vm15, %v1829_v56, -3.4028235e+38 }
 0x95b   : > { %v1845_v58 = vsel %vm1377_vm14, %v1837_v57, -inf }
 0x95c   : > { %1846 = vmax.xlane.f32.xlu0 %v1845_v58 }
 0x971   : > { %v1798_v59 = vpop.f32.mrf.mxu1 }
 0x972   : > { %v1835_v60 = vsel %vm819_vm12, %v1798_v59, -3.4028235e+38 }
 0x973   : > { %v1839_v35 = vsel %vm1065_vm11, %v1835_v60, -inf }
 0x974   : > { %1840 = vmax.xlane.f32.xlu1 %v1839_v35 }
 0x978   : > { %v1832_v11 = vpop.f32.mrf.mxu3 }
 0x979   : > { %v1838_v61 = vsel %vm824_vm13, %v1832_v11, -3.4028235e+38  ;;  %v1801_v12 = vpop.f32.mrf.mxu1 }
 0x97a   : > { %v1836_v62 = vsel %vm820_vm10, %v1801_v12, -3.4028235e+38  ;;  %v1848_v37 = vsel %vm1377_vm14, %v1838_v61, -inf }
 0x97b   : > { %v1842_v43 = vsel %vm1065_vm11, %v1836_v62, -inf }
 0x97c   : > { %1849 = vmax.xlane.f32.xlu1 %v1848_v37  ;;  %1843 = vmax.xlane.f32.xlu2 %v1842_v43 }
 0x9cb   : > { %v1532_v44 = vpop.f32.mrf.mxu2 }
 0x9cf   : > { %v1847_v36 = vpop.xlane.xlu0 %1846 }
 0x9d9   : > { %v1535_v54 = vpop.f32.mrf.mxu2 }
 0x9e7   : > { %v1841_v63 = vpop.xlane.xlu1 %1840 }
 0x9e8   : > { %v1851_v0 = vmax.f32 %v1841_v63, %v1847_v36 }
 0x9ea   : > { %v1853_v47 = vsub.f32 %v1835_v60, %v1851_v0  ;;  %v1861_v1 = vsub.f32 %v1837_v57, %v1851_v0 }
 0x9ec   : > { %v1855_v15 = vmul.f32 1.442695, %v1853_v47  ;;  %v1863_v5 = vmul.f32 1.442695, %v1861_v1 }
 0x9ee   : > { %3980 = vpow2.f32 %v1855_v15 }
 0x9ef   : > { %3982 = vpow2.f32 %v1863_v5  ;;  %v1844_v7 = vpop.xlane.xlu2 %1843  ;;  %v1850_v8 = vpop.xlane.xlu1 %1849 }
 0x9f0   : > { %v1852_v9 = vmax.f32 %v1844_v7, %v1850_v8 }
 0x9f2   : > { %v1854_v13 = vsub.f32 %v1836_v62, %v1852_v9  ;;  %v1862_v14 = vsub.f32 %v1838_v61, %v1852_v9 }
 0x9f4   : > { %v3981_v16 = vpop.eup %3980  ;;  %v1857_v10 = vmul.f32 1.442695, %v1854_v13  ;;  %v1865_v17 = vmul.f32 1.442695, %v1862_v14 }
 0x9f5   : > { %v3983_v22 = vpop.eup %3982  ;;  %v1859_v23 = vsel %vm819_vm12, %v3981_v16, 0.0 }
 0x9f6   : > { %3984 = vpow2.f32 %v1857_v10  ;;  %v1867_v24 = vsel %vm823_vm15, %v3983_v22, 0.0  ;;  %3763 = vmatmul.msk.f32.vlgmr.msrb.gmra.mxu2 %vm1065_vm11, %v1859_v23  ;;  %v1869_v25 = vsel %vm1065_vm11, %v1859_v23, 0.0  ;;  %v3912_v23 = vld [vmem:[%s5508_s16] ss:$0 sm:$0xff] }
 0x9f7   : > { %3986 = vpow2.f32 %v1865_v17  ;;  %3761 = vmatmul.msk.f32.vlgmr.msra.gmra.mxu0 %vm1377_vm14, %v1867_v24  ;;  %v1875_v27 = vsel %vm1377_vm14, %v1867_v24, 0.0  ;;  %1870 = vadd.xlane.f32.xlu0 %v1869_v25  ;;  %v1541_v24 = vadd.f32 %v3912_v23, %v1532_v44 }
 0x9f8   : > { %1876 = vadd.xlane.f32.xlu2 %v1875_v27 }
 0x9fc   : > { %v3985_v29 = vpop.eup %3984 }
 0x9fd   : > { %v3987_v30 = vpop.eup %3986  ;;  %v1860_v31 = vsel %vm820_vm10, %v3985_v29, 0.0 }
 0x9fe   : > { %v1868_v32 = vsel %vm824_vm13, %v3987_v30, 0.0  ;;  %3764 = vmatmul.msk.f32.gmra.mxu2 %vm1065_vm11, %v1860_v31  ;;  %v1872_v6 = vsel %vm1065_vm11, %v1860_v31, 0.0  ;;  %v1542_v31 = vadd.f32 %v3912_v23, %v1535_v54 }
 0x9ff   : > { %3762 = vmatmul.msk.f32.gmra.mxu0 %vm1377_vm14, %v1868_v32  ;;  %v1878_v3 = vsel %vm1377_vm14, %v1868_v32, 0.0  ;;  %1873 = vadd.xlane.f32.xlu1 %v1872_v6 }
 0xa00   : > { %1879 = vadd.xlane.f32.xlu0 %v1878_v3 }
 0xa6a   : > { %v1871_v45 = vpop.xlane.xlu0 %1870 }
 0xa6b   : > { %v1877_v49 = vpop.xlane.xlu2 %1876 }
 0xa6c   : > { %v1881_v51 = vadd.f32 %v1877_v49, %v1871_v45  ;;  %v912_v49 = vld [vmem:[%s5511_s19 + $0x18] sm:$0xff] }
 0xa6d   : > { %2083 = vmatpush.msrb.mxu3 %v912_v49  ;;  %v928_v49 = vld [vmem:[%s5513_s21 + $0x70] sm:$0xff] }
 0xa6e   : > { %3988 = vrcp.f32 %v1881_v51  ;;  %v1956_v59 = vand.u32 2147483648, %v1881_v51  ;;  %v1954_v11 = vand.u32 2147483647, %v1881_v51  ;;  %vm1950_vm9 = vweird.f32 %v1881_v51 }
 0xa70   : > { %v1957_v37 = vor.u32 1.1754944e-38, %v1956_v59  ;;  %vm1955_vm4 = vcmp.eq.f32.partialorder %v1954_v11, 8.507059e+37 }
 0xa72   : > { %v1874_v34 = vpop.xlane.xlu1 %1873 }
 0xa73   : > { %v1880_v19 = vpop.xlane.xlu0 %1879 }
 0xa74   : > { %v3989_v55 = vpop.eup %3988  ;;  %v1882_v56 = vadd.f32 %v1880_v19, %v1874_v34  ;;  %v1908_v61 = vpop.f32.mrf.mxu0 }
 0xa75   : > { %v1946_v57 = vmul.f32 %v3989_v55, %v1881_v51  ;;  %vm1951_vm7 = vweird.f32 %v3989_v55  ;;  %v911_v51 = vld [vmem:[%s5511_s19 + $0x10] sm:$0xff] }
 0xa76   : > { %3990 = vrcp.f32 %v1882_v56  ;;  %vm1952_vm6 = vmor %vm1950_vm9, %vm1951_vm7  ;;  %v1971_v15 = vand.u32 2147483648, %v1882_v56  ;;  %v1969_v7 = vand.u32 2147483647, %v1882_v56  ;;  %vm1965_vm2 = vweird.f32 %v1882_v56  ;;  %2084 = vmatpush.msrb.mxu3 %v911_v51 }
 0xa77   : > { %v1947_v58 = vsub.f32 1.0, %v1946_v57 }
 0xa78   : > { %v1972_v14 = vor.u32 1.1754944e-38, %v1971_v15  ;;  %vm1970_vm7 = vcmp.eq.f32.partialorder %v1969_v7, 8.507059e+37  ;;  %2085 = vmatpush.msrb.mxu3 %v910_v52 }
 0xa79   : > { %v1939_v60 = vpop.f32.mrf.mxu2  ;;  %v1948_v35 = vmul.f32 %v3989_v55, %v1947_v58 }
 0xa7a   : > { %v1940_v36 = vadd.f32 %v1939_v60, %v1908_v61  ;;  %2086 = vmatpush.msrb.mxu3 %v909_v53 }
 0xa7b   : > { %v1949_v12 = vadd.f32 %v3989_v55, %v1948_v35 }
 0xa7c   : > { %v3991_v62 = vpop.eup %3990  ;;  %v1911_v13 = vpop.f32.mrf.mxu0 }
 0xa7d   : > { %v1961_v43 = vmul.f32 %v3991_v62, %v1882_v56  ;;  %v1953_v63 = vsel %vm1952_vm6, %v3989_v55, %v1949_v12  ;;  %vm1966_vm5 = vweird.f32 %v3991_v62 }
 0xa7e   : > { %v1958_v0 = vsel %vm1955_vm4, %v1957_v37, %v1953_v63  ;;  %vm1967_vm8 = vmor %vm1965_vm2, %vm1966_vm5  ;;  %v3914_v63 = vld [vmem:[%s5510_s18] ss:$0 sm:$0xff] }
 0xa7f   : > { %v1962_v47 = vsub.f32 1.0, %v1961_v43  ;;  %v1959_v1 = vmul.f32 %v1958_v0, %v1940_v36 }
 0xa81   : > { %3765 = vmatmul.msk.f32.vlgmr.msrb.gmra.mxu1 %vm1065_vm11, %v1959_v1  ;;  %v1963_v5 = vmul.f32 %v3991_v62, %v1962_v47  ;;  %v1942_v8 = vpop.f32.mrf.mxu2 }
 0xa82   : > { %v1943_v16 = vadd.f32 %v1942_v8, %v1911_v13 }
 0xa83   : > { %v1964_v9 = vadd.f32 %v3991_v62, %v1963_v5 }
 0xa85   : > { %v1968_v10 = vsel %vm1967_vm8, %v3991_v62, %v1964_v9  ;;  %v3913_v62 = vld [vmem:[%s5509_s17] ss:$0 sm:$0xff] }
 0xa86   : > { %v1973_v17 = vsel %vm1970_vm7, %v1972_v14, %v1968_v10  ;;  %v3915_v14 = vld [vmem:[%s5512_s20] ss:$0 sm:$0xff] }
 0xa87   : > { %v1974_v22 = vmul.f32 %v1973_v17, %v1943_v16 }
 0xa89   : > { %3766 = vmatmul.msk.f32.gmra.mxu1 %vm1065_vm11, %v1974_v22 }
 0xafe   : > { %v1998_v25 = vpop.f32.mrf.mxu1 }
 0xaff   : > { %v2004_v27 = vadd.f32 %v1998_v25, %v1541_v24 }
 0xb01   : > { %v4802_v29 = vadd.f32 %v2004_v27, %v4382_v18 }
 0xb03   : > { %v2008_v30 = vsel %vm931_vm3, %v4802_v29, 0.0 }
 0xb04   : > { %2009 = vadd.xlane.f32.xlu2 %v2008_v30 }
 0xb06   : > { %v2001_v32 = vpop.f32.mrf.mxu1 }
 0xb07   : > { %v2005_v6 = vadd.f32 %v2001_v32, %v1542_v31 }
 0xb09   : > { %v4807_v3 = vadd.f32 %v2005_v6, %v4386_v20 }
 0xb0b   : > { %v2011_v46 = vsel %vm931_vm3, %v4807_v3, 0.0 }
 0xb0c   : > { %2012 = vadd.xlane.f32.xlu1 %v2011_v46 }
 0xb77   : > { %v2010_v39 = vpop.xlane.xlu2 %2009 }
 0xb78   : > { %v2014_v40 = vmul.f32 %v2010_v39, %v4390_v28 }
 0xb7a   : > { %v2016_v18 = vsub.f32 %v4802_v29, %v2014_v40 }
 0xb7c   : > { %v2018_v41 = vmul.f32 %v2016_v18, %v2016_v18 }
 0xb7e   : > { %v2020_v4 = vsel %vm931_vm3, %v2018_v41, 0.0 }
 0xb7f   : > { %2021 = vadd.xlane.f32.xlu0 %v2020_v4  ;;  %v2013_v42 = vpop.xlane.xlu1 %2012 }
 0xb80   : > { %v2015_v44 = vmul.f32 %v2013_v42, %v4390_v28 }
 0xb82   : > { %v2017_v45 = vsub.f32 %v4807_v3, %v2015_v44  ;;  %v929_v44 = vld [vmem:[%s5513_s21 + $0x78] sm:$0xff] }
 0xb83   : > { %2194 = vmatpush.msrb.mxu0 %v929_v44 }
 0xb84   : > { %v2019_v20 = vmul.f32 %v2017_v45, %v2017_v45 }
 0xb85   : > { %2195 = vmatpush.msrb.mxu0 %v928_v49 }
 0xb86   : > { %v2023_v48 = vsel %vm931_vm3, %v2019_v20, 0.0 }
 0xb87   : > { %2024 = vadd.xlane.f32.xlu2 %v2023_v48 }
 0xbf2   : > { %v2022_v26 = vpop.xlane.xlu0 %2021 }
 0xbf3   : > { %v2026_v54 = vmul.f32 %v2022_v26, %v4390_v28  ;;  %v927_v26 = vld [vmem:[%s5513_s21 + $0x68] sm:$0xff] }
 0xbf4   : > { %2196 = vmatpush.msrb.mxu0 %v927_v26 }
 0xbf5   : > { %v2028_v34 = vadd.f32 1e-05, %v2026_v54 }
 0xbf7   : > { %3992 = vrsqrt.f32 %v2028_v34  ;;  %vm2036_vm6 = vweird.f32 %v2028_v34 }
 0xbfa   : > { %v2025_v19 = vpop.xlane.xlu2 %2024 }
 0xbfb   : > { %v2027_v55 = vmul.f32 %v2025_v19, %v4390_v28 }
 0xbfd   : > { %v3993_v56 = vpop.eup %3992  ;;  %v2029_v57 = vadd.f32 1e-05, %v2027_v55  ;;  %v926_v55 = vld [vmem:[%s5513_s21 + $0x60] sm:$0xff] }
 0xbfe   : > { %v2031_v58 = vmul.f32 %v3993_v56, %v2028_v34  ;;  %vm2037_vm9 = vweird.f32 %v3993_v56  ;;  %2197 = vmatpush.msrb.mxu0 %v926_v55 }
 0xbff   : > { %3994 = vrsqrt.f32 %v2029_v57  ;;  %vm2038_vm4 = vmor %vm2036_vm6, %vm2037_vm9  ;;  %vm2046_vm2 = vweird.f32 %v2029_v57 }
 0xc00   : > { %v2032_v59 = vmul.f32 %v3993_v56, %v2031_v58 }
 0xc02   : > { %v2033_v60 = vmul.f32 0.5, %v2032_v59  ;;  %v925_v59 = vld [vmem:[%s5513_s21 + $0x58] sm:$0xff] }
 0xc03   : > { %2198 = vmatpush.msrb.mxu0 %v925_v59 }
 0xc04   : > { %v2034_v35 = vsub.f32 1.5, %v2033_v60 }
 0xc05   : > { %v3995_v11 = vpop.eup %3994 }
 0xc06   : > { %v2035_v61 = vmul.f32 %v3993_v56, %v2034_v35  ;;  %v2041_v12 = vmul.f32 %v3995_v11, %v2029_v57  ;;  %vm2047_vm5 = vweird.f32 %v3995_v11 }
 0xc07   : > { %vm2048_vm8 = vmor %vm2046_vm2, %vm2047_vm5 }
 0xc08   : > { %v2039_v37 = vsel %vm2038_vm4, %v3993_v56, %v2035_v61  ;;  %v2042_v43 = vmul.f32 %v3995_v11, %v2041_v12  ;;  %v924_v61 = vld [vmem:[%s5513_s21 + $0x50] sm:$0xff] }
 0xc09   : > { %v2050_v36 = vmul.f32 %v2039_v37, %v2016_v18  ;;  %2199 = vmatpush.msrb.mxu0 %v924_v61 }
 0xc0a   : > { %v2043_v0 = vmul.f32 0.5, %v2042_v43  ;;  %v923_v43 = vld [vmem:[%s5513_s21 + $0x48] sm:$0xff] }
 0xc0b   : > { %v2055_v47 = vmul.f32 %v3913_v62, %v2050_v36  ;;  %2200 = vmatpush.msrb.mxu0 %v923_v43 }
 0xc0c   : > { %v2044_v1 = vsub.f32 1.5, %v2043_v0  ;;  %v922_v0 = vld [vmem:[%s5513_s21 + $0x40] sm:$0xff] }
 0xc0d   : > { %v2060_v15 = vadd.f32 %v3914_v63, %v2055_v47  ;;  %2201 = vmatpush.msrb.mxu0 %v922_v0 }
 0xc0e   : > { %v2045_v5 = vmul.f32 %v3995_v11, %v2044_v1 }
 0xc0f   : > { %3767 = vmatmul.msk.f32.vlgmr.msrb.gmra.mxu3 %vm931_vm3, %v2060_v15  ;;  %v921_v15 = vld [vmem:[%s5513_s21 + $0x38] sm:$0xff] }
 0xc10   : > { %v2049_v7 = vsel %vm2048_vm8, %v3995_v11, %v2045_v5  ;;  %2202 = vmatpush.msrb.mxu0 %v921_v15 }
 0xc11   : > { %v2051_v8 = vmul.f32 %v2049_v7, %v2017_v45 }
 0xc13   : > { %v2056_v9 = vmul.f32 %v3913_v62, %v2051_v8  ;;  %v920_v8 = vld [vmem:[%s5513_s21 + $0x30] sm:$0xff] }
 0xc14   : > { %2203 = vmatpush.msrb.mxu0 %v920_v8 }
 0xc15   : > { %v2061_v13 = vadd.f32 %v3914_v63, %v2056_v9 }
 0xc17   : > { %3768 = vmatmul.msk.f32.gmra.mxu3 %vm931_vm3, %v2061_v13 }
 0xc92   : > { %v2088_v16 = vpop.f32.mrf.mxu3 }
 0xc93   : > { %v4842_v10 = vadd.f32 %v3915_v14, %v2088_v16 }
 0xc95   : > { %v4845_v17 = vmul.f32 0.70710677, %v4842_v10 }
 0xc97   : > { %v4848_v22 = vand.u32 2147483647, %v4845_v17 }
 0xc99   : > { %v2100_v23 = vmul.f32 0.5, %v4848_v22 }
 0xc9a   : > { %v2091_v24 = vpop.f32.mrf.mxu3 }
 0xc9b   : > { %v2102_v25 = vadd.f32 1.0, %v2100_v23  ;;  %v4851_v27 = vadd.f32 %v3915_v14, %v2091_v24  ;;  %v919_v14 = vld [vmem:[%s5513_s21 + $0x28] sm:$0xff]  ;;  %v918_v24 = vld [vmem:[%s5513_s21 + $0x20] sm:$0xff] }
 0xc9c   : > { %2204 = vmatpush.msrb.mxu0 %v919_v14 }
 0xc9d   : > { %3996 = vrcp.f32 %v2102_v25  ;;  %v4854_v30 = vmul.f32 0.70710677, %v4851_v27  ;;  %v2115_v18 = vand.u32 2147483648, %v2102_v25  ;;  %v2113_v4 = vand.u32 2147483647, %v2102_v25 }
 0xc9e   : > { %vm2109_vm9 = vweird.f32 %v2102_v25  ;;  %2205 = vmatpush.msrb.mxu0 %v918_v24 }
 0xc9f   : > { %v4857_v31 = vand.u32 2147483647, %v4854_v30  ;;  %v2116_v45 = vor.u32 1.1754944e-38, %v2115_v18  ;;  %vm2114_vm4 = vcmp.eq.f32.partialorder %v2113_v4, 8.507059e+37  ;;  %v915_v4 = vld [vmem:[%s5513_s21 + $0x8] sm:$0xff] }
 0xca1   : > { %v2101_v32 = vmul.f32 0.5, %v4857_v31 }
 0xca3   : > { %v3997_v6 = vpop.eup %3996  ;;  %v2103_v39 = vadd.f32 1.0, %v2101_v32 }
 0xca4   : > { %v2105_v46 = vmul.f32 %v3997_v6, %v2102_v25  ;;  %vm2110_vm7 = vweird.f32 %v3997_v6 }
 0xca5   : > { %3998 = vrcp.f32 %v2103_v39  ;;  %vm2111_vm6 = vmor %vm2109_vm9, %vm2110_vm7  ;;  %v2130_v19 = vand.u32 2147483648, %v2103_v39  ;;  %v2128_v57 = vand.u32 2147483647, %v2103_v39  ;;  %vm2124_vm2 = vweird.f32 %v2103_v39 }
 0xca6   : > { %v2106_v40 = vsub.f32 1.0, %v2105_v46  ;;  %vm2184_vm9 = vcmp.ge.f32.partialorder %v4845_v17, 0.0 }
 0xca7   : > { %v2131_v11 = vor.u32 1.1754944e-38, %v2130_v19  ;;  %vm2129_vm7 = vcmp.eq.f32.partialorder %v2128_v57, 8.507059e+37 }
 0xca8   : > { %v2107_v41 = vmul.f32 %v3997_v6, %v2106_v40  ;;  %v916_v40 = vld [vmem:[%s5513_s21 + $0x10] sm:$0xff] }
 0xcaa   : > { %v2108_v42 = vadd.f32 %v3997_v6, %v2107_v41 }
 0xcab   : > { %v3999_v20 = vpop.eup %3998 }
 0xcac   : > { %v2112_v48 = vsel %vm2111_vm6, %v3997_v6, %v2108_v42  ;;  %v2120_v52 = vmul.f32 %v3999_v20, %v2103_v39  ;;  %vm2125_vm5 = vweird.f32 %v3999_v20  ;;  %v917_v6 = vld [vmem:[%s5513_s21 + $0x18] sm:$0xff]  ;;  %v914_v42 = vld [vmem:[%s5513_s21] sm:$0xff]  ;;  %vm2185_vm6 = vcmp.ge.f32.partialorder %v4854_v30, 0.0 }
 0xcad   : > { %v4866_v51 = vsel %vm2114_vm4, %v2116_v45, %v2112_v48  ;;  %vm2126_vm8 = vmor %vm2124_vm2, %vm2125_vm5  ;;  %2206 = vmatpush.msrb.mxu0 %v917_v6 }
 0xcae   : > { %v2134_v53 = vmul.f32 0.17087276, %v4866_v51  ;;  %v2121_v54 = vsub.f32 1.0, %v2120_v52 }
 0xcaf   : > { %2207 = vmatpush.msrb.mxu0 %v916_v40 }
 0xcb0   : > { %v2136_v34 = vadd.f32 -0.82215226, %v2134_v53  ;;  %v2122_v56 = vmul.f32 %v3999_v20, %v2121_v54  ;;  %v2170_v53 = vsub.f32 0.0, %v4848_v22 }
 0xcb1   : > { %2208 = vmatpush.msrb.mxu0 %v915_v4 }
 0xcb2   : > { %v2138_v58 = vmul.f32 %v2136_v34, %v4866_v51  ;;  %v2123_v60 = vadd.f32 %v3999_v20, %v2122_v56  ;;  %v2172_v55 = vmul.f32 %v2170_v53, %v4848_v22 }
 0xcb3   : > { %2209 = vmatpush.msrb.mxu0 %v914_v42 }
 0xcb4   : > { %v2140_v35 = vadd.f32 1.4885159, %v2138_v58  ;;  %v2127_v12 = vsel %vm2126_vm8, %v3999_v20, %v2123_v60 }
 0xcb5   : > { %v4883_v37 = vsel %vm2129_vm7, %v2131_v11, %v2127_v12 }
 0xcb6   : > { %v2142_v62 = vmul.f32 %v2140_v35, %v4866_v51  ;;  %v2135_v36 = vmul.f32 0.17087276, %v4883_v37  ;;  %v2171_v35 = vsub.f32 0.0, %v4857_v31 }
 0xcb8   : > { %v2144_v63 = vadd.f32 -1.135204, %v2142_v62  ;;  %v2137_v47 = vadd.f32 -0.82215226, %v2135_v36  ;;  %v2173_v12 = vmul.f32 %v2171_v35, %v4857_v31  ;;  %v3917_v35 = vld [vmem:[%s5599_s27 + $0x1] ss:$0 sm:$0xff] }
 0xcba   : > { %v2146_v1 = vmul.f32 %v2144_v63, %v4866_v51  ;;  %v2139_v5 = vmul.f32 %v2137_v47, %v4883_v37 }
 0xcbc   : > { %v2148_v7 = vadd.f32 0.27886808, %v2146_v1  ;;  %v2141_v9 = vadd.f32 1.4885159, %v2139_v5  ;;  %v2094_v1 = vmul.f32 0.5, %v4842_v10 }
 0xcbd   : > { %v3916_v10 = vld [vmem:[%s5514_s22] ss:$0 sm:$0xff] }
 0xcbe   : > { %v2150_v13 = vmul.f32 %v2148_v7, %v4866_v51  ;;  %v2143_v16 = vmul.f32 %v2141_v9, %v4883_v37 }
 0xcc0   : > { %v2152_v23 = vadd.f32 -0.18628806, %v2150_v13  ;;  %v2145_v25 = vadd.f32 -1.135204, %v2143_v16  ;;  %v2095_v13 = vmul.f32 0.5, %v4851_v27 }
 0xcc2   : > { %v2154_v32 = vmul.f32 %v2152_v23, %v4866_v51  ;;  %v2147_v46 = vmul.f32 %v2145_v25, %v4883_v37 }
 0xcc4   : > { %v2156_v39 = vadd.f32 0.09678418, %v2154_v32  ;;  %v2149_v18 = vadd.f32 0.27886808, %v2147_v46 }
 0xcc6   : > { %v2158_v41 = vmul.f32 %v2156_v39, %v4866_v51  ;;  %v2151_v44 = vmul.f32 %v2149_v18, %v4883_v37 }
 0xcc8   : > { %v2160_v45 = vadd.f32 0.37409195, %v2158_v41  ;;  %v2153_v20 = vadd.f32 -0.18628806, %v2151_v44  ;;  %v3774_v44 = vld [vmem:[%s5597_s1 + $0x38] sm:$0xff] }
 0xcc9   : > { %2352 = vmatpush.msra.mxu2 %v3774_v44 }
 0xcca   : > { %v2162_v48 = vmul.f32 %v2160_v45, %v4866_v51  ;;  %v2155_v49 = vmul.f32 %v2153_v20, %v4883_v37  ;;  %v3773_v45 = vld [vmem:[%s5597_s1 + $0x30] sm:$0xff]  ;;  %v3772_v20 = vld [vmem:[%s5597_s1 + $0x28] sm:$0xff] }
 0xccb   : > { %2353 = vmatpush.msra.mxu2 %v3773_v45 }
 0xccc   : > { %v2164_v52 = vadd.f32 1.0000237, %v2162_v48  ;;  %v2157_v26 = vadd.f32 0.09678418, %v2155_v49  ;;  %v3771_v48 = vld [vmem:[%s5597_s1 + $0x20] sm:$0xff] }
 0xccd   : > { %2354 = vmatpush.msra.mxu2 %v3772_v20 }
 0xcce   : > { %v2166_v54 = vmul.f32 %v2164_v52, %v4866_v51  ;;  %v2159_v34 = vmul.f32 %v2157_v26, %v4883_v37 }
 0xccf   : > { %2355 = vmatpush.msra.mxu2 %v3771_v48 }
 0xcd0   : > { %v2168_v19 = vadd.f32 -1.2655122, %v2166_v54  ;;  %v2161_v56 = vadd.f32 0.37409195, %v2159_v34 }
 0xcd2   : > { %v2174_v57 = vadd.f32 %v2172_v55, %v2168_v19  ;;  %v2163_v58 = vmul.f32 %v2161_v56, %v4883_v37 }
 0xcd4   : > { %v2176_v59 = vmul.f32 1.442695, %v2174_v57  ;;  %v2165_v60 = vadd.f32 1.0000237, %v2163_v58 }
 0xcd6   : > { %4000 = vpow2.f32 %v2176_v59  ;;  %v2167_v11 = vmul.f32 %v2165_v60, %v4883_v37 }
 0xcd8   : > { %v2169_v61 = vadd.f32 -1.2655122, %v2167_v11 }
 0xcda   : > { %v2175_v62 = vadd.f32 %v2173_v12, %v2169_v61 }
 0xcdc   : > { %v4001_v43 = vpop.eup %4000  ;;  %v2178_v63 = vmul.f32 1.442695, %v2175_v62 }
 0xcdd   : > { %v2180_v36 = vmul.f32 %v4001_v43, %v4866_v51  ;;  %v3918_v43 = vld [vmem:[%s5600_s10 + $0x1] ss:$0 sm:$0xff] }
 0xcde   : > { %4002 = vpow2.f32 %v2178_v63 }
 0xcdf   : > { %v2182_v22 = vsub.f32 1.0, %v2180_v36 }
 0xce1   : > { %v2186_v0 = vsub.f32 0.0, %v2182_v22 }
 0xce3   : > { %v2188_v47 = vsel %vm2184_vm9, %v2182_v22, %v2186_v0 }
 0xce4   : > { %v2190_v15 = vadd.f32 1.0, %v2188_v47  ;;  %v4003_v5 = vpop.eup %4002 }
 0xce5   : > { %v2181_v8 = vmul.f32 %v4003_v5, %v4883_v37 }
 0xce6   : > { %v2192_v7 = vmul.f32 %v2190_v15, %v2094_v1 }
 0xce7   : > { %v2183_v31 = vsub.f32 1.0, %v2181_v8  ;;  %v4984_v8 = vld [vmem:[%s5602_s28 + $0x1] ss:$0 sm:$0xff] }
 0xce8   : > { %2210 = vmatmul.f32.vlgmr.msrb.gmra.mxu0 %v2192_v7 }
 0xce9   : > { %v2187_v9 = vsub.f32 0.0, %v2183_v31 }
 0xceb   : > { %v2189_v51 = vsel %vm2185_vm6, %v2183_v31, %v2187_v9 }
 0xcec   : > { %v2191_v14 = vadd.f32 1.0, %v2189_v51 }
 0xcee   : > { %v2193_v16 = vmul.f32 %v2191_v14, %v2095_v13  ;;  %v4084_v13 = vld [vmem:[%s5604_s11] sm:$0xff] }
 0xcf0   : > { %2213 = vmatmul.f32.gmra.mxu0 %v2193_v16  ;;  %v4085_v16 = vld [vmem:[%s5605_s9] sm:$0xff] }
 0xd65   : > { %v2211_v17 = vpop.f32.mrf.mxu0 }
 0xd66   : > { %v2217_v23 = vadd.f32 %v2211_v17, %v4802_v29 }
 0xd68   : > { %v4944_v24 = vadd.f32 %v3916_v10, %v2217_v23 }
 0xd6a   : > { %v2280_v37 = vsel %vm931_vm3, %v4944_v24, 0.0 }
 0xd6b   : > { %2281 = vadd.xlane.f32.xlu1 %v2280_v37 }
 0xd6d   : > { %v2214_v30 = vpop.f32.mrf.mxu0 }
 0xd6e   : > { %v2218_v25 = vadd.f32 %v2214_v30, %v4807_v3 }
 0xd70   : > { %v4949_v27 = vadd.f32 %v3916_v10, %v2218_v25  ;;  %v4086_v25 = vld [vmem:[%s5604_s11 + $0x8] sm:$0xff] }
 0xd72   : > { %v2283_v32 = vsel %vm931_vm3, %v4949_v27, 0.0 }
 0xd73   : > { %2284 = vadd.xlane.f32.xlu0 %v2283_v32 }
 0xd87   : > { %2474 = vrot.lane.b32.xlu0 %v4984_v8, %s5607_s2 }
 0xdde   : > { %v2282_v6 = vpop.xlane.xlu1 %2281 }
 0xddf   : > { %v2286_v46 = vmul.f32 %v2282_v6, %v4390_v28  ;;  %v4087_v6 = vld [vmem:[%s5605_s9 + $0x8] sm:$0xff] }
 0xde1   : > { %v2288_v29 = vsub.f32 %v4944_v24, %v2286_v46 }
 0xde3   : > { %v2290_v39 = vmul.f32 %v2288_v29, %v2288_v29 }
 0xde5   : > { %v2292_v40 = vsel %vm931_vm3, %v2290_v39, 0.0 }
 0xde6   : > { %2293 = vadd.xlane.f32.xlu2 %v2292_v40  ;;  %v2285_v18 = vpop.xlane.xlu0 %2284 }
 0xde7   : > { %v2287_v41 = vmul.f32 %v2285_v18, %v4390_v28 }
 0xde9   : > { %v2289_v3 = vsub.f32 %v4949_v27, %v2287_v41 }
 0xdeb   : > { %v2291_v4 = vmul.f32 %v2289_v3, %v2289_v3 }
 0xded   : > { %v2295_v42 = vsel %vm931_vm3, %v2291_v4, 0.0 }
 0xdee   : > { %2296 = vadd.xlane.f32.xlu1 %v2295_v42 }
 0xdf9   : > { %v2475_v17 = vpop.permute.xlu0 %2474 }
 0xe59   : > { %v2294_v49 = vpop.xlane.xlu2 %2293 }
 0xe5a   : > { %v2298_v52 = vmul.f32 %v2294_v49, %v4390_v28 }
 0xe5c   : > { %v2300_v53 = vadd.f32 1e-05, %v2298_v52 }
 0xe5e   : > { %4004 = vrsqrt.f32 %v2300_v53  ;;  %vm2308_vm5 = vweird.f32 %v2300_v53 }
 0xe61   : > { %v2297_v26 = vpop.xlane.xlu1 %2296 }
 0xe62   : > { %v2299_v54 = vmul.f32 %v2297_v26, %v4390_v28 }
 0xe64   : > { %v4005_v34 = vpop.eup %4004  ;;  %v2301_v55 = vadd.f32 1e-05, %v2299_v54 }
 0xe65   : > { %v2303_v19 = vmul.f32 %v4005_v34, %v2300_v53  ;;  %vm2309_vm4 = vweird.f32 %v4005_v34 }
 0xe66   : > { %4006 = vrsqrt.f32 %v2301_v55  ;;  %vm2310_vm2 = vmor %vm2308_vm5, %vm2309_vm4  ;;  %vm2318_vm7 = vweird.f32 %v2301_v55 }
 0xe67   : > { %v2304_v56 = vmul.f32 %v4005_v34, %v2303_v19 }
 0xe69   : > { %v2305_v57 = vmul.f32 0.5, %v2304_v56 }
 0xe6b   : > { %v2306_v58 = vsub.f32 1.5, %v2305_v57 }
 0xe6c   : > { %v4007_v59 = vpop.eup %4006 }
 0xe6d   : > { %v2307_v60 = vmul.f32 %v4005_v34, %v2306_v58  ;;  %v2313_v11 = vmul.f32 %v4007_v59, %v2301_v55  ;;  %vm2319_vm8 = vweird.f32 %v4007_v59 }
 0xe6e   : > { %vm2320_vm9 = vmor %vm2318_vm7, %vm2319_vm8 }
 0xe6f   : > { %v2311_v61 = vsel %vm2310_vm2, %v4005_v34, %v2307_v60  ;;  %v2314_v62 = vmul.f32 %v4007_v59, %v2313_v11 }
 0xe70   : > { %v2322_v12 = vmul.f32 %v2311_v61, %v2288_v29 }
 0xe71   : > { %v2315_v63 = vmul.f32 0.5, %v2314_v62 }
 0xe72   : > { %v2327_v36 = vmul.f32 %v3917_v35, %v2322_v12 }
 0xe73   : > { %v2316_v22 = vsub.f32 1.5, %v2315_v63 }
 0xe74   : > { %v2332_v0 = vadd.f32 %v3918_v43, %v2327_v36 }
 0xe75   : > { %v2317_v47 = vmul.f32 %v4007_v59, %v2316_v22 }
 0xe76   : > { %3809 = vmatmul.msk.f32.vlgmr.msra.gmra.mxu2 %vm931_vm3, %v2332_v0 }
 0xe77   : > { %v2321_v1 = vsel %vm2320_vm9, %v4007_v59, %v2317_v47 }
 0xe78   : > { %v2323_v15 = vmul.f32 %v2321_v1, %v2289_v3 }
 0xe7a   : > { %v2328_v5 = vmul.f32 %v3917_v35, %v2323_v15 }
 0xe7c   : > { %v2333_v7 = vadd.f32 %v3918_v43, %v2328_v5 }
 0xe7e   : > { %3810 = vmatmul.msk.f32.gmra.mxu2 %vm931_vm3, %v2333_v7 }
 0xef9   : > { %v2357_v31 = vpop.f32.mrf.mxu2 }
 0xefa   : > { %3811 = vmatmul.msk.f32.vlgmr.msra.gmra.mxu1 %vm861_vm0, %v2357_v31  ;;  %v2363_v14 = vmul.f32 %v4084_v13, %v2357_v31 }
 0xf01   : > { %v2360_v9 = vpop.f32.mrf.mxu2 }
 0xf02   : > { %3812 = vmatmul.msk.f32.gmra.mxu1 %vm861_vm0, %v2360_v9  ;;  %v2364_v32 = vmul.f32 %v4086_v25, %v2360_v9 }
 0xf77   : > { %v2388_v51 = vpop.f32.mrf.mxu1 }
 0xf78   : > { %v2394_v10 = vmul.f32 %v4085_v16, %v2388_v51 }
 0xf7a   : > { %v4996_v23 = vadd.f32 %v2394_v10, %v2363_v14 }
 0xf7c   : > { %v2477_v37 = vmul.f32 %v2475_v17, %v4996_v23 }
 0xf7e   : > { %2481 = vrot.lane.b32.xlu2 %v2477_v37, %s5613_s7 }
 0xf7f   : > { %v2391_v30 = vpop.f32.mrf.mxu1 }
 0xf80   : > { %v2395_v46 = vmul.f32 %v4087_v6, %v2391_v30 }
 0xf82   : > { %v5006_v29 = vadd.f32 %v2395_v46, %v2364_v32 }
 0xf84   : > { %v2478_v39 = vmul.f32 %v2475_v17, %v5006_v29 }
 0xf86   : > { %2483 = vrot.lane.b32.xlu1 %v2478_v39, %s5613_s7 }
 0xf8e   : > { %2402 = vrot.lane.b32.xlu1 %v5006_v29, %s5613_s7 }
 0xfd8   : > { %v2482_v40 = vpop.permute.xlu2 %2481 }
 0xfd9   : > { %v2487_v18 = vsel %vm1065_vm11, %v2482_v40, 0.0 }
 0xfda   : > { %2488 = vadd.xlane.f32.xlu0 %v2487_v18 }
 0xff8   : > { %v2484_v41 = vpop.permute.xlu1 %2483 }
 0xff9   : > { %v2490_v3 = vsel %vm1065_vm11, %v2484_v41, 0.0 }
 0xffa   : > { %2491 = vadd.xlane.f32.xlu2 %v2490_v3 }
0x104d   : > { %v2489_v4 = vpop.xlane.xlu0 %2488 }
0x104e   : > { %v2493_v42 = vrot.slane %v2489_v4, 4 }
0x1050   : > { %v2494_v44 = vmax.f32 %v2489_v4, %v2493_v42 }
0x1052   : > { %v2495_v45 = vrot.slane %v2494_v44, 2 }
0x1054   : > { %v2496_v20 = vmax.f32 %v2494_v44, %v2495_v45 }
0x1056   : > { %v2497_v48 = vrot.slane %v2496_v20, 1 }
0x1058   : > { %v2498_v49 = vmax.f32 %v2496_v20, %v2497_v48 }
0x105a   : > { %v2505_v52 = vsub.f32 %v2489_v4, %v2498_v49 }
0x105c   : > { %v2507_v53 = vmul.f32 1.442695, %v2505_v52 }
0x105e   : > { %4008 = vpow2.f32 %v2507_v53 }
0x1064   : > { %v4009_v26 = vpop.eup %4008 }
0x1065   : > { %v2511_v54 = vrot.slane %v4009_v26, 4 }
0x1067   : > { %v2512_v34 = vadd.f32 %v4009_v26, %v2511_v54 }
0x1069   : > { %v2513_v19 = vrot.slane %v2512_v34, 2 }
0x106b   : > { %v2514_v55 = vadd.f32 %v2513_v19, %v2512_v34 }
0x106d   : > { %v2515_v56 = vrot.slane %v2514_v55, 1  ;;  %v2492_v57 = vpop.xlane.xlu2 %2491 }
0x106e   : > { %v2499_v58 = vrot.slane %v2492_v57, 4 }
0x106f   : > { %v2516_v59 = vadd.f32 %v2515_v56, %v2514_v55 }
0x1070   : > { %v2500_v60 = vmax.f32 %v2492_v57, %v2499_v58 }
0x1071   : > { %4010 = vrcp.f32 %v2516_v59  ;;  %v2534_v31 = vand.u32 2147483648, %v2516_v59  ;;  %vm2528_vm4 = vweird.f32 %v2516_v59  ;;  %v2532_v9 = vand.u32 2147483647, %v2516_v59 }
0x1072   : > { %v2501_v35 = vrot.slane %v2500_v60, 2 }
0x1073   : > { %v2535_v16 = vor.u32 1.1754944e-38, %v2534_v31  ;;  %vm2533_vm2 = vcmp.eq.f32.partialorder %v2532_v9, 8.507059e+37 }
0x1074   : > { %v2502_v11 = vmax.f32 %v2500_v60, %v2501_v35  ;;  %v2403_v60 = vpop.permute.xlu1 %2402 }
0x1075   : > { %v2409_v35 = vsel %vm1065_vm11, %v2403_v60, 0.0 }
0x1076   : > { %v2503_v61 = vrot.slane %v2502_v11, 1 }
0x1077   : > { %v4011_v62 = vpop.eup %4010 }
0x1078   : > { %v2504_v12 = vmax.f32 %v2502_v11, %v2503_v61  ;;  %v2524_v63 = vmul.f32 %v4011_v62, %v2516_v59  ;;  %vm2529_vm6 = vweird.f32 %v4011_v62 }
0x1079   : > { %vm2530_vm5 = vmor %vm2528_vm4, %vm2529_vm6  ;;  %vm5614_vm4 = vcmask 1041409  }
0x107a   : > { %v2506_v43 = vsub.f32 %v2492_v57, %v2504_v12  ;;  %v2525_v22 = vsub.f32 1.0, %v2524_v63 }
0x107c   : > { %v2509_v36 = vmul.f32 1.442695, %v2506_v43  ;;  %v2526_v47 = vmul.f32 %v4011_v62, %v2525_v22 }
0x107e   : > { %4012 = vpow2.f32 %v2509_v36  ;;  %v2527_v5 = vadd.f32 %v4011_v62, %v2526_v47 }
0x1080   : > { %v2531_v13 = vsel %vm2530_vm5, %v4011_v62, %v2527_v5  ;;  %vm5617_vm5 = vmmov %vm5614_vm4 }
0x1081   : > { %v2536_v17 = vsel %vm2533_vm2, %v2535_v16, %v2531_v13 }
0x1082   : > { %v2537_v37 = vmul.f32 %v4009_v26, %v2536_v17 }
0x1084   : > { %v4013_v0 = vpop.eup %4012  ;;  %v2553_v30 = vmul.f32 %v2537_v37, %v4996_v23 }
0x1085   : > { %v2517_v1 = vrot.slane %v4013_v0, 4 }
0x1086   : > { %v2555_v46 = vsel %vm1222_vm1, %v2553_v30, 0.0 }
0x1087   : > { %v2518_v15 = vadd.f32 %v4013_v0, %v2517_v1  ;;  %v2556_v41 = vrot.slane %v2555_v46, 4 }
0x1089   : > { %v2519_v7 = vrot.slane %v2518_v15, 2  ;;  %v2557_v45 = vadd.f32 %v2556_v41, %v2555_v46  ;;  %v5063_v41 = vld [vmem:[%s5505_s13 + $0x1] ss:$0 sm:$0xff] }
0x108b   : > { %v2520_v51 = vadd.f32 %v2519_v7, %v2518_v15  ;;  %v2558_v49 = vrot.slane %v2557_v45, 2 }
0x108d   : > { %v2521_v14 = vrot.slane %v2520_v51, 1  ;;  %v2559_v26 = vadd.f32 %v2558_v49, %v2557_v45  ;;  %v5085_v49 = vld [vmem:[%s5606_s12 + $0x1] ss:$0 sm:$0xff] }
0x108f   : > { %v2522_v10 = vadd.f32 %v2521_v14, %v2520_v51  ;;  %v2560_v19 = vrot.slane %v2559_v26, 1 }
0x1091   : > { %4014 = vrcp.f32 %v2522_v10  ;;  %v2549_v39 = vand.u32 2147483648, %v2522_v10  ;;  %v2547_v18 = vand.u32 2147483647, %v2522_v10  ;;  %vm2543_vm7 = vweird.f32 %v2522_v10 }
0x1092   : > { %v2561_v57 = vadd.f32 %v2560_v19, %v2559_v26 }
0x1093   : > { %v2550_v4 = vor.u32 1.1754944e-38, %v2549_v39  ;;  %vm2548_vm6 = vcmp.eq.f32.partialorder %v2547_v18, 8.507059e+37 }
0x1097   : > { %v4015_v25 = vpop.eup %4014 }
0x1098   : > { %v2539_v32 = vmul.f32 %v4015_v25, %v2522_v10  ;;  %vm2544_vm8 = vweird.f32 %v4015_v25 }
0x1099   : > { %vm2545_vm9 = vmor %vm2543_vm7, %vm2544_vm8 }
0x109a   : > { %v2540_v6 = vsub.f32 1.0, %v2539_v32 }
0x109c   : > { %v2541_v40 = vmul.f32 %v4015_v25, %v2540_v6 }
0x109e   : > { %v2542_v3 = vadd.f32 %v4015_v25, %v2541_v40 }
0x10a0   : > { %v2546_v42 = vsel %vm2545_vm9, %v4015_v25, %v2542_v3  ;;  %v5068_v3 = vld [vmem:[%s5609_s3 + $0x1] ss:$0 sm:$0xff]  ;;  %s5638_s3 = sld [smem:[#allocation31_spill]] }
0x10a1   : > { %v2551_v44 = vsel %vm2548_vm6, %v2550_v4, %v2546_v42  ;;  %v5077_v4 = vld [vmem:[%s5506_s14 + $0x1] ss:$0 sm:$0xff] }
0x10a2   : > { %v2552_v20 = vmul.f32 %v4013_v0, %v2551_v44 }
0x10a4   : > { %v2554_v48 = vmul.f32 %v2552_v20, %v5006_v29 }
0x10a6   : > { %v2562_v52 = vsel %vm1222_vm1, %v2554_v48, 0.0  ;;  %vm5616_vm1 = vcmask 123904   ;;  %s4108_s1 = scalar_lea.hbm %s5638_s3, 32 }
0x10a7   : > { %v2563_v53 = vrot.slane %v2562_v52, 4  ;;  %vm5618_vm2 = vmmov %vm5616_vm1 }
0x10a9   : > { %v2564_v54 = vadd.f32 %v2563_v53, %v2562_v52 }
0x10ab   : > { %v2565_v34 = vrot.slane %v2564_v54, 2 }
0x10ad   : > { %v2566_v55 = vadd.f32 %v2565_v34, %v2564_v54 }
0x10af   : > { %v2567_v56 = vrot.slane %v2566_v55, 1 }
0x10b1   : > { %v2568_v58 = vadd.f32 %v2567_v56, %v2566_v55 }
0x10b3   : > { %v2571_v59 = vsel %vm5614_vm4, %v2568_v58, %v2561_v57 }
0x10b4   : > { %2572 = vrot.lane.b32.xlu1 %v2571_v59, %s5613_s7 }
0x10bc   : > { %2400 = vrot.lane.b32.xlu1 %v4996_v23, %s5613_s7 }
0x10c4   : > { %2939 = vrot.lane.b32.xlu1 %v4984_v8, %s5610_s8 }
0x10ee   : > { %2410 = vadd.xlane.f32.xlu1 %v2409_v35 }
0x1126   : > { %v2573_v11 = vpop.permute.xlu1 %2572 }
0x1127   : > { %v2575_v8 = vsel %vm5616_vm1, %v2573_v11, 0.0 }
0x112e   : > { %v2401_v61 = vpop.permute.xlu1 %2400 }
0x112f   : > { %v2406_v12 = vsel %vm1065_vm11, %v2401_v61, 0.0 }
0x1130   : > { %2407 = vadd.xlane.f32.xlu0 %v2406_v12 }
0x1136   : > { %v2940_v62 = vpop.permute.xlu1 %2939 }
0x1137   : > { %v2942_v43 = vmul.f32 %v2940_v62, %v4996_v23  ;;  %v2943_v36 = vmul.f32 %v2940_v62, %v5006_v29 }
0x1139   : > { %2946 = vrot.lane.b32.xlu2 %v2942_v43, %s5615_s26 }
0x1144   : > { %2948 = vrot.lane.b32.xlu0 %v2943_v36, %s5615_s26 }
0x1161   : > { %v2411_v63 = vpop.xlane.xlu1 %2410 }
0x1162   : > { %v2413_v22 = vmul.f32 %v2411_v63, %v4492_v2 }
0x1164   : > { %v5033_v0 = vsub.f32 %v5006_v29, %v2413_v22 }
0x1166   : > { %v2417_v47 = vmul.f32 %v5033_v0, %v5033_v0 }
0x116e   : > { %2576 = vadd.xlane.f32.xlu0 %v2575_v8 }
0x1182   : > { %2422 = vrot.lane.b32.xlu0 %v2417_v47, %s5613_s7 }
0x1193   : > { %v2947_v32 = vpop.permute.xlu2 %2946 }
0x1194   : > { %v2952_v6 = vsel %vm1065_vm11, %v2947_v32, 0.0 }
0x11a3   : > { %v2408_v1 = vpop.xlane.xlu0 %2407 }
0x11a4   : > { %v2412_v15 = vmul.f32 %v2408_v1, %v4492_v2 }
0x11a6   : > { %v5040_v5 = vsub.f32 %v4996_v23, %v2412_v15 }
0x11a8   : > { %v2416_v7 = vmul.f32 %v5040_v5, %v5040_v5 }
0x11aa   : > { %2420 = vrot.lane.b32.xlu1 %v2416_v7, %s5613_s7 }
0x11b6   : > { %v2949_v31 = vpop.permute.xlu0 %2948 }
0x11b7   : > { %v2955_v9 = vsel %vm1065_vm11, %v2949_v31, 0.0 }
0x11b8   : > { %2956 = vadd.xlane.f32.xlu0 %v2955_v9 }
0x11e1   : > { %v2577_v51 = vpop.xlane.xlu0 %2576 }
0x11e2   : > { %v2578_v13 = vmul.f32 %v2577_v51, %v4492_v2 }
0x11e4   : > { %v2580_v14 = vrot.slane %v2578_v13, 1  ;;  %v5047_v16 = vsub.f32 %v2561_v57, %v2578_v13 }
0x11e6   : > { %v5049_v10 = vsub.f32 %v2568_v58, %v2580_v14  ;;  %v2585_v37 = vmul.f32 %v5047_v16, %v5047_v16 }
0x11e8   : > { %v2586_v17 = vmul.f32 %v5049_v10, %v5049_v10 }
0x11ea   : > { %v2589_v30 = vrot.slane %v2586_v17, 7 }
0x11ec   : > { %v2590_v25 = vsel %vm5617_vm5, %v2589_v30, %v2585_v37 }
0x11ed   : > { %2591 = vrot.lane.b32.xlu2 %v2590_v25, %s5613_s7 }
0x11f4   : > { %v2423_v46 = vpop.permute.xlu0 %2422 }
0x11f5   : > { %v2429_v40 = vsel %vm1065_vm11, %v2423_v46, 0.0 }
0x1216   : > { %2953 = vadd.xlane.f32.xlu2 %v2952_v6 }
0x121c   : > { %v2421_v39 = vpop.permute.xlu1 %2420 }
0x121d   : > { %v2426_v18 = vsel %vm1065_vm11, %v2421_v39, 0.0 }
0x121e   : > { %2430 = vadd.xlane.f32.xlu2 %v2429_v40  ;;  %2427 = vadd.xlane.f32.xlu0 %v2426_v18 }
0x122b   : > { %v2957_v45 = vpop.xlane.xlu0 %2956 }
0x122c   : > { %v2964_v20 = vrot.slane %v2957_v45, 4 }
0x122e   : > { %v2965_v48 = vmax.f32 %v2957_v45, %v2964_v20 }
0x1230   : > { %v2966_v52 = vrot.slane %v2965_v48, 2 }
0x1232   : > { %2617 = vrot.lane.b32.xlu0 %v5063_v41, %s5607_s2  ;;  %v2967_v53 = vmax.f32 %v2965_v48, %v2966_v52 }
0x1234   : > { %v2968_v26 = vrot.slane %v2967_v53, 1 }
0x1236   : > { %2460 = vrot.lane.b32.xlu2 %v5068_v3, %s5607_s2  ;;  %v2969_v54 = vmax.f32 %v2967_v53, %v2968_v26 }
0x1238   : > { %v2971_v34 = vsub.f32 %v2957_v45, %v2969_v54 }
0x123a   : > { %2624 = vrot.lane.b32.xlu0 %v5077_v4, %s5607_s2  ;;  %v2974_v19 = vmul.f32 1.442695, %v2971_v34 }
0x123c   : > { %4016 = vpow2.f32 %v2974_v19 }
0x1242   : > { %v5091_v55 = vpop.eup %4016 }
0x1243   : > { %v2982_v56 = vrot.slane %v5091_v55, 4 }
0x1245   : > { %v2983_v57 = vadd.f32 %v5091_v55, %v2982_v56 }
0x1247   : > { %v2592_v42 = vpop.permute.xlu2 %2591  ;;  %v2984_v60 = vrot.slane %v2983_v57, 2 }
0x1248   : > { %v2594_v44 = vsel %vm5618_vm2, %v2592_v42, 0.0 }
0x1249   : > { %2595 = vadd.xlane.f32.xlu1 %v2594_v44  ;;  %v2985_v61 = vadd.f32 %v2984_v60, %v2983_v57 }
0x124b   : > { %v2986_v43 = vrot.slane %v2985_v61, 1 }
0x124d   : > { %v2987_v63 = vadd.f32 %v2986_v43, %v2985_v61 }
0x124f   : > { %v3014_v18 = vand.u32 2147483648, %v2987_v63  ;;  %vm3008_vm7 = vweird.f32 %v2987_v63  ;;  %v3012_v42 = vand.u32 2147483647, %v2987_v63 }
0x1251   : > { %v3015_v53 = vor.u32 1.1754944e-38, %v3014_v18  ;;  %vm3013_vm6 = vcmp.eq.f32.partialorder %v3012_v42, 8.507059e+37 }
0x1262   : > { %2467 = vrot.lane.b32.xlu1 %v5085_v49, %s5607_s2  ;;  %s5627_s2 = smov 112  }
0x126a   : > { %2871 = vrot.lane.b32.xlu1 %v4996_v23, %s5615_s26 }
0x1289   : > { %v2954_v58 = vpop.xlane.xlu2 %2953 }
0x128a   : > { %v2958_v59 = vrot.slane %v2954_v58, 4 }
0x128c   : > { %v2959_v35 = vmax.f32 %v2954_v58, %v2958_v59 }
0x128e   : > { %v2960_v11 = vrot.slane %v2959_v35, 2 }
0x1290   : > { %v2961_v12 = vmax.f32 %v2959_v35, %v2960_v11 }
0x1291   : > { %v2431_v31 = vpop.xlane.xlu2 %2430  ;;  %v2428_v9 = vpop.xlane.xlu0 %2427 }
0x1292   : > { %v2962_v62 = vrot.slane %v2961_v12, 1  ;;  %v2433_v14 = vmul.f32 %v2431_v31, %v4492_v2  ;;  %v2432_v37 = vmul.f32 %v2428_v9, %v4492_v2 }
0x1294   : > { %v2963_v36 = vmax.f32 %v2961_v12, %v2962_v62  ;;  %v2435_v32 = vadd.f32 1e-05, %v2433_v14  ;;  %v2434_v46 = vadd.f32 1e-05, %v2432_v37 }
0x1296   : > { %v2970_v8 = vsub.f32 %v2954_v58, %v2963_v36 }
0x1298   : > { %v2972_v22 = vmul.f32 1.442695, %v2970_v8 }
0x129a   : > { %4018 = vpow2.f32 %v2972_v22 }
0x129b   : > { %4020 = vrcp.f32 %v2987_v63 }
0x12a0   : > { %v4019_v47 = vpop.eup %4018 }
0x12a1   : > { %v4021_v1 = vpop.eup %4020  ;;  %v2976_v15 = vrot.slane %v4019_v47, 4 }
0x12a2   : > { %v3004_v51 = vmul.f32 %v4021_v1, %v2987_v63  ;;  %vm3009_vm8 = vweird.f32 %v4021_v1 }
0x12a3   : > { %v2977_v7 = vadd.f32 %v4019_v47, %v2976_v15  ;;  %vm3010_vm9 = vmor %vm3008_vm7, %vm3009_vm8  ;;  %vm5619_vm8 = vcmask 523648  }
0x12a4   : > { %v3005_v30 = vsub.f32 1.0, %v3004_v51  ;;  %vm5620_vm7 = vmmov %vm5619_vm8 }
0x12a5   : > { %v2978_v13 = vrot.slane %v2977_v7, 2 }
0x12a6   : > { %v3006_v39 = vmul.f32 %v4021_v1, %v3005_v30 }
0x12a7   : > { %v2979_v17 = vadd.f32 %v2978_v13, %v2977_v7 }
0x12a8   : > { %v3007_v40 = vadd.f32 %v4021_v1, %v3006_v39 }
0x12a9   : > { %v2980_v25 = vrot.slane %v2979_v17, 1 }
0x12aa   : > { %v3011_v48 = vsel %vm3010_vm9, %v4021_v1, %v3007_v40 }
0x12ab   : > { %v2981_v6 = vadd.f32 %v2980_v25, %v2979_v17  ;;  %v3016_v19 = vsel %vm3013_vm6, %v3015_v53, %v3011_v48 }
0x12ac   : > { %v3017_v35 = vmul.f32 %v5091_v55, %v3016_v19 }
0x12ad   : > { %4022 = vrcp.f32 %v2981_v6  ;;  %v2999_v34 = vand.u32 2147483648, %v2981_v6  ;;  %v2997_v58 = vand.u32 2147483647, %v2981_v6  ;;  %vm2993_vm1 = vweird.f32 %v2981_v6 }
0x12ae   : > { %4024 = vrsqrt.f32 %v2435_v32  ;;  %v3019_v7 = vmul.f32 %v3017_v35, %v5006_v29 }
0x12af   : > { %4026 = vrsqrt.f32 %v2434_v46  ;;  %v3000_v60 = vor.u32 1.1754944e-38, %v2999_v34  ;;  %vm2998_vm2 = vcmp.eq.f32.partialorder %v2997_v58, 8.507059e+37 }
0x12b0   : > { %v3027_v51 = vsel %vm5620_vm7, %v3019_v7, 0.0 }
0x12b1   : > { %v3028_v17 = vrot.slane %v3027_v51, 4 }
0x12b3   : > { %v4023_v44 = vpop.eup %4022  ;;  %v3029_v42 = vadd.f32 %v3028_v17, %v3027_v51 }
0x12b4   : > { %v4025_v45 = vpop.eup %4024  ;;  %v2989_v20 = vmul.f32 %v4023_v44, %v2981_v6  ;;  %vm2994_vm4 = vweird.f32 %v4023_v44 }
0x12b5   : > { %v4027_v52 = vpop.eup %4026  ;;  %v2447_v54 = vmul.f32 %v4025_v45, %v2435_v32  ;;  %vm2995_vm5 = vmor %vm2993_vm1, %vm2994_vm4  ;;  %vm2453_vm9 = vweird.f32 %v4025_v45  ;;  %vm2452_vm4 = vweird.f32 %v2435_v32  ;;  %v3030_v32 = vrot.slane %v3029_v42, 2 }
0x12b6   : > { %v2990_v26 = vsub.f32 1.0, %v2989_v20  ;;  %v2437_v56 = vmul.f32 %v4027_v52, %v2434_v46  ;;  %vm2443_vm6 = vweird.f32 %v4027_v52  ;;  %vm2454_vm1 = vmor %vm2452_vm4, %vm2453_vm9 }
0x12b7   : > { %v2448_v11 = vmul.f32 %v4025_v45, %v2447_v54  ;;  %v3031_v58 = vadd.f32 %v3030_v32, %v3029_v42 }
0x12b8   : > { %v2991_v57 = vmul.f32 %v4023_v44, %v2990_v26  ;;  %v2438_v61 = vmul.f32 %v4027_v52, %v2437_v56  ;;  %v2461_v26 = vpop.permute.xlu2 %2460 }
0x12b9   : > { %v2449_v22 = vmul.f32 0.5, %v2448_v11 }
0x12ba   : > { %v2992_v59 = vadd.f32 %v4023_v44, %v2991_v57  ;;  %v2439_v1 = vmul.f32 0.5, %v2438_v61 }
0x12bb   : > { %v2450_v55 = vsub.f32 1.5, %v2449_v22 }
0x12bc   : > { %v2596_v12 = vpop.xlane.xlu1 %2595  ;;  %v2996_v62 = vsel %vm2995_vm5, %v4023_v44, %v2992_v59  ;;  %v2440_v9 = vsub.f32 1.5, %v2439_v1  ;;  %vm2442_vm5 = vweird.f32 %v2434_v46 }
0x12bd   : > { %v2597_v43 = vmul.f32 %v2596_v12, %v4492_v2  ;;  %v3001_v36 = vsel %vm2998_vm2, %v3000_v60, %v2996_v62  ;;  %vm2444_vm2 = vmor %vm2442_vm5, %vm2443_vm6  ;;  %vm5621_vm6 = vcmask 1041409   ;;  %vm5624_vm5 = vcmask 1041408  }
0x12be   : > { %v3002_v8 = vmul.f32 %v4019_v47, %v3001_v36  ;;  %v2451_v47 = vmul.f32 %v4025_v45, %v2450_v55  ;;  %v2441_v37 = vmul.f32 %v4027_v52, %v2440_v9  ;;  %vm5622_vm4 = vmmov %vm5621_vm6 }
0x12bf   : > { %v2598_v63 = vadd.f32 1e-05, %v2597_v43 }
0x12c0   : > { %v3018_v15 = vmul.f32 %v3002_v8, %v4996_v23  ;;  %v2455_v39 = vsel %vm2454_vm1, %v4025_v45, %v2451_v47  ;;  %v2445_v40 = vsel %vm2444_vm2, %v4027_v52, %v2441_v37  ;;  %v2618_v45 = vpop.permute.xlu0 %2617  ;;  %vm5623_vm1 = vcmask 123904   ;;  %vm5625_vm2 = vmmov %vm5622_vm4 }
0x12c1   : > { %4028 = vrsqrt.f32 %v2598_v63  ;;  %v2457_v48 = vmul.f32 %v2455_v39, %v5033_v0  ;;  %v2456_v53 = vmul.f32 %v2445_v40, %v5040_v5  ;;  %vm2605_vm7 = vweird.f32 %v2598_v63 }
0x12c2   : > { %v3020_v31 = vsel %vm5619_vm8, %v3018_v15, 0.0  ;;  %v3032_v5 = vrot.slane %v3031_v58, 1 }
0x12c3   : > { %v3021_v13 = vrot.slane %v3020_v31, 4  ;;  %v2463_v19 = vmul.f32 %v2461_v26, %v2456_v53  ;;  %v2464_v56 = vmul.f32 %v2461_v26, %v2457_v48 }
0x12c4   : > { %v3033_v43 = vadd.f32 %v3032_v5, %v3031_v58 }
0x12c5   : > { %v3022_v6 = vadd.f32 %v3021_v13, %v3020_v31 }
0x12c7   : > { %v4029_v14 = vpop.eup %4028  ;;  %v3023_v20 = vrot.slane %v3022_v6, 2 }
0x12c8   : > { %v2600_v30 = vmul.f32 %v4029_v14, %v2598_v63  ;;  %vm2606_vm8 = vweird.f32 %v4029_v14  ;;  %v2625_v36 = vpop.permute.xlu0 %2624 }
0x12c9   : > { %vm2607_vm9 = vmor %vm2605_vm7, %vm2606_vm8  ;;  %v3024_v34 = vadd.f32 %v3023_v20, %v3022_v6 }
0x12ca   : > { %v2601_v25 = vmul.f32 %v4029_v14, %v2600_v30  ;;  %vm5626_vm8 = vmmov %vm5623_vm1 }
0x12cb   : > { %v3025_v0 = vrot.slane %v3024_v34, 1 }
0x12cc   : > { %v2602_v18 = vmul.f32 0.5, %v2601_v25 }
0x12cd   : > { %v3026_v61 = vadd.f32 %v3025_v0, %v3024_v34 }
0x12ce   : > { %v2603_v44 = vsub.f32 1.5, %v2602_v18 }
0x12cf   : > { %v3036_v22 = vsel %vm5621_vm6, %v3033_v43, %v3026_v61 }
0x12d0   : > { %v2604_v54 = vmul.f32 %v4029_v14, %v2603_v44 }
0x12d2   : > { %v2608_v46 = vsel %vm2607_vm9, %v4029_v14, %v2604_v54 }
0x12d3   : > { %v2610_v52 = vrot.slane %v2608_v46, 1  ;;  %v2613_v12 = vmul.f32 %v2608_v46, %v5047_v16 }
0x12d4   : > { %v2468_v57 = vpop.permute.xlu1 %2467 }
0x12d5   : > { %v2470_v59 = vadd.f32 %v2468_v57, %v2463_v19  ;;  %v2471_v60 = vadd.f32 %v2468_v57, %v2464_v56  ;;  %v2614_v35 = vmul.f32 %v2610_v52, %v5049_v10  ;;  %v2620_v10 = vmul.f32 %v2618_v45, %v2613_v12 }
0x12d7   : > { %2633 = vrot.lane.b32.xlu2 %v2471_v60, %s5613_s7  ;;  %2631 = vrot.lane.b32.xlu0 %v2470_v59, %s5613_s7  ;;  %v2621_v11 = vmul.f32 %v2618_v45, %v2614_v35  ;;  %v2627_v15 = vadd.f32 %v2625_v36, %v2620_v10 }
0x12d9   : > { %v2628_v63 = vadd.f32 %v2625_v36, %v2621_v11 }
0x12db   : > { %v2668_v1 = vrot.slane %v2628_v63, 7 }
0x12dc   : > { %v2872_v62 = vpop.permute.xlu1 %2871 }
0x12dd   : > { %v2877_v8 = vsel %vm1065_vm11, %v2872_v62, 0.0  ;;  %v2669_v7 = vsel %vm5622_vm4, %v2668_v1, %v2627_v15 }
0x12de   : > { %2878 = vadd.xlane.f32.xlu1 %v2877_v8 }
0x12df   : > { %3037 = vrot.lane.b32.xlu2 %v3036_v22, %s5615_s26  ;;  %2873 = vrot.lane.b32.xlu0 %v5006_v29, %s5615_s26 }
0x12e7   : > { %2670 = vrot.lane.b32.xlu2 %v2669_v7, %s5613_s7  ;;  %s5633_s7 = sld [smem:[#allocation28_spill]] }
0x1331   : > { %v2634_v16 = vpop.permute.xlu2 %2633 }
0x1332   : > { %3813 = vmatpush.xpose.msk.msra.mxu3 %vm1065_vm11, %v2634_v16 }
0x1339   : > { %v3038_v31 = vpop.permute.xlu2 %3037 }
0x133a   : > { %v3040_v55 = vsel %vm5623_vm1, %v3038_v31, 0.0 }
0x133b   : > { %3041 = vadd.xlane.f32.xlu2 %v3040_v55 }
0x1341   : > { %v2671_v9 = vpop.permute.xlu2 %2670 }
0x1342   : > { %3817 = vmatpush.xpose.msk.msrb.mxu2 %vm1065_vm11, %v2671_v9  ;;  %3820 = vmatpush.msk.msrb.mxu1 %vm5624_vm5, %v2671_v9 }
0x1345   : > { %3818 = vmatmul.msk.f32.vlgmr.msrb.gmra.mxu2 %vm1065_vm11, %v4996_v23 }
0x1349   : > { %v2632_v51 = vpop.permute.xlu0 %2631 }
0x134a   : > { %3814 = vmatpush.xpose.msk.msra.mxu3 %vm1065_vm11, %v2632_v51 }
0x134d   : > { %3815 = vmatmul.msk.f32.vlgmr.msra.gmra.mxu3 %vm1065_vm11, %v4996_v23  ;;  %3819 = vmatmul.msk.f32.gmra.mxu2 %vm1065_vm11, %v5006_v29 }
0x134e   : > { %2798 = vmatpush.msrb.mxu3 %v2634_v16 }
0x1350   : > { %2799 = vmatpush.msrb.mxu3 %v2632_v51 }
0x1351   : > { %v2874_v13 = vpop.permute.xlu0 %2873  ;;  %v2879_v17 = vpop.xlane.xlu1 %2878 }
0x1352   : > { %v2880_v14 = vsel %vm1065_vm11, %v2874_v13, 0.0  ;;  %v2883_v47 = vmul.f32 %v2879_v17, %v4492_v2 }
0x1353   : > { %2881 = vadd.xlane.f32.xlu0 %v2880_v14 }
0x1354   : > { %v5132_v37 = vsub.f32 %v4996_v23, %v2883_v47 }
0x1355   : > { %3816 = vmatmul.msk.f32.gmra.mxu3 %vm1065_vm11, %v5006_v29 }
0x1356   : > { %v2887_v30 = vmul.f32 %v5132_v37, %v5132_v37 }
0x1367   : > { %2891 = vrot.lane.b32.xlu0 %v2887_v30, %s5615_s26 }
0x13ae   : > { %v3042_v25 = vpop.xlane.xlu2 %3041 }
0x13af   : > { %v3043_v6 = vmul.f32 %v3042_v25, %v4492_v2 }
0x13b1   : > { %v3045_v39 = vrot.slane %v3043_v6, 1  ;;  %v5138_v40 = vsub.f32 %v3026_v61, %v3043_v6 }
0x13b3   : > { %v5140_v18 = vsub.f32 %v3033_v43, %v3045_v39  ;;  %v3050_v44 = vmul.f32 %v5138_v40, %v5138_v40 }
0x13b5   : > { %v3051_v42 = vmul.f32 %v5140_v18, %v5140_v18 }
0x13b7   : > { %v3054_v20 = vrot.slane %v3051_v42, 7 }
0x13b9   : > { %v3055_v48 = vsel %vm5625_vm2, %v3054_v20, %v3050_v44 }
0x13ba   : > { %3056 = vrot.lane.b32.xlu1 %v3055_v48, %s5615_s26 }
0x13c6   : > { %v2882_v53 = vpop.xlane.xlu0 %2881 }
0x13c7   : > { %v2884_v26 = vmul.f32 %v2882_v53, %v4492_v2 }
0x13c8   : > { %v5160_v57 = vpop.f32.mrf.mxu2 }
0x13c9   : > { %v5150_v54 = vsub.f32 %v5006_v29, %v2884_v26 }
0x13cb   : > { %v2888_v32 = vmul.f32 %v5150_v54, %v5150_v54 }
0x13cd   : > { %2893 = vrot.lane.b32.xlu2 %v2888_v32, %s5615_s26 }
0x13d0   : > { %v2660_v58 = vpop.f32.mrf.mxu3 }
0x13d1   : > { %v5164_v59 = vsel %vm819_vm12, %v2660_v58, -3.4028235e+38 }
0x13d2   : > { %v2701_v60 = vsel %vm1065_vm11, %v5164_v59, -inf }
0x13d8   : > { %v2663_v5 = vpop.f32.mrf.mxu3 }
0x13d9   : > { %v2892_v46 = vpop.permute.xlu0 %2891  ;;  %v5182_v11 = vsel %vm820_vm10, %v2663_v5, -3.4028235e+38 }
0x13da   : > { %v2897_v34 = vsel %vm1065_vm11, %v2892_v46, 0.0  ;;  %v2704_v61 = vsel %vm1065_vm11, %v5182_v11, -inf }
0x13f6   : > { %2898 = vadd.xlane.f32.xlu2 %v2897_v34 }
0x140e   : > { %2934 = vrot.lane.b32.xlu2 %v5085_v49, %s5610_s8  ;;  %v2694_v49 = vpop.f32.mrf.mxu2 }
0x140f   : > { %v5170_v35 = vsel %vm824_vm13, %v2694_v49, -3.4028235e+38 }
0x1410   : > { %v2710_v0 = vsel %vm1377_vm14, %v5170_v35, -inf }
0x1427   : > { %v2894_v19 = vpop.permute.xlu2 %2893 }
0x1428   : > { %v2900_v56 = vsel %vm1065_vm11, %v2894_v19, 0.0 }
0x1429   : > { %2901 = vadd.xlane.f32.xlu0 %v2900_v56 }
0x142c   : > { %v3057_v45 = vpop.permute.xlu1 %3056 }
0x142d   : > { %v3059_v52 = vsel %vm5626_vm8, %v3057_v45, 0.0 }
0x142e   : > { %3060 = vadd.xlane.f32.xlu1 %v3059_v52 }
0x1437   : > { %2702 = vmax.xlane.f32.xlu2 %v2701_v60 }
0x143d   : > { %2929 = vrot.lane.b32.xlu0 %v5068_v3, %s5610_s8 }
0x143f   : > { %2711 = vmax.xlane.f32.xlu2 %v2710_v0  ;;  %v3781_v0 = vld [vmem:[%s5507_s15 + $0x28] sm:$0xff] }
0x1440   : > { %2857 = vmatpush.msra.mxu0 %v3781_v0 }
0x1445   : > { %3085 = vrot.lane.b32.xlu0 %v5077_v4, %s5610_s8 }
0x1447   : > { %3080 = vrot.lane.b32.xlu1 %v5063_v41, %s5610_s8  ;;  %s5630_s8 = sld [smem:[#allocation29_spill]] }
0x144d   : > { %s5631_s24 = smov %s5630_s8 }
0x1469   : > { %v2899_v3 = vpop.xlane.xlu2 %2898 }
0x146a   : > { %v2903_v12 = vmul.f32 %v2899_v3, %v4492_v2 }
0x146c   : > { %v2905_v62 = vadd.f32 1e-05, %v2903_v12 }
0x146e   : > { %4030 = vrsqrt.f32 %v2905_v62  ;;  %vm2913_vm9 = vweird.f32 %v2905_v62 }
0x1471   : > { %2705 = vmax.xlane.f32.xlu1 %v2704_v61  ;;  %v2935_v17 = vpop.permute.xlu2 %2934 }
0x1474   : > { %v4031_v4 = vpop.eup %4030 }
0x1475   : > { %v2908_v43 = vmul.f32 %v4031_v4, %v2905_v62  ;;  %vm2914_vm7 = vweird.f32 %v4031_v4 }
0x1476   : > { %vm2915_vm6 = vmor %vm2913_vm9, %vm2914_vm7  ;;  %vm5628_vm9 = vcmask 1041409  }
0x1477   : > { %v2909_v41 = vmul.f32 %v4031_v4, %v2908_v43 }
0x1479   : > { %v2910_v63 = vmul.f32 0.5, %v2909_v41 }
0x147b   : > { %v2911_v10 = vsub.f32 1.5, %v2910_v63 }
0x147d   : > { %v2912_v15 = vmul.f32 %v4031_v4, %v2911_v10 }
0x147f   : > { %v2916_v31 = vsel %vm2915_vm6, %v4031_v4, %v2912_v15  ;;  %vm5629_vm6 = vcmask 1041408  }
0x1480   : > { %v2927_v9 = vmul.f32 %v2916_v31, %v5132_v37 }
0x148a   : > { %3090 = vrot.lane.b32.xlu1 %v4996_v23, %s5627_s2 }
0x149c   : > { %v2902_v36 = vpop.xlane.xlu0 %2901 }
0x149d   : > { %v2904_v8 = vmul.f32 %v2902_v36, %v4492_v2 }
0x149f   : > { %v2906_v22 = vadd.f32 1e-05, %v2904_v8 }
0x14a1   : > { %4032 = vrsqrt.f32 %v2906_v22  ;;  %vm2923_vm1 = vweird.f32 %v2906_v22  ;;  %v3061_v39 = vpop.xlane.xlu1 %3060 }
0x14a2   : > { %v3062_v44 = vmul.f32 %v3061_v39, %v4492_v2 }
0x14a4   : > { %v3063_v37 = vadd.f32 1e-05, %v3062_v44 }
0x14a6   : > { %4034 = vrsqrt.f32 %v3063_v37  ;;  %vm3070_vm8 = vweird.f32 %v3063_v37 }
0x14a7   : > { %v4033_v1 = vpop.eup %4032 }
0x14a8   : > { %v2918_v7 = vmul.f32 %v4033_v1, %v2906_v22  ;;  %vm2924_vm4 = vweird.f32 %v4033_v1 }
0x14a9   : > { %vm2925_vm5 = vmor %vm2923_vm1, %vm2924_vm4 }
0x14aa   : > { %v2919_v16 = vmul.f32 %v4033_v1, %v2918_v7 }
0x14ac   : > { %v2920_v23 = vmul.f32 0.5, %v2919_v16  ;;  %v4035_v20 = vpop.eup %4034 }
0x14ad   : > { %v3065_v48 = vmul.f32 %v4035_v20, %v3063_v37  ;;  %vm3071_vm2 = vweird.f32 %v4035_v20 }
0x14ae   : > { %v2921_v55 = vsub.f32 1.5, %v2920_v23  ;;  %vm3072_vm7 = vmor %vm3070_vm8, %vm3071_vm2 }
0x14af   : > { %v2930_v51 = vpop.permute.xlu0 %2929  ;;  %v3066_v53 = vmul.f32 %v4035_v20, %v3065_v48 }
0x14b0   : > { %v2922_v13 = vmul.f32 %v4033_v1, %v2921_v55  ;;  %v2932_v14 = vmul.f32 %v2930_v51, %v2927_v9 }
0x14b1   : > { %v3067_v26 = vmul.f32 0.5, %v3066_v53 }
0x14b2   : > { %v2926_v47 = vsel %vm2925_vm5, %v4033_v1, %v2922_v13  ;;  %v2937_v30 = vadd.f32 %v2935_v17, %v2932_v14 }
0x14b3   : > { %v2928_v25 = vmul.f32 %v2926_v47, %v5150_v54  ;;  %v3068_v32 = vsub.f32 1.5, %v3067_v26  ;;  %v2699_v54 = vsel %vm823_vm15, %v5160_v57, -3.4028235e+38 }
0x14b4   : > { %3096 = vrot.lane.b32.xlu2 %v2937_v30, %s5615_s26  ;;  %v2707_v56 = vsel %vm1377_vm14, %v2699_v54, -inf }
0x14b5   : > { %v2933_v6 = vmul.f32 %v2930_v51, %v2928_v25  ;;  %v3069_v46 = vmul.f32 %v4035_v20, %v3068_v32 }
0x14b7   : > { %v2938_v42 = vadd.f32 %v2935_v17, %v2933_v6  ;;  %v3073_v34 = vsel %vm3072_vm7, %v4035_v20, %v3069_v46  ;;  %v3086_v60 = vpop.permute.xlu0 %3085 }
0x14b8   : > { %v3075_v19 = vrot.slane %v3073_v34, 1  ;;  %v3078_v58 = vmul.f32 %v3073_v34, %v5138_v40  ;;  %v3780_v40 = vld [vmem:[%s5507_s15 + $0x20] sm:$0xff] }
0x14b9   : > { %3098 = vrot.lane.b32.xlu0 %v2938_v42, %s5615_s26  ;;  %v3081_v45 = vpop.permute.xlu1 %3080  ;;  %2858 = vmatpush.msra.mxu0 %v3780_v40 }
0x14ba   : > { %v3079_v2 = vmul.f32 %v3075_v19, %v5140_v18  ;;  %v3083_v5 = vmul.f32 %v3081_v45, %v3078_v58  ;;  %v2703_v18 = vpop.xlane.xlu2 %2702 }
0x14bc   : > { %v3084_v52 = vmul.f32 %v3081_v45, %v3079_v2  ;;  %v3088_v61 = vadd.f32 %v3086_v60, %v3083_v5 }
0x14be   : > { %v3089_v49 = vadd.f32 %v3086_v60, %v3084_v52 }
0x14c0   : > { %v3133_v57 = vrot.slane %v3089_v49, 7 }
0x14c2   : > { %v3134_v3 = vsel %vm5628_vm9, %v3133_v57, %v3088_v61  ;;  %v2712_v62 = vpop.xlane.xlu2 %2711 }
0x14e3   : > { %2708 = vmax.xlane.f32.xlu0 %v2707_v56 }
0x14e4   : > { %v2706_v12 = vpop.xlane.xlu1 %2705 }
0x14e5   : > { %v2714_v4 = vmax.f32 %v2706_v12, %v2712_v62 }
0x14e7   : > { %v2716_v43 = vsub.f32 %v5182_v11, %v2714_v4  ;;  %v2724_v15 = vsub.f32 %v5170_v35, %v2714_v4 }
0x14e9   : > { %v2719_v41 = vmul.f32 1.442695, %v2716_v43  ;;  %v2727_v55 = vmul.f32 1.442695, %v2724_v15 }
0x14eb   : > { %4036 = vpow2.f32 %v2719_v41 }
0x14f1   : > { %v4037_v36 = vpop.eup %4036 }
0x14f2   : > { %v2722_v8 = vsel %vm820_vm10, %v4037_v36, 0.0 }
0x14f3   : > { %v2734_v63 = vsel %vm1065_vm11, %v2722_v8, 0.0 }
0x14f7   : > { %3135 = vrot.lane.b32.xlu0 %v3134_v3, %s5615_s26  ;;  %s5635_s26 = sld [smem:[#allocation9_spill]] }
0x14fc   : > { %v3091_v10 = vpop.permute.xlu1 %3090 }
0x14ff   : > { %3092 = vrot.lane.b32.xlu0 %v5006_v29, %s5627_s2 }
0x150e   : > { %v3097_v22 = vpop.permute.xlu2 %3096 }
0x1529   : > { %2735 = vadd.xlane.f32.xlu0 %v2734_v63 }
0x152b   : > { %v3099_v29 = vpop.permute.xlu0 %3098 }
0x152c   : > { %3827 = vmatpush.xpose.msk.msra.mxu2 %vm1065_vm11, %v3099_v29  ;;  %3263 = vmatpush.msrb.mxu0 %v3099_v29 }
0x152e   : > { %3264 = vmatpush.msrb.mxu0 %v3097_v22 }
0x1530   : > { %3828 = vmatpush.xpose.msk.msra.mxu2 %vm1065_vm11, %v3097_v22 }
0x1533   : > { %3829 = vmatmul.msk.f32.vlgmr.msra.gmra.mxu2 %vm1065_vm11, %v3091_v10 }
0x1556   : > { %v2709_v11 = vpop.xlane.xlu0 %2708 }
0x1557   : > { %v2713_v1 = vmax.f32 %v2703_v18, %v2709_v11 }
0x1559   : > { %v2715_v7 = vsub.f32 %v5164_v59, %v2713_v1  ;;  %v2723_v16 = vsub.f32 %v2699_v54, %v2713_v1 }
0x155b   : > { %v2717_v31 = vmul.f32 1.442695, %v2715_v7  ;;  %v2725_v23 = vmul.f32 1.442695, %v2723_v16 }
0x155d   : > { %4038 = vpow2.f32 %v2717_v31 }
0x155e   : > { %4040 = vpow2.f32 %v2725_v23 }
0x155f   : > { %4042 = vpow2.f32 %v2727_v55 }
0x1563   : > { %v4039_v9 = vpop.eup %4038 }
0x1564   : > { %v4041_v51 = vpop.eup %4040  ;;  %v2721_v13 = vsel %vm819_vm12, %v4039_v9, 0.0 }
0x1565   : > { %v2729_v14 = vsel %vm823_vm15, %v4041_v51, 0.0  ;;  %3823 = vmatmul.msk.f32.vlgmr.msrb.gmra.mxu3 %vm1065_vm11, %v2721_v13  ;;  %v2731_v35 = vsel %vm1065_vm11, %v2721_v13, 0.0  ;;  %v4043_v17 = vpop.eup %4042 }
0x1566   : > { %3821 = vmatmul.msk.f32.vlgmr.msrb.gmra.mxu1 %vm1377_vm14, %v2729_v14  ;;  %2732 = vadd.xlane.f32.xlu2 %v2731_v35  ;;  %v2737_v59 = vsel %vm1377_vm14, %v2729_v14, 0.0  ;;  %v2730_v30 = vsel %vm824_vm13, %v4043_v17, 0.0 }
0x1567   : > { %2738 = vadd.xlane.f32.xlu1 %v2737_v59  ;;  %v2740_v25 = vsel %vm1377_vm14, %v2730_v30, 0.0 }
0x1569   : > { %v3136_v47 = vpop.permute.xlu0 %3135 }
0x156a   : > { %3831 = vmatpush.xpose.msk.msra.mxu1 %vm1065_vm11, %v3136_v47  ;;  %3834 = vmatpush.msk.msra.mxu3 %vm5629_vm6, %v3136_v47 }
0x156d   : > { %3824 = vmatmul.msk.f32.gmra.mxu3 %vm1065_vm11, %v2722_v8 }
0x156e   : > { %3822 = vmatmul.msk.f32.gmra.mxu1 %vm1377_vm14, %v2730_v30  ;;  %2741 = vadd.xlane.f32.xlu2 %v2740_v25 }
0x1571   : > { %v3093_v6 = vpop.permute.xlu0 %3092 }
0x1572   : > { %3830 = vmatmul.msk.f32.gmra.mxu2 %vm1065_vm11, %v3093_v6 }
0x1576   : > { %3832 = vmatmul.msk.f32.vlgmr.msra.gmra.mxu1 %vm1065_vm11, %v3091_v10 }
0x157e   : > { %3833 = vmatmul.msk.f32.gmra.mxu1 %vm1065_vm11, %v3093_v6 }
0x159c   : > { %v2736_v53 = vpop.xlane.xlu0 %2735 }
0x15b6   : > { %v3125_v39 = vpop.f32.mrf.mxu2 }
0x15b7   : > { %v5240_v42 = vsel %vm819_vm12, %v3125_v39, -3.4028235e+38 }
0x15b8   : > { %v3166_v44 = vsel %vm1065_vm11, %v5240_v42, -inf }
0x15b9   : > { %3167 = vmax.xlane.f32.xlu1 %v3166_v44 }
0x15d9   : > { %v2733_v37 = vpop.xlane.xlu2 %2732 }
0x15da   : > { %v2739_v20 = vpop.xlane.xlu1 %2738 }
0x15db   : > { %v2743_v48 = vadd.f32 %v2739_v20, %v2733_v37 }
0x15dd   : > { %4044 = vrcp.f32 %v2743_v48  ;;  %v2818_v56 = vand.u32 2147483648, %v2743_v48  ;;  %v2816_v52 = vand.u32 2147483647, %v2743_v48  ;;  %vm2812_vm1 = vweird.f32 %v2743_v48 }
0x15df   : > { %v2819_v0 = vor.u32 1.1754944e-38, %v2818_v56  ;;  %vm2817_vm2 = vcmp.eq.f32.partialorder %v2816_v52, 8.507059e+37  ;;  %v3783_v56 = vld [vmem:[%s5507_s15 + $0x38] sm:$0xff] }
0x15e0   : > { %3322 = vmatpush.msrb.mxu2 %v3783_v56 }
0x15e1   : > { %v2742_v26 = vpop.xlane.xlu2 %2741 }
0x15e2   : > { %v2744_v32 = vadd.f32 %v2742_v26, %v2736_v53  ;;  %3323 = vmatpush.msrb.mxu2 %v3782_v33 }
0x15e3   : > { %v4045_v46 = vpop.eup %4044  ;;  %v2770_v54 = vpop.f32.mrf.mxu1 }
0x15e4   : > { %v2808_v34 = vmul.f32 %v4045_v46, %v2743_v48  ;;  %4046 = vrcp.f32 %v2744_v32  ;;  %vm2813_vm4 = vweird.f32 %v4045_v46  ;;  %v2833_v12 = vand.u32 2147483648, %v2744_v32 }
0x15e5   : > { %vm2814_vm5 = vmor %vm2812_vm1, %vm2813_vm4  ;;  %v2831_v4 = vand.u32 2147483647, %v2744_v32  ;;  %vm2827_vm7 = vweird.f32 %v2744_v32 }
0x15e6   : > { %v2809_v19 = vsub.f32 1.0, %v2808_v34  ;;  %v2834_v36 = vor.u32 1.1754944e-38, %v2833_v12 }
0x15e7   : > { %vm2832_vm6 = vcmp.eq.f32.partialorder %v2831_v4, 8.507059e+37 }
0x15e8   : > { %v2801_v2 = vpop.f32.mrf.mxu3  ;;  %v2810_v45 = vmul.f32 %v4045_v46, %v2809_v19 }
0x15e9   : > { %v2802_v57 = vadd.f32 %v2801_v2, %v2770_v54 }
0x15ea   : > { %v4047_v58 = vpop.eup %4046  ;;  %v2811_v60 = vadd.f32 %v4045_v46, %v2810_v45 }
0x15eb   : > { %v2823_v49 = vmul.f32 %v4047_v58, %v2744_v32  ;;  %v2773_v5 = vpop.f32.mrf.mxu1  ;;  %vm2828_vm8 = vweird.f32 %v4047_v58 }
0x15ec   : > { %v2815_v61 = vsel %vm2814_vm5, %v4045_v46, %v2811_v60  ;;  %vm2829_vm9 = vmor %vm2827_vm7, %vm2828_vm8 }
0x15ed   : > { %v2824_v3 = vsub.f32 1.0, %v2823_v49  ;;  %v2820_v18 = vsel %vm2817_vm2, %v2819_v0, %v2815_v61 }
0x15ee   : > { %v2821_v40 = vmul.f32 %v2820_v18, %v2802_v57 }
0x15ef   : > { %v2825_v62 = vmul.f32 %v4047_v58, %v2824_v3 }
0x15f0   : > { %3825 = vmatmul.msk.f32.vlgmr.msra.gmra.mxu0 %vm1065_vm11, %v2821_v40  ;;  %v2804_v43 = vpop.f32.mrf.mxu3 }
0x15f1   : > { %v2826_v41 = vadd.f32 %v4047_v58, %v2825_v62  ;;  %v2805_v8 = vadd.f32 %v2804_v43, %v2773_v5 }
0x15f3   : > { %v2830_v63 = vsel %vm2829_vm9, %v4047_v58, %v2826_v41  ;;  %v3156_v29 = vpop.f32.mrf.mxu1 }
0x15f4   : > { %v2835_v22 = vsel %vm2832_vm6, %v2834_v36, %v2830_v63  ;;  %v3164_v10 = vsel %vm823_vm15, %v3156_v29, -3.4028235e+38 }
0x15f5   : > { %v2836_v11 = vmul.f32 %v2835_v22, %v2805_v8  ;;  %v3172_v1 = vsel %vm1377_vm14, %v3164_v10, -inf  ;;  %v3128_v15 = vpop.f32.mrf.mxu2 }
0x15f6   : > { %3173 = vmax.xlane.f32.xlu0 %v3172_v1  ;;  %v3163_v7 = vsel %vm820_vm10, %v3128_v15, -3.4028235e+38 }
0x15f7   : > { %v3169_v16 = vsel %vm1065_vm11, %v3163_v7, -inf }
0x15f8   : > { %3826 = vmatmul.msk.f32.gmra.mxu0 %vm1065_vm11, %v2836_v11  ;;  %3170 = vmax.xlane.f32.xlu2 %v3169_v16 }
0x15fb   : > { %v3159_v31 = vpop.f32.mrf.mxu1 }
0x15fc   : > { %v3165_v23 = vsel %vm824_vm13, %v3159_v31, -3.4028235e+38 }
0x15fd   : > { %v3175_v55 = vsel %vm1377_vm14, %v3165_v23, -inf }
0x15fe   : > { %3176 = vmax.xlane.f32.xlu1 %v3175_v55 }
0x162c   : > { %v3168_v9 = vpop.xlane.xlu1 %3167 }
0x1669   : > { %v3174_v51 = vpop.xlane.xlu0 %3173 }
0x166a   : > { %v3178_v13 = vmax.f32 %v3168_v9, %v3174_v51 }
0x166b   : > { %v3171_v47 = vpop.xlane.xlu2 %3170 }
0x166c   : > { %v3180_v14 = vsub.f32 %v5240_v42, %v3178_v13  ;;  %v3188_v35 = vsub.f32 %v3164_v10, %v3178_v13 }
0x166d   : > { %v2860_v38 = vpop.f32.mrf.mxu0 }
0x166e   : > { %v3182_v59 = vmul.f32 1.442695, %v3180_v14  ;;  %v3190_v17 = vmul.f32 1.442695, %v3188_v35  ;;  %v3924_v14 = vld [vmem:[%s5508_s16 + $0x1] ss:$0 sm:$0xff] }
0x166f   : > { %v2869_v35 = vadd.f32 %v3924_v14, %v2860_v38 }
0x1670   : > { %4048 = vpow2.f32 %v3182_v59 }
0x1671   : > { %4050 = vpow2.f32 %v3190_v17  ;;  %v3177_v30 = vpop.xlane.xlu1 %3176 }
0x1672   : > { %v3179_v25 = vmax.f32 %v3171_v47, %v3177_v30 }
0x1674   : > { %v3181_v6 = vsub.f32 %v3163_v7, %v3179_v25  ;;  %v3189_v39 = vsub.f32 %v3165_v23, %v3179_v25 }
0x1675   : > { %v2863_v58 = vpop.f32.mrf.mxu0 }
0x1676   : > { %v4049_v44 = vpop.eup %4048  ;;  %v3184_v37 = vmul.f32 1.442695, %v3181_v6  ;;  %v3192_v20 = vmul.f32 1.442695, %v3189_v39  ;;  %v2870_v25 = vadd.f32 %v3924_v14, %v2863_v58 }
0x1677   : > { %v4051_v48 = vpop.eup %4050  ;;  %v3186_v53 = vsel %vm819_vm12, %v4049_v44, 0.0 }
0x1678   : > { %4052 = vpow2.f32 %v3184_v37  ;;  %v3194_v42 = vsel %vm823_vm15, %v4051_v48, 0.0  ;;  %3837 = vmatmul.msk.f32.vlgmr.msrb.gmra.mxu0 %vm1065_vm11, %v3186_v53  ;;  %v3196_v26 = vsel %vm1065_vm11, %v3186_v53, 0.0 }
0x1679   : > { %4054 = vpow2.f32 %v3192_v20  ;;  %3835 = vmatmul.msk.f32.vlgmr.msra.gmra.mxu3 %vm1377_vm14, %v3194_v42  ;;  %v3202_v32 = vsel %vm1377_vm14, %v3194_v42, 0.0  ;;  %3197 = vadd.xlane.f32.xlu0 %v3196_v26 }
0x167a   : > { %3203 = vadd.xlane.f32.xlu2 %v3202_v32 }
0x167e   : > { %v4053_v46 = vpop.eup %4052 }
0x167f   : > { %v4055_v54 = vpop.eup %4054  ;;  %v3187_v21 = vsel %vm820_vm10, %v4053_v46, 0.0 }
0x1680   : > { %v3195_v50 = vsel %vm824_vm13, %v4055_v54, 0.0  ;;  %3838 = vmatmul.msk.f32.gmra.mxu0 %vm1065_vm11, %v3187_v21  ;;  %v3199_v34 = vsel %vm1065_vm11, %v3187_v21, 0.0  ;;  %v3790_v21 = vld [vmem:[%s5511_s19 + $0x38] sm:$0xff] }
0x1681   : > { %3836 = vmatmul.msk.f32.gmra.mxu3 %vm1377_vm14, %v3195_v50  ;;  %v3205_v19 = vsel %vm1377_vm14, %v3195_v50, 0.0  ;;  %3200 = vadd.xlane.f32.xlu1 %v3199_v34  ;;  %v3789_v50 = vld [vmem:[%s5511_s19 + $0x30] sm:$0xff]  ;;  %v3788_v34 = vld [vmem:[%s5511_s19 + $0x28] sm:$0xff] }
0x1682   : > { %3206 = vadd.xlane.f32.xlu0 %v3205_v19  ;;  %3410 = vmatpush.msrb.mxu1 %v3790_v21  ;;  %v3787_v19 = vld [vmem:[%s5511_s19 + $0x20] sm:$0xff] }
0x1684   : > { %3411 = vmatpush.msrb.mxu1 %v3789_v50 }
0x1686   : > { %3412 = vmatpush.msrb.mxu1 %v3788_v34 }
0x1688   : > { %3413 = vmatpush.msrb.mxu1 %v3787_v19  ;;  %v3804_v19 = vld [vmem:[%s5513_s21 + $0xe0] sm:$0xff] }
0x16ec   : > { %v3198_v2 = vpop.xlane.xlu0 %3197 }
0x16ed   : > { %v3204_v45 = vpop.xlane.xlu2 %3203 }
0x16ee   : > { %v3208_v52 = vadd.f32 %v3204_v45, %v3198_v2 }
0x16f0   : > { %4056 = vrcp.f32 %v3208_v52  ;;  %v3283_v3 = vand.u32 2147483648, %v3208_v52  ;;  %v3281_v40 = vand.u32 2147483647, %v3208_v52  ;;  %vm3277_vm12 = vweird.f32 %v3208_v52 }
0x16f2   : > { %v3284_v41 = vor.u32 1.1754944e-38, %v3283_v3  ;;  %vm3282_vm14 = vcmp.eq.f32.partialorder %v3281_v40, 8.507059e+37 }
0x16f4   : > { %v3201_v60 = vpop.xlane.xlu1 %3200 }
0x16f5   : > { %v3207_v49 = vpop.xlane.xlu0 %3206  ;;  %v3266_v12 = vpop.f32.mrf.mxu0 }
0x16f6   : > { %v4057_v0 = vpop.eup %4056  ;;  %v3209_v5 = vadd.f32 %v3207_v49, %v3201_v60 }
0x16f7   : > { %v3273_v57 = vmul.f32 %v4057_v0, %v3208_v52  ;;  %vm3278_vm10 = vweird.f32 %v4057_v0 }
0x16f8   : > { %4058 = vrcp.f32 %v3209_v5  ;;  %vm3279_vm13 = vmor %vm3277_vm12, %vm3278_vm10  ;;  %v3298_v11 = vand.u32 2147483648, %v3209_v5  ;;  %v3296_v15 = vand.u32 2147483647, %v3209_v5  ;;  %vm3292_vm4 = vweird.f32 %v3209_v5 }
0x16f9   : > { %v3274_v61 = vsub.f32 1.0, %v3273_v57 }
0x16fa   : > { %v3299_v23 = vor.u32 1.1754944e-38, %v3298_v11  ;;  %vm3297_vm5 = vcmp.eq.f32.partialorder %v3296_v15, 8.507059e+37 }
0x16fb   : > { %v3275_v18 = vmul.f32 %v4057_v0, %v3274_v61 }
0x16fc   : > { %v3235_v62 = vpop.f32.mrf.mxu3 }
0x16fd   : > { %v3276_v4 = vadd.f32 %v4057_v0, %v3275_v18  ;;  %v3267_v8 = vadd.f32 %v3266_v12, %v3235_v62  ;;  %v3269_v31 = vpop.f32.mrf.mxu0  ;;  %v3925_v18 = vld [vmem:[%s5509_s17 + $0x1] ss:$0 sm:$0xff] }
0x16fe   : > { %v4059_v43 = vpop.eup %4058 }
0x16ff   : > { %v3288_v36 = vmul.f32 %v4059_v43, %v3209_v5  ;;  %v3280_v63 = vsel %vm3279_vm13, %v4057_v0, %v3276_v4  ;;  %vm3293_vm15 = vweird.f32 %v4059_v43  ;;  %v3926_v4 = vld [vmem:[%s5510_s18 + $0x1] ss:$0 sm:$0xff] }
0x1700   : > { %v3285_v29 = vsel %vm3282_vm14, %v3284_v41, %v3280_v63  ;;  %vm3294_vm1 = vmor %vm3292_vm4, %vm3293_vm15 }
0x1701   : > { %v3289_v22 = vsub.f32 1.0, %v3288_v36  ;;  %v3286_v10 = vmul.f32 %v3285_v29, %v3267_v8 }
0x1703   : > { %3839 = vmatmul.msk.f32.vlgmr.msrb.gmra.mxu2 %vm1065_vm11, %v3286_v10  ;;  %v3290_v1 = vmul.f32 %v4059_v43, %v3289_v22 }
0x1704   : > { %v3238_v7 = vpop.f32.mrf.mxu3 }
0x1705   : > { %v3291_v16 = vadd.f32 %v4059_v43, %v3290_v1  ;;  %v3270_v55 = vadd.f32 %v3269_v31, %v3238_v7  ;;  %v3927_v1 = vld [vmem:[%s5512_s20 + $0x1] ss:$0 sm:$0xff] }
0x1707   : > { %v3295_v9 = vsel %vm3294_vm1, %v4059_v43, %v3291_v16 }
0x1708   : > { %v3300_v51 = vsel %vm3297_vm5, %v3299_v23, %v3295_v9 }
0x1709   : > { %v3301_v13 = vmul.f32 %v3300_v51, %v3270_v55 }
0x170b   : > { %3840 = vmatmul.msk.f32.gmra.mxu2 %vm1065_vm11, %v3301_v13 }
0x1786   : > { %v3325_v59 = vpop.f32.mrf.mxu2 }
0x1787   : > { %v3331_v17 = vadd.f32 %v3325_v59, %v2869_v35 }
0x1789   : > { %v5284_v47 = vadd.f32 %v3331_v17, %v4944_v24 }
0x178b   : > { %v3335_v30 = vsel %vm931_vm3, %v5284_v47, 0.0 }
0x178c   : > { %3336 = vadd.xlane.f32.xlu2 %v3335_v30 }
0x178e   : > { %v3328_v6 = vpop.f32.mrf.mxu2 }
0x178f   : > { %v3332_v39 = vadd.f32 %v3328_v6, %v2870_v25 }
0x1791   : > { %v5289_v44 = vadd.f32 %v3332_v39, %v4949_v27 }
0x1793   : > { %v3338_v37 = vsel %vm931_vm3, %v5289_v44, 0.0 }
0x1794   : > { %3339 = vadd.xlane.f32.xlu1 %v3338_v37 }
0x17ff   : > { %v3337_v20 = vpop.xlane.xlu2 %3336 }
0x1800   : > { %v3341_v48 = vmul.f32 %v3337_v20, %v4390_v28 }
0x1802   : > { %v3343_v24 = vsub.f32 %v5284_v47, %v3341_v48  ;;  %v3807_v48 = vld [vmem:[%s5513_s21 + $0xf8] sm:$0xff] }
0x1803   : > { %3521 = vmatpush.msrb.mxu3 %v3807_v48 }
0x1804   : > { %v3345_v53 = vmul.f32 %v3343_v24, %v3343_v24 }
0x1806   : > { %v3347_v42 = vsel %vm931_vm3, %v3345_v53, 0.0 }
0x1807   : > { %3348 = vadd.xlane.f32.xlu0 %v3347_v42  ;;  %v3340_v26 = vpop.xlane.xlu1 %3339 }
0x1808   : > { %v3342_v32 = vmul.f32 %v3340_v26, %v4390_v28  ;;  %v3806_v26 = vld [vmem:[%s5513_s21 + $0xf0] sm:$0xff] }
0x1809   : > { %3522 = vmatpush.msrb.mxu3 %v3806_v26 }
0x180a   : > { %v3344_v46 = vsub.f32 %v5289_v44, %v3342_v32 }
0x180c   : > { %v3346_v27 = vmul.f32 %v3344_v46, %v3344_v46 }
0x180e   : > { %v3350_v54 = vsel %vm931_vm3, %v3346_v27, 0.0 }
0x180f   : > { %3351 = vadd.xlane.f32.xlu2 %v3350_v54  ;;  %v3805_v54 = vld [vmem:[%s5513_s21 + $0xe8] sm:$0xff] }
0x1810   : > { %3523 = vmatpush.msrb.mxu3 %v3805_v54 }
0x1812   : > { %3524 = vmatpush.msrb.mxu3 %v3804_v19 }
0x187a   : > { %v3349_v56 = vpop.xlane.xlu0 %3348 }
0x187b   : > { %v3353_v33 = vmul.f32 %v3349_v56, %v4390_v28 }
0x187d   : > { %v3355_v38 = vadd.f32 1e-05, %v3353_v33 }
0x187f   : > { %4060 = vrsqrt.f32 %v3355_v38  ;;  %vm3363_vm2 = vweird.f32 %v3355_v38 }
0x1882   : > { %v3352_v2 = vpop.xlane.xlu2 %3351 }
0x1883   : > { %v3354_v45 = vmul.f32 %v3352_v2, %v4390_v28  ;;  %v3803_v2 = vld [vmem:[%s5513_s21 + $0xd8] sm:$0xff] }
0x1884   : > { %3525 = vmatpush.msrb.mxu3 %v3803_v2 }
0x1885   : > { %v4061_v52 = vpop.eup %4060  ;;  %v3356_v58 = vadd.f32 1e-05, %v3354_v45 }
0x1886   : > { %v3358_v60 = vmul.f32 %v4061_v52, %v3355_v38  ;;  %vm3364_vm11 = vweird.f32 %v4061_v52 }
0x1887   : > { %4062 = vrsqrt.f32 %v3356_v58  ;;  %vm3365_vm8 = vmor %vm3363_vm2, %vm3364_vm11  ;;  %vm3373_vm9 = vweird.f32 %v3356_v58 }
0x1888   : > { %v3359_v49 = vmul.f32 %v4061_v52, %v3358_v60  ;;  %v3802_v60 = vld [vmem:[%s5513_s21 + $0xd0] sm:$0xff] }
0x1889   : > { %3526 = vmatpush.msrb.mxu3 %v3802_v60 }
0x188a   : > { %v3360_v0 = vmul.f32 0.5, %v3359_v49 }
0x188c   : > { %v3361_v5 = vsub.f32 1.5, %v3360_v0 }
0x188d   : > { %v4063_v57 = vpop.eup %4062 }
0x188e   : > { %v3362_v61 = vmul.f32 %v4061_v52, %v3361_v5  ;;  %v3368_v3 = vmul.f32 %v4063_v57, %v3356_v58  ;;  %vm3374_vm7 = vweird.f32 %v4063_v57 }
0x188f   : > { %vm3375_vm6 = vmor %vm3373_vm9, %vm3374_vm7 }
0x1890   : > { %v3366_v40 = vsel %vm3365_vm8, %v4061_v52, %v3362_v61  ;;  %v3369_v12 = vmul.f32 %v4063_v57, %v3368_v3 }
0x1891   : > { %v3377_v62 = vmul.f32 %v3366_v40, %v3343_v24 }
0x1892   : > { %v3370_v43 = vmul.f32 0.5, %v3369_v12 }
0x1893   : > { %v3382_v41 = vmul.f32 %v3925_v18, %v3377_v62  ;;  %v3799_v62 = vld [vmem:[%s5513_s21 + $0xb8] sm:$0xff] }
0x1894   : > { %v3371_v36 = vsub.f32 1.5, %v3370_v43 }
0x1895   : > { %v3387_v8 = vadd.f32 %v3926_v4, %v3382_v41  ;;  %v3798_v41 = vld [vmem:[%s5513_s21 + $0xb0] sm:$0xff] }
0x1896   : > { %v3372_v63 = vmul.f32 %v4063_v57, %v3371_v36 }
0x1897   : > { %3841 = vmatmul.msk.f32.vlgmr.msrb.gmra.mxu1 %vm931_vm3, %v3387_v8 }
0x1898   : > { %v3376_v29 = vsel %vm3375_vm6, %v4063_v57, %v3372_v63  ;;  %v3801_v57 = vld [vmem:[%s5513_s21 + $0xc8] sm:$0xff] }
0x1899   : > { %v3378_v22 = vmul.f32 %v3376_v29, %v3344_v46  ;;  %3527 = vmatpush.msrb.mxu3 %v3801_v57  ;;  %v3797_v63 = vld [vmem:[%s5513_s21 + $0xa8] sm:$0xff] }
0x189b   : > { %v3383_v10 = vmul.f32 %v3925_v18, %v3378_v22  ;;  %v3800_v18 = vld [vmem:[%s5513_s21 + $0xc0] sm:$0xff] }
0x189c   : > { %3528 = vmatpush.msrb.mxu3 %v3800_v18 }
0x189d   : > { %v3388_v11 = vadd.f32 %v3926_v4, %v3383_v10  ;;  %v3796_v10 = vld [vmem:[%s5513_s21 + $0xa0] sm:$0xff] }
0x189e   : > { %3529 = vmatpush.msrb.mxu3 %v3799_v62 }
0x189f   : > { %3842 = vmatmul.msk.f32.gmra.mxu1 %vm931_vm3, %v3388_v11 }
0x18a0   : > { %3530 = vmatpush.msrb.mxu3 %v3798_v41 }
0x18a2   : > { %3531 = vmatpush.msrb.mxu3 %v3797_v63 }
0x18a4   : > { %3532 = vmatpush.msrb.mxu3 %v3796_v10 }
0x1914   : > { %v3415_v15 = vpop.f32.mrf.mxu1 }
0x1915   : > { %v5324_v7 = vadd.f32 %v3927_v1, %v3415_v15  ;;  %v3795_v15 = vld [vmem:[%s5513_s21 + $0x98] sm:$0xff] }
0x1916   : > { %3533 = vmatpush.msrb.mxu3 %v3795_v15 }
0x1917   : > { %v5327_v16 = vmul.f32 0.70710677, %v5324_v7  ;;  %v3421_v57 = vmul.f32 0.5, %v5324_v7  ;;  %v3928_v7 = vld [vmem:[%s5514_s22 + $0x1] ss:$0 sm:$0xff] }
0x1919   : > { %v5330_v31 = vand.u32 2147483647, %v5327_v16  ;;  %vm3511_vm11 = vcmp.ge.f32.partialorder %v5327_v16, 0.0 }
0x191b   : > { %v3427_v23 = vmul.f32 0.5, %v5330_v31 }
0x191c   : > { %v3418_v55 = vpop.f32.mrf.mxu1 }
0x191d   : > { %v3429_v9 = vadd.f32 1.0, %v3427_v23  ;;  %v5333_v51 = vadd.f32 %v3927_v1, %v3418_v55 }
0x191f   : > { %4064 = vrcp.f32 %v3429_v9  ;;  %v5336_v13 = vmul.f32 0.70710677, %v5333_v51  ;;  %v3442_v6 = vand.u32 2147483648, %v3429_v9  ;;  %v3440_v37 = vand.u32 2147483647, %v3429_v9 }
0x1920   : > { %vm3436_vm12 = vweird.f32 %v3429_v9  ;;  %v3422_v62 = vmul.f32 0.5, %v5333_v51 }
0x1921   : > { %v5339_v14 = vand.u32 2147483647, %v5336_v13  ;;  %v3443_v24 = vor.u32 1.1754944e-38, %v3442_v6  ;;  %vm3441_vm14 = vcmp.eq.f32.partialorder %v3440_v37, 8.507059e+37  ;;  %vm3512_vm2 = vcmp.ge.f32.partialorder %v5336_v13, 0.0 }
0x1923   : > { %v3428_v35 = vmul.f32 0.5, %v5339_v14 }
0x1925   : > { %v4065_v59 = vpop.eup %4064  ;;  %v3430_v30 = vadd.f32 1.0, %v3428_v35 }
0x1926   : > { %v3432_v17 = vmul.f32 %v4065_v59, %v3429_v9  ;;  %vm3437_vm10 = vweird.f32 %v4065_v59  ;;  %v3794_v9 = vld [vmem:[%s5513_s21 + $0x90] sm:$0xff] }
0x1927   : > { %4066 = vrcp.f32 %v3430_v30  ;;  %vm3438_vm13 = vmor %vm3436_vm12, %vm3437_vm10  ;;  %v3457_v34 = vand.u32 2147483648, %v3430_v30  ;;  %v3455_v33 = vand.u32 2147483647, %v3430_v30  ;;  %vm3451_vm4 = vweird.f32 %v3430_v30  ;;  %3534 = vmatpush.msrb.mxu3 %v3794_v9 }
0x1928   : > { %v3433_v25 = vsub.f32 1.0, %v3432_v17  ;;  %v3793_v17 = vld [vmem:[%s5513_s21 + $0x88] sm:$0xff] }
0x1929   : > { %v3458_v58 = vor.u32 1.1754944e-38, %v3457_v34  ;;  %vm3456_vm5 = vcmp.eq.f32.partialorder %v3455_v33, 8.507059e+37  ;;  %3535 = vmatpush.msrb.mxu3 %v3793_v17  ;;  %v3607_v17 = vld [vmem:[%s5631_s24] sm:$0xff] }
0x192a   : > { %v3434_v39 = vmul.f32 %v4065_v59, %v3433_v25 }
0x192c   : > { %v3435_v20 = vadd.f32 %v4065_v59, %v3434_v39 }
0x192d   : > { %v4067_v53 = vpop.eup %4066 }
0x192e   : > { %v3439_v42 = vsel %vm3438_vm13, %v4065_v59, %v3435_v20  ;;  %v3447_v46 = vmul.f32 %v4067_v53, %v3430_v30  ;;  %vm3452_vm15 = vweird.f32 %v4067_v53  ;;  %v3792_v30 = vld [vmem:[%s5513_s21 + $0x80] sm:$0xff] }
0x192f   : > { %v5348_v32 = vsel %vm3441_vm14, %v3443_v24, %v3439_v42  ;;  %vm3453_vm1 = vmor %vm3451_vm4, %vm3452_vm15  ;;  %3536 = vmatpush.msrb.mxu3 %v3792_v30  ;;  %v3497_v24 = vsub.f32 0.0, %v5330_v31 }
0x1930   : > { %v3461_v27 = vmul.f32 0.17087276, %v5348_v32  ;;  %v3448_v21 = vsub.f32 1.0, %v3447_v46 }
0x1932   : > { %v3463_v50 = vadd.f32 -0.82215226, %v3461_v27  ;;  %v3449_v56 = vmul.f32 %v4067_v53, %v3448_v21  ;;  %v3499_v27 = vmul.f32 %v3497_v24, %v5330_v31 }
0x1934   : > { %v3465_v38 = vmul.f32 %v3463_v50, %v5348_v32  ;;  %v3450_v45 = vadd.f32 %v4067_v53, %v3449_v56  ;;  %v3498_v56 = vsub.f32 0.0, %v5339_v14 }
0x1936   : > { %v3467_v52 = vadd.f32 1.4885159, %v3465_v38  ;;  %v3454_v49 = vsel %vm3453_vm1, %v4067_v53, %v3450_v45  ;;  %v3500_v2 = vmul.f32 %v3498_v56, %v5339_v14 }
0x1937   : > { %v5365_v5 = vsel %vm3456_vm5, %v3458_v58, %v3454_v49 }
0x1938   : > { %v3469_v0 = vmul.f32 %v3467_v52, %v5348_v32  ;;  %v3462_v61 = vmul.f32 0.17087276, %v5365_v5 }
0x193a   : > { %v3471_v3 = vadd.f32 -1.135204, %v3469_v0  ;;  %v3464_v40 = vadd.f32 -0.82215226, %v3462_v61 }
0x193c   : > { %v3473_v12 = vmul.f32 %v3471_v3, %v5348_v32  ;;  %v3466_v4 = vmul.f32 %v3464_v40, %v5365_v5 }
0x193e   : > { %v3475_v43 = vadd.f32 0.27886808, %v3473_v12  ;;  %v3468_v36 = vadd.f32 1.4885159, %v3466_v4 }
0x1940   : > { %v3477_v8 = vmul.f32 %v3475_v43, %v5348_v32  ;;  %v3470_v29 = vmul.f32 %v3468_v36, %v5365_v5 }
0x1942   : > { %v3479_v22 = vadd.f32 -0.18628806, %v3477_v8  ;;  %v3472_v11 = vadd.f32 -1.135204, %v3470_v29 }
0x1944   : > { %v3481_v1 = vmul.f32 %v3479_v22, %v5348_v32  ;;  %v3474_v23 = vmul.f32 %v3472_v11, %v5365_v5 }
0x1946   : > { %v3483_v55 = vadd.f32 0.09678418, %v3481_v1  ;;  %v3476_v35 = vadd.f32 0.27886808, %v3474_v23 }
0x1948   : > { %v3485_v59 = vmul.f32 %v3483_v55, %v5348_v32  ;;  %v3478_v25 = vmul.f32 %v3476_v35, %v5365_v5  ;;  %v3609_v35 = vld [vmem:[%s5631_s24 + $0x10] sm:$0xff] }
0x194a   : > { %v3487_v6 = vadd.f32 0.37409195, %v3485_v59  ;;  %v3480_v39 = vadd.f32 -0.18628806, %v3478_v25  ;;  %v3608_v59 = vld [vmem:[%s5631_s24 + $0x8] sm:$0xff] }
0x194c   : > { %v3489_v37 = vmul.f32 %v3487_v6, %v5348_v32  ;;  %v3482_v20 = vmul.f32 %v3480_v39, %v5365_v5 }
0x194e   : > { %v3491_v48 = vadd.f32 1.0000237, %v3489_v37  ;;  %v3484_v53 = vadd.f32 0.09678418, %v3482_v20 }
0x1950   : > { %v3493_v42 = vmul.f32 %v3491_v48, %v5348_v32  ;;  %v3486_v26 = vmul.f32 %v3484_v53, %v5365_v5 }
0x1952   : > { %v3495_v46 = vadd.f32 -1.2655122, %v3493_v42  ;;  %v3488_v54 = vadd.f32 0.37409195, %v3486_v26 }
0x1954   : > { %v3501_v21 = vadd.f32 %v3499_v27, %v3495_v46  ;;  %v3490_v50 = vmul.f32 %v3488_v54, %v5365_v5  ;;  %v3929_v54 = vld [vmem:[%s5632_s5] ss:$0 sm:$0xff]  ;;  %s3851_s5 = sshll.u32 %s5635_s26, 4 }
0x1955   : > { %s3658_s9 = scalar_lea.hbm %s5638_s3, %s3851_s5 }
0x1956   : > { %v3503_v34 = vmul.f32 1.442695, %v3501_v21  ;;  %v3492_v19 = vadd.f32 1.0000237, %v3490_v50  ;;  %s3661_s11 = sshll.u32 %s3658_s9, 4  ;;  %s3662_s11 = int_to_ptr.hbm [resolvable:$true] %s3661_s11 }
0x1957   : > { %s4102_s30 = sshra.s32 %s3662_s11, 4  ;;  %s4103_s30 = int_to_ptr.hbm [resolvable:$true] %s4102_s30 }
0x1958   : > { %4068 = vpow2.f32 %v3503_v34  ;;  %v3494_v33 = vmul.f32 %v3492_v19, %v5365_v5  ;;  %v3930_v19 = vld [vmem:[%s5633_s7] ss:$0 sm:$0xff]  ;;  %s4104_s26 = scalar_lea.hbm %s4103_s30, 16  ;;  %p4109_p0 = scmp.lt.s32.totalorder %s4103_s30, %s5638_s3 }
0x1959   : > { %p4105_p11 = scmp.ne.s32.totalorder %s4103_s30, %s4104_s26  ;;  %p4110_p1 = scmp.lt.s32.totalorder %s4108_s1, %s4104_s26 }
0x195a   : > { %v3496_v38 = vadd.f32 -1.2655122, %v3494_v33 }
0x195b   : > { %p4106_p12 = pnand %p4105_p11, %p4341_p5  ;;  %p4111_p2 = por %p4110_p1, %p4109_p0 }
0x195c   : > { %v3502_v45 = vadd.f32 %v3500_v2, %v3496_v38 }
0x195d   : > { %p4107_p13 = pneg %p4106_p12 }
0x195e   : > { %v4069_v52 = vpop.eup %4068  ;;  %v3505_v60 = vmul.f32 1.442695, %v3502_v45 }
0x195f   : > { %v3507_v58 = vmul.f32 %v4069_v52, %v5348_v32  ;;  %p4112_p3 = pnand %p4111_p2, %p4107_p13 }
0x1960   : > { %4070 = vpow2.f32 %v3505_v60 }
0x1961   : > { %v3509_v31 = vsub.f32 1.0, %v3507_v58 }
0x1963   : > { %v3513_v49 = vsub.f32 0.0, %v3509_v31 }
0x1965   : > { %v3515_v0 = vsel %vm3511_vm11, %v3509_v31, %v3513_v49  ;;  %v3931_v49 = vld [vmem:[%s5636_s0] ss:$0 sm:$0xff] }
0x1966   : > { %v3517_v61 = vadd.f32 1.0, %v3515_v0  ;;  %v4071_v3 = vpop.eup %4070 }
0x1967   : > { %v3508_v40 = vmul.f32 %v4071_v3, %v5365_v5 }
0x1968   : > { %v3519_v18 = vmul.f32 %v3517_v61, %v3421_v57 }
0x1969   : > { %v3510_v14 = vsub.f32 1.0, %v3508_v40 }
0x196a   : > { %3537 = vmatmul.f32.vlgmr.msrb.gmra.mxu3 %v3519_v18 }
0x196b   : > { %v3514_v12 = vsub.f32 0.0, %v3510_v14 }
0x196d   : > { %v3516_v32 = vsel %vm3512_vm2, %v3510_v14, %v3514_v12 }
0x196e   : > { %v3518_v4 = vadd.f32 1.0, %v3516_v32 }
0x1970   : > { %v3520_v43 = vmul.f32 %v3518_v4, %v3422_v62 }
0x1972   : > { %3540 = vmatmul.f32.gmra.mxu3 %v3520_v43 }
0x19ed   : > { %v3538_v16 = vpop.f32.mrf.mxu3 }
0x19ee   : > { %v3544_v41 = vadd.f32 %v3538_v16, %v5284_v47 }
0x19f0   : > { %v3549_v36 = vadd.f32 %v3928_v7, %v3544_v41 }
0x19f2   : > { %v3553_v5 = vsel %vm931_vm3, %v3549_v36, 0.0 }
0x19f3   : > { %3554 = vadd.xlane.f32.xlu1 %v3553_v5 }
0x19f5   : > { %v3541_v8 = vpop.f32.mrf.mxu3 }
0x19f6   : > { %v3545_v13 = vadd.f32 %v3541_v8, %v5289_v44  ;;  %v3610_v44 = vld [vmem:[%s5630_s8 + $0x18] sm:$0xff]  ;;  %s811_s8 = scalar_lea.vmem [#allocation2], %s3728_s25 }
0x19f7   : > { %3633 = vmatpush.msra.mxu0 %v3610_v44  ;;  %s3659_s10 = sshll.u32 %s811_s8, 4  ;;  %s3660_s10 = int_to_ptr.vmem [resolvable:$true] %s3659_s10 }
0x19f8   : > { %v3550_v63 = vadd.f32 %v3928_v7, %v3545_v13 }
0x19f9   : > { %3634 = vmatpush.msra.mxu0 %v3609_v35 }
0x19fa   : > { %v3556_v51 = vsel %vm931_vm3, %v3550_v63, 0.0 }
0x19fb   : > { %3557 = vadd.xlane.f32.xlu0 %v3556_v51  ;;  %3635 = vmatpush.msra.mxu0 %v3608_v59 }
0x19fd   : > { %3636 = vmatpush.msra.mxu0 %v3607_v17 }
0x1a66   : > { %v3555_v29 = vpop.xlane.xlu1 %3554 }
0x1a67   : > { %v3559_v22 = vmul.f32 %v3555_v29, %v4390_v28 }
0x1a69   : > { %v3561_v10 = vsub.f32 %v3549_v36, %v3559_v22 }
0x1a6b   : > { %v3563_v11 = vmul.f32 %v3561_v10, %v3561_v10 }
0x1a6d   : > { %v3565_v1 = vsel %vm931_vm3, %v3563_v11, 0.0 }
0x1a6e   : > { %3566 = vadd.xlane.f32.xlu2 %v3565_v1  ;;  %v3558_v47 = vpop.xlane.xlu0 %3557 }
0x1a6f   : > { %v3560_v15 = vmul.f32 %v3558_v47, %v4390_v28 }
0x1a71   : > { %v3562_v23 = vsub.f32 %v3550_v63, %v3560_v15 }
0x1a73   : > { %v3564_v55 = vmul.f32 %v3562_v23, %v3562_v23 }
0x1a75   : > { %v3568_v9 = vsel %vm931_vm3, %v3564_v55, 0.0 }
0x1a76   : > { %3569 = vadd.xlane.f32.xlu1 %v3568_v9 }
0x1ae1   : > { %v3567_v30 = vpop.xlane.xlu2 %3566 }
0x1ae2   : > { %v3571_v25 = vmul.f32 %v3567_v30, %v4390_v28 }
0x1ae4   : > { %v3573_v6 = vadd.f32 1e-05, %v3571_v25 }
0x1ae6   : > { %4072 = vrsqrt.f32 %v3573_v6  ;;  %vm3581_vm7 = vweird.f32 %v3573_v6 }
0x1ae9   : > { %v3570_v39 = vpop.xlane.xlu1 %3569 }
0x1aea   : > { %v3572_v37 = vmul.f32 %v3570_v39, %v4390_v28 }
0x1aec   : > { %v4073_v20 = vpop.eup %4072  ;;  %v3574_v24 = vadd.f32 1e-05, %v3572_v37 }
0x1aed   : > { %v3576_v48 = vmul.f32 %v4073_v20, %v3573_v6  ;;  %vm3582_vm8 = vweird.f32 %v4073_v20 }
0x1aee   : > { %4074 = vrsqrt.f32 %v3574_v24  ;;  %vm3583_vm9 = vmor %vm3581_vm7, %vm3582_vm8  ;;  %vm3591_vm10 = vweird.f32 %v3574_v24 }
0x1aef   : > { %v3577_v53 = vmul.f32 %v4073_v20, %v3576_v48 }
0x1af1   : > { %v3578_v42 = vmul.f32 0.5, %v3577_v53 }
0x1af3   : > { %v3579_v26 = vsub.f32 1.5, %v3578_v42 }
0x1af4   : > { %v4075_v46 = vpop.eup %4074 }
0x1af5   : > { %v3580_v27 = vmul.f32 %v4073_v20, %v3579_v26  ;;  %v3586_v21 = vmul.f32 %v4075_v46, %v3574_v24  ;;  %vm3592_vm6 = vweird.f32 %v4075_v46 }
0x1af6   : > { %vm3593_vm12 = vmor %vm3591_vm10, %vm3592_vm6 }
0x1af7   : > { %v3584_v50 = vsel %vm3583_vm9, %v4073_v20, %v3580_v27  ;;  %v3587_v28 = vmul.f32 %v4075_v46, %v3586_v21 }
0x1af8   : > { %v3595_v34 = vmul.f32 %v3584_v50, %v3561_v10 }
0x1af9   : > { %v3588_v33 = vmul.f32 0.5, %v3587_v28 }
0x1afa   : > { %v3600_v56 = vmul.f32 %v3929_v54, %v3595_v34 }
0x1afb   : > { %v3589_v38 = vsub.f32 1.5, %v3588_v33 }
0x1afc   : > { %v3605_v2 = vadd.f32 %v3930_v19, %v3600_v56 }
0x1afd   : > { %v3590_v45 = vmul.f32 %v4075_v46, %v3589_v38 }
0x1afe   : > { %3843 = vmatmul.msk.f32.vlgmr.msra.gmra.mxu0 %vm931_vm3, %v3605_v2 }
0x1aff   : > { %v3594_v52 = vsel %vm3593_vm12, %v4075_v46, %v3590_v45 }
0x1b00   : > { %v3596_v58 = vmul.f32 %v3594_v52, %v3562_v23 }
0x1b02   : > { %v3601_v60 = vmul.f32 %v3929_v54, %v3596_v58 }
0x1b04   : > { %v3606_v31 = vadd.f32 %v3930_v19, %v3601_v60 }
0x1b06   : > { %3844 = vmatmul.msk.f32.gmra.mxu0 %vm931_vm3, %v3606_v31 }
0x1b7b   : > { %v3638_v0 = vpop.f32.mrf.mxu0 }
0x1b7c   : > { %v3639_v57 = vadd.f32 %v3931_v49, %v3638_v0 }
0x1b7e   : > { %3644 = vst.msk [vmem:[%s811_s8] sm:$0xff] %vm861_vm0, %v3639_v57 }
0x1b83   : > { %v3641_v61 = vpop.f32.mrf.mxu0 }
0x1b84   : > { %v3642_v3 = vadd.f32 %v3931_v49, %v3641_v61 }
0x1b86   : > { %3645 = vst.msk [vmem:[%s811_s8 + $0x8] sm:$0xff] %vm861_vm0, %v3642_v3 }
0x1b87   : > { %4115 = shalt.err (!%p4112_p3)
}
0x1b88   : > { %s4161_s23 = smov 128   ;;  %s4162_s5 = smov 8  }
0x1b89   : > { %3854 = dma.vmem_to_hbm [thread:$0]  (%p4341_p5), %s3660_s10, 256, %s3662_s11, %s3647_s4, %s4161_s23, %s4161_s23, %s4162_s5  }
0x1b8a PF: > { %s5639_s8 = sld [smem:[#allocation8_spill]] }
0x1b8b   : > { %s5640_s7 = sld [smem:[#allocation5_spill]] }
0x1b90   : > { %p3860_p4 = scmp.ge.s32.totalorder %s5639_s8, 2 }
0x1b91   : > { %s3676_s25 = sand.u32 1, %s5640_s7  }
0x1b92   : > { %p3857_p7 = pnand %p3860_p4, %p4345_p6  ;;  %s3677_s6 = scalar_lea.sflag [#allocation3], %s3676_s25 }
0x1b94   : > { %p3858_p8 = pneg %p3857_p7 }
0x1b96   : > { %4133 = dma.done.wait (%p3858_p8), %s3677_s6, 256  }
0x1b97   : > { %4135 = vsyncadd (%p3858_p8), %s3677_s6, 4294967040  ;;  %s5642_s30 = sld [smem:[#allocation10_spill]] }
0x1b98   : > { %s5643_s7 = sld [smem:[#allocation6_spill]] }
0x1b99   : > { %s5644_s4 = sld [smem:[#allocation7_spill]] }
0x1b9a   : > { %s5645_s8 = sld [smem:[#allocation11_spill]] }
0x1b9d   : > { %p37_p9 = scmp.ge.s32.totalorder %s5642_s30, 4  }
0x1b9f   :  { %39 = sbr.rel (!%p37_p9) target bundleno = 22 (0x16), region = 179 }
0x1ba4   :  { %3683 = vsyncpa [#allocation3], 1 }
0x1ba5   :  { %3685 = vsyncpa [#allocation3 + $0x1], 1 }

</bundles_post_ra>
